<compile_context>
chip_gen: v6e
topology: v6e:2x2x1
jax: 0.10.0
libtpu: 0.0.40
codegen_flags: <defaults>
</compile_context>

<pallas_src>
import functools

import jax
import jax.numpy as jnp
from jax.experimental import pallas as pl
from jax.experimental.pallas import tpu as pltpu


def _round_up(x, m):
    return (x + m - 1) // m * m


# ------------------------ fused LSTM + proj + logsoftmax ----------------------

def _make_fused_kernel(T, Bp, Hp, NL, V, Vp):
    def kernel(x_ref, wih_ref, whh_ref, b_ref, h0_ref, c0_ref, pw_ref, pb_ref,
               logp_ref, hT_ref, cT_ref, hids_scr, gates_scr):
        # Layer-0 input (already flattened to [T*Bp, Hp] by the wrapper).
        hids_scr[...] = x_ref[...]

        for l in range(NL):                       # static layer loop
            # Hoisted input projection: one MXU matmul for all T timesteps.
            gates_scr[...] = (
                jnp.dot(hids_scr[...], wih_ref[l],
                        preferred_element_type=jnp.float32)
                + b_ref[l])                       # [T*Bp, 4Hp]

            whh = whh_ref[l]                      # [Hp, 4Hp], VMEM resident
            h = h0_ref[l]                         # [Bp, Hp]
            c = c0_ref[l]                         # [Bp, Hp]

            # Serial recurrence, fully unrolled (T is small and static).
            for t in range(T):
                r0, r1 = t * Bp, (t + 1) * Bp
                g = gates_scr[r0:r1, :] + jnp.dot(
                    h, whh, preferred_element_type=jnp.float32)  # [Bp, 4Hp]
                # Hp = 128 -> each gate slice is a whole-lane block (no XLU).
                i_g = jax.nn.sigmoid(g[:, 0 * Hp:1 * Hp])
                f_g = jax.nn.sigmoid(g[:, 1 * Hp:2 * Hp])
                g_g = jnp.tanh(g[:, 2 * Hp:3 * Hp])
                o_g = jax.nn.sigmoid(g[:, 3 * Hp:4 * Hp])
                c = f_g * c + i_g * g_g
                h = o_g * jnp.tanh(c)
                # Overwrite this layer's (already consumed) input slot with its
                # output hidden state -> becomes next layer's input.
                hids_scr[r0:r1, :] = h

            hT_ref[l] = h
            cT_ref[l] = c

        # Final Linear + LogSoftmax on the last layer's hiddens (lane-dense Vp).
        logits = (jnp.dot(hids_scr[...], pw_ref[...],
                          preferred_element_type=jnp.float32)
                  + pb_ref[...])                  # [T*Bp, Vp]
        col = jax.lax.broadcasted_iota(jnp.int32, (T * Bp, Vp), 1)
        logits = jnp.where(col < V, logits, jnp.float32(-1e30))
        m = jnp.max(logits, axis=-1, keepdims=True)
        z = logits - m
        lse = jnp.log(jnp.sum(jnp.exp(z), axis=-1, keepdims=True))
        logp_ref[...] = z - lse

    return kernel


def _fused_forward_pallas(x_flat, wih_all, whh_all, b_all, h0, c0, pw, pb,
                          *, T, Bp, Hp, NL, V, Vp):
    kernel = _make_fused_kernel(T, Bp, Hp, NL, V, Vp)
    return pl.pallas_call(
        kernel,
        out_shape=(
            jax.ShapeDtypeStruct((T * Bp, Vp), jnp.float32),   # log-probs (padded)
            jax.ShapeDtypeStruct((NL, Bp, Hp), jnp.float32),   # hT (padded)
            jax.ShapeDtypeStruct((NL, Bp, Hp), jnp.float32),   # cT (padded)
        ),
        grid_spec=pltpu.PrefetchScalarGridSpec(
            num_scalar_prefetch=0,
            grid=(1,),
            in_specs=[
                pl.BlockSpec((T * Bp, Hp), lambda i: (0, 0)),
                pl.BlockSpec((NL, Hp, 4 * Hp), lambda i: (0, 0, 0)),
                pl.BlockSpec((NL, Hp, 4 * Hp), lambda i: (0, 0, 0)),
                pl.BlockSpec((NL, 1, 4 * Hp), lambda i: (0, 0, 0)),
                pl.BlockSpec((NL, Bp, Hp), lambda i: (0, 0, 0)),
                pl.BlockSpec((NL, Bp, Hp), lambda i: (0, 0, 0)),
                pl.BlockSpec((Hp, Vp), lambda i: (0, 0)),
                pl.BlockSpec((1, Vp), lambda i: (0, 0)),
            ],
            out_specs=[
                pl.BlockSpec((T * Bp, Vp), lambda i: (0, 0)),
                pl.BlockSpec((NL, Bp, Hp), lambda i: (0, 0, 0)),
                pl.BlockSpec((NL, Bp, Hp), lambda i: (0, 0, 0)),
            ],
            scratch_shapes=[
                pltpu.VMEM((T * Bp, Hp), jnp.float32),       # layer in/out hiddens
                pltpu.VMEM((T * Bp, 4 * Hp), jnp.float32),   # hoisted input gates
            ],
        ),
        compiler_params=pltpu.CompilerParams(
            dimension_semantics=("arbitrary",)),
    )(x_flat, wih_all, whh_all, b_all, h0, c0, pw, pb)


# -------------------------- padding helpers (JAX glue) ------------------------

def _pad_gate_weight(w_t, H, Hp):
    """[H, 4H] (gate blocks i,f,g,o of width H) -> [Hp, 4Hp] zero-padded per gate."""
    blocks = [jnp.pad(w_t[:, g * H:(g + 1) * H], ((0, Hp - H), (0, Hp - H)))
              for g in range(4)]
    return jnp.concatenate(blocks, axis=1)


def _pad_gate_bias(b, H, Hp):
    """[1, 4H] -> [1, 4Hp] zero-padded per gate."""
    blocks = [jnp.pad(b[:, g * H:(g + 1) * H], ((0, 0), (0, Hp - H)))
              for g in range(4)]
    return jnp.concatenate(blocks, axis=1)


# ------------------------------ LstmLm forward --------------------------------

def lstm_lm_forward(params, input_idx, hid=None):
    """
    input_idx: [T, B] int32 token indices.
    hid: optional (h0, c0), each [nlayers, B, H]; None -> zeros.
    Returns (log_prob [T, B, V], (hT [nlayers, B, H], cT [nlayers, B, H])).
    """
    T, B = input_idx.shape
    NL = len(params["lstm"])
    H = params["lut"].shape[1]
    V = params["proj_w_t"].shape[1]

    Hp = _round_up(H, 128)
    Bp = _round_up(B, 8)
    Vp = _round_up(V, 128)

    # Embedding lookup (glue; max_norm=None since args.maxnorm == False).
    # TODO(synk): could fuse the gather into the kernel via scalar-prefetch +
    # pl.Element row-gather index_map once T*B*H is large enough to matter.
    x = jnp.take(params["lut"], input_idx, axis=0)                 # [T, B, H]
    x = jnp.pad(x, ((0, 0), (0, Bp - B), (0, Hp - H)))             # [T, Bp, Hp]
    x_flat = x.reshape(T * Bp, Hp)

    # Per-gate zero-padded, stacked weights (padded hidden channels stay exactly
    # zero through the recurrence, so padding is lossless).
    wih_all = jnp.stack([_pad_gate_weight(w, H, Hp) for (w, _, _) in params["lstm"]])
    whh_all = jnp.stack([_pad_gate_weight(w, H, Hp) for (_, w, _) in params["lstm"]])
    b_all = jnp.stack([_pad_gate_bias(b, H, Hp) for (_, _, b) in params["lstm"]])

    if hid is None:
        h0 = jnp.zeros((NL, Bp, Hp), jnp.float32)
        c0 = jnp.zeros((NL, Bp, Hp), jnp.float32)
    else:
        h0_in, c0_in = hid
        h0 = jnp.pad(h0_in, ((0, 0), (0, Bp - B), (0, Hp - H)))
        c0 = jnp.pad(c0_in, ((0, 0), (0, Bp - B), (0, Hp - H)))

    pw = jnp.pad(params["proj_w_t"], ((0, Hp - H), (0, Vp - V)))   # [Hp, Vp]
    pb = jnp.pad(params["proj_b"], ((0, 0), (0, Vp - V)))          # [1, Vp]

    logp_p, hT_p, cT_p = _fused_forward_pallas(
        x_flat, wih_all, whh_all, b_all, h0, c0, pw, pb,
        T=T, Bp=Bp, Hp=Hp, NL=NL, V=V, Vp=Vp)

    log_prob = logp_p.reshape(T, Bp, Vp)[:, :B, :V]
    hT = hT_p[:, :B, :H]
    cT = cT_p[:, :B, :H]
    return log_prob, (hT, cT)


# --------------------------- pure-JAX reference (check) -----------------------

def lstm_lm_reference(params, input_idx, hid=None):
    T, B = input_idx.shape
    NL = len(params["lstm"])
    H = params["lut"].shape[1]
    V = params["proj_w_t"].shape[1]
    x = jnp.take(params["lut"], input_idx, axis=0)
    if hid is None:
        hs = [jnp.zeros((B, H), jnp.float32) for _ in range(NL)]
        cs = [jnp.zeros((B, H), jnp.float32) for _ in range(NL)]
    else:
        h0, c0 = hid
        hs = [h0[l] for l in range(NL)]
        cs = [c0[l] for l in range(NL)]
    for l in range(NL):
        wih_t, whh_t, b = params["lstm"][l]
        h, c = hs[l], cs[l]
        outs = []
        for t in range(T):
            g = x[t] @ wih_t + h @ whh_t + b
            i_g = jax.nn.sigmoid(g[:, 0:H])
            f_g = jax.nn.sigmoid(g[:, H:2 * H])
            g_g = jnp.tanh(g[:, 2 * H:3 * H])
            o_g = jax.nn.sigmoid(g[:, 3 * H:4 * H])
            c = f_g * c + i_g * g_g
            h = o_g * jnp.tanh(c)
            outs.append(h)
        x = jnp.stack(outs)
        hs[l], cs[l] = h, c
    logits = x.reshape(T * B, H) @ params["proj_w_t"] + params["proj_b"]
    logp = jax.nn.log_softmax(logits, axis=-1)
    return logp.reshape(T, B, V), (jnp.stack(hs), jnp.stack(cs))


# ---------------------------------- main --------------------------------------

if __name__ == "__main__":
    # Small config consistent with the module: args.nhid=32, args.nlayers=2,
    # vocab size 50, bptt (timeSteps)=8, batch=2, loss='regularCrossEntropy',
    # tieweights=False, maxnorm=False.
    T, B, H, NL, V = 8, 2, 32, 2, 50

    key = jax.random.PRNGKey(0)
    keys = jax.random.split(key, 4 + 4 * NL)

    params = {
        "lut": 0.1 * jax.random.normal(keys[0], (V, H), jnp.float32),
        "proj_w_t": 0.1 * jax.random.normal(keys[1], (H, V), jnp.float32),
        "proj_b": 0.1 * jax.random.normal(keys[2], (1, V), jnp.float32),
        "lstm": [],
    }
    for l in range(NL):
        k0, k1, k2, k3 = keys[4 + 4 * l: 8 + 4 * l]
        wih_t = 0.1 * jax.random.normal(k0, (H, 4 * H), jnp.float32)
        whh_t = 0.1 * jax.random.normal(k1, (H, 4 * H), jnp.float32)
        b_ih = 0.1 * jax.random.normal(k2, (1, 4 * H), jnp.float32)
        b_hh = 0.1 * jax.random.normal(k3, (1, 4 * H), jnp.float32)
        params["lstm"].append((wih_t, whh_t, b_ih + b_hh))

    input_idx = jax.random.randint(keys[3], (T, B), 0, V, dtype=jnp.int32)

    fwd = jax.jit(lstm_lm_forward)
    log_prob, (hT, cT) = fwd(params, input_idx)
    jax.block_until_ready((log_prob, hT, cT))

    assert log_prob.shape == (T, B, V)
    assert hT.shape == (NL, B, H) and cT.shape == (NL, B, H)
    assert bool(jnp.all(jnp.isfinite(log_prob)))

    # Numerical check against a pure-JAX reference of the same forward pass.
    ref_lp, (ref_hT, ref_cT) = lstm_lm_reference(params, input_idx)
    assert float(jnp.max(jnp.abs(log_prob - ref_lp))) < 2e-3
    assert float(jnp.max(jnp.abs(hT - ref_hT))) < 2e-3
    assert float(jnp.max(jnp.abs(cT - ref_cT))) < 2e-3

    print("KERNEL_OK")
</pallas_src>

<mosaic_0001>
module attributes {stable_mosaic.version = 11 : i64} {
  func.func @kernel(%arg0: i32, %arg1: memref<64x128xf32, #tpu.memory_space<vmem>>, %arg2: memref<2x128x512xf32, #tpu.memory_space<vmem>>, %arg3: memref<2x128x512xf32, #tpu.memory_space<vmem>>, %arg4: memref<2x1x512xf32, #tpu.memory_space<vmem>>, %arg5: memref<2x8x128xf32, #tpu.memory_space<vmem>>, %arg6: memref<2x8x128xf32, #tpu.memory_space<vmem>>, %arg7: memref<128x128xf32, #tpu.memory_space<vmem>>, %arg8: memref<1x128xf32, #tpu.memory_space<vmem>>, %arg9: memref<64x128xf32, #tpu.memory_space<vmem>>, %arg10: memref<2x8x128xf32, #tpu.memory_space<vmem>>, %arg11: memref<2x8x128xf32, #tpu.memory_space<vmem>>, %arg12: memref<64x128xf32, #tpu.memory_space<vmem>>, %arg13: memref<64x512xf32, #tpu.memory_space<vmem>>) attributes {dimension_semantics = [#tpu.dimension_semantics<arbitrary>], iteration_bounds = array<i64: 1>, scalar_prefetch = 0 : i64, scratch_operands = 2 : i64, tpu.core_type = #tpu.core_type<tc>, window_params = [{pipeline_mode = #tpu.pipeline_mode<synchronous>, transform_indices = @transform_0, window_bounds = array<i64: 64, 128>}, {pipeline_mode = #tpu.pipeline_mode<synchronous>, transform_indices = @transform_1, window_bounds = array<i64: 2, 128, 512>}, {pipeline_mode = #tpu.pipeline_mode<synchronous>, transform_indices = @transform_2, window_bounds = array<i64: 2, 128, 512>}, {pipeline_mode = #tpu.pipeline_mode<synchronous>, transform_indices = @transform_3, window_bounds = array<i64: 2, 1, 512>}, {pipeline_mode = #tpu.pipeline_mode<synchronous>, transform_indices = @transform_4, window_bounds = array<i64: 2, 8, 128>}, {pipeline_mode = #tpu.pipeline_mode<synchronous>, transform_indices = @transform_5, window_bounds = array<i64: 2, 8, 128>}, {pipeline_mode = #tpu.pipeline_mode<synchronous>, transform_indices = @transform_6, window_bounds = array<i64: 128, 128>}, {pipeline_mode = #tpu.pipeline_mode<synchronous>, transform_indices = @transform_7, window_bounds = array<i64: 1, 128>}, {pipeline_mode = #tpu.pipeline_mode<synchronous>, transform_indices = @transform_8, window_bounds = array<i64: 64, 128>}, {pipeline_mode = #tpu.pipeline_mode<synchronous>, transform_indices = @transform_9, window_bounds = array<i64: 2, 8, 128>}, {pipeline_mode = #tpu.pipeline_mode<synchronous>, transform_indices = @transform_10, window_bounds = array<i64: 2, 8, 128>}]} {
    %c0 = arith.constant 0 : index
    %c0_0 = arith.constant 0 : index
    %0 = vector.load %arg1[%c0, %c0_0] : memref<64x128xf32, #tpu.memory_space<vmem>>, vector<64x128xf32>
    %c0_1 = arith.constant 0 : index
    %c0_2 = arith.constant 0 : index
    %1 = vector.load %arg12[%c0_1, %c0_2] : memref<64x128xf32, #tpu.memory_space<vmem>>, vector<64x128xf32>
    tpu.vector_store %arg12[%c0_1, %c0_2], %0 {strides = array<i32>} : memref<64x128xf32, #tpu.memory_space<vmem>>, vector<64x128xf32>,
    %c0_3 = arith.constant 0 : index
    %c0_4 = arith.constant 0 : index
    %2 = vector.load %arg12[%c0_3, %c0_4] : memref<64x128xf32, #tpu.memory_space<vmem>>, vector<64x128xf32>
    %c0_5 = arith.constant 0 : index
    %c0_6 = arith.constant 0 : index
    %c0_7 = arith.constant 0 : index
    %3 = vector.load %arg2[%c0_5, %c0_6, %c0_7] : memref<2x128x512xf32, #tpu.memory_space<vmem>>, vector<1x128x512xf32>
    %4 = vector.shape_cast %3 : vector<1x128x512xf32> to vector<128x512xf32>
    %cst = arith.constant dense<0.000000e+00> : vector<64x512xf32>
    %5 = tpu.matmul %2, %4, %cst {dimension_numbers = #tpu.dot_dimension_numbers<[1], [0], [0], [1], [0, 0, 1, 1], [], []>} : vector<64x128xf32>, vector<128x512xf32>, vector<64x512xf32> -> vector<64x512xf32>
    %c0_8 = arith.constant 0 : index
    %c0_9 = arith.constant 0 : index
    %c0_10 = arith.constant 0 : index
    %6 = vector.load %arg4[%c0_8, %c0_9, %c0_10] : memref<2x1x512xf32, #tpu.memory_space<vmem>>, vector<1x1x512xf32>
    %7 = vector.shape_cast %6 : vector<1x1x512xf32> to vector<1x512xf32>
    %8 = vector.broadcast %7 : vector<1x512xf32> to vector<64x512xf32>
    %9 = arith.addf %5, %8 : vector<64x512xf32>
    %c0_11 = arith.constant 0 : index
    %c0_12 = arith.constant 0 : index
    %10 = vector.load %arg13[%c0_11, %c0_12] : memref<64x512xf32, #tpu.memory_space<vmem>>, vector<64x512xf32>
    tpu.vector_store %arg13[%c0_11, %c0_12], %9 {strides = array<i32>} : memref<64x512xf32, #tpu.memory_space<vmem>>, vector<64x512xf32>,
    %c0_13 = arith.constant 0 : index
    %c0_14 = arith.constant 0 : index
    %c0_15 = arith.constant 0 : index
    %11 = vector.load %arg3[%c0_13, %c0_14, %c0_15] : memref<2x128x512xf32, #tpu.memory_space<vmem>>, vector<1x128x512xf32>
    %12 = vector.shape_cast %11 : vector<1x128x512xf32> to vector<128x512xf32>
    %c0_16 = arith.constant 0 : index
    %c0_17 = arith.constant 0 : index
    %c0_18 = arith.constant 0 : index
    %13 = vector.load %arg5[%c0_16, %c0_17, %c0_18] : memref<2x8x128xf32, #tpu.memory_space<vmem>>, vector<1x8x128xf32>
    %14 = vector.shape_cast %13 : vector<1x8x128xf32> to vector<8x128xf32>
    %c0_19 = arith.constant 0 : index
    %c0_20 = arith.constant 0 : index
    %c0_21 = arith.constant 0 : index
    %15 = vector.load %arg6[%c0_19, %c0_20, %c0_21] : memref<2x8x128xf32, #tpu.memory_space<vmem>>, vector<1x8x128xf32>
    %16 = vector.shape_cast %15 : vector<1x8x128xf32> to vector<8x128xf32>
    %c0_22 = arith.constant 0 : index
    %c0_23 = arith.constant 0 : index
    %17 = vector.load %arg13[%c0_22, %c0_23] : memref<64x512xf32, #tpu.memory_space<vmem>>, vector<8x512xf32>
    %cst_24 = arith.constant dense<0.000000e+00> : vector<8x512xf32>
    %18 = tpu.matmul %14, %12, %cst_24 {dimension_numbers = #tpu.dot_dimension_numbers<[1], [0], [0], [1], [0, 0, 1, 1], [], []>} : vector<8x128xf32>, vector<128x512xf32>, vector<8x512xf32> -> vector<8x512xf32>
    %19 = arith.addf %17, %18 : vector<8x512xf32>
    %20 = vector.extract_strided_slice %19 {offsets = [0, 0], sizes = [8, 128], strides = [1, 1]} : vector<8x512xf32> to vector<8x128xf32>
    %21 = arith.negf %20 : vector<8x128xf32>
    %22 = math.exp %21 : vector<8x128xf32>
    %cst_25 = arith.constant 1.000000e+00 : f32
    %23 = vector.broadcast %cst_25 : f32 to vector<8x128xf32>
    %24 = arith.addf %23, %22 : vector<8x128xf32>
    %25 = arith.divf %23, %24 : vector<8x128xf32>
    %26 = vector.extract_strided_slice %19 {offsets = [0, 128], sizes = [8, 128], strides = [1, 1]} : vector<8x512xf32> to vector<8x128xf32>
    %27 = arith.negf %26 : vector<8x128xf32>
    %28 = math.exp %27 : vector<8x128xf32>
    %cst_26 = arith.constant 1.000000e+00 : f32
    %29 = vector.broadcast %cst_26 : f32 to vector<8x128xf32>
    %30 = arith.addf %29, %28 : vector<8x128xf32>
    %31 = arith.divf %29, %30 : vector<8x128xf32>
    %32 = vector.extract_strided_slice %19 {offsets = [0, 256], sizes = [8, 128], strides = [1, 1]} : vector<8x512xf32> to vector<8x128xf32>
    %33 = math.tanh %32 : vector<8x128xf32>
    %34 = vector.extract_strided_slice %19 {offsets = [0, 384], sizes = [8, 128], strides = [1, 1]} : vector<8x512xf32> to vector<8x128xf32>
    %35 = arith.negf %34 : vector<8x128xf32>
    %36 = math.exp %35 : vector<8x128xf32>
    %cst_27 = arith.constant 1.000000e+00 : f32
    %37 = vector.broadcast %cst_27 : f32 to vector<8x128xf32>
    %38 = arith.addf %37, %36 : vector<8x128xf32>
    %39 = arith.divf %37, %38 : vector<8x128xf32>
    %40 = arith.mulf %31, %16 : vector<8x128xf32>
    %41 = arith.mulf %25, %33 : vector<8x128xf32>
    %42 = arith.addf %40, %41 : vector<8x128xf32>
    %43 = math.tanh %42 : vector<8x128xf32>
    %44 = arith.mulf %39, %43 : vector<8x128xf32>
    %c0_28 = arith.constant 0 : index
    %c0_29 = arith.constant 0 : index
    %45 = vector.load %arg12[%c0_28, %c0_29] : memref<64x128xf32, #tpu.memory_space<vmem>>, vector<8x128xf32>
    tpu.vector_store %arg12[%c0_28, %c0_29], %44 {strides = array<i32>} : memref<64x128xf32, #tpu.memory_space<vmem>>, vector<8x128xf32>,
    %c8 = arith.constant 8 : index
    %c0_30 = arith.constant 0 : index
    %46 = vector.load %arg13[%c8, %c0_30] : memref<64x512xf32, #tpu.memory_space<vmem>>, vector<8x512xf32>
    %cst_31 = arith.constant dense<0.000000e+00> : vector<8x512xf32>
    %47 = tpu.matmul %44, %12, %cst_31 {dimension_numbers = #tpu.dot_dimension_numbers<[1], [0], [0], [1], [0, 0, 1, 1], [], []>} : vector<8x128xf32>, vector<128x512xf32>, vector<8x512xf32> -> vector<8x512xf32>
    %48 = arith.addf %46, %47 : vector<8x512xf32>
    %49 = vector.extract_strided_slice %48 {offsets = [0, 0], sizes = [8, 128], strides = [1, 1]} : vector<8x512xf32> to vector<8x128xf32>
    %50 = arith.negf %49 : vector<8x128xf32>
    %51 = math.exp %50 : vector<8x128xf32>
    %cst_32 = arith.constant 1.000000e+00 : f32
    %52 = vector.broadcast %cst_32 : f32 to vector<8x128xf32>
    %53 = arith.addf %52, %51 : vector<8x128xf32>
    %54 = arith.divf %52, %53 : vector<8x128xf32>
    %55 = vector.extract_strided_slice %48 {offsets = [0, 128], sizes = [8, 128], strides = [1, 1]} : vector<8x512xf32> to vector<8x128xf32>
    %56 = arith.negf %55 : vector<8x128xf32>
    %57 = math.exp %56 : vector<8x128xf32>
    %cst_33 = arith.constant 1.000000e+00 : f32
    %58 = vector.broadcast %cst_33 : f32 to vector<8x128xf32>
    %59 = arith.addf %58, %57 : vector<8x128xf32>
    %60 = arith.divf %58, %59 : vector<8x128xf32>
    %61 = vector.extract_strided_slice %48 {offsets = [0, 256], sizes = [8, 128], strides = [1, 1]} : vector<8x512xf32> to vector<8x128xf32>
    %62 = math.tanh %61 : vector<8x128xf32>
    %63 = vector.extract_strided_slice %48 {offsets = [0, 384], sizes = [8, 128], strides = [1, 1]} : vector<8x512xf32> to vector<8x128xf32>
    %64 = arith.negf %63 : vector<8x128xf32>
    %65 = math.exp %64 : vector<8x128xf32>
    %cst_34 = arith.constant 1.000000e+00 : f32
    %66 = vector.broadcast %cst_34 : f32 to vector<8x128xf32>
    %67 = arith.addf %66, %65 : vector<8x128xf32>
    %68 = arith.divf %66, %67 : vector<8x128xf32>
    %69 = arith.mulf %60, %42 : vector<8x128xf32>
    %70 = arith.mulf %54, %62 : vector<8x128xf32>
    %71 = arith.addf %69, %70 : vector<8x128xf32>
    %72 = math.tanh %71 : vector<8x128xf32>
    %73 = arith.mulf %68, %72 : vector<8x128xf32>
    %c8_35 = arith.constant 8 : index
    %c0_36 = arith.constant 0 : index
    %74 = vector.load %arg12[%c8_35, %c0_36] : memref<64x128xf32, #tpu.memory_space<vmem>>, vector<8x128xf32>
    tpu.vector_store %arg12[%c8_35, %c0_36], %73 {strides = array<i32>} : memref<64x128xf32, #tpu.memory_space<vmem>>, vector<8x128xf32>,
    %c16 = arith.constant 16 : index
    %c0_37 = arith.constant 0 : index
    %75 = vector.load %arg13[%c16, %c0_37] : memref<64x512xf32, #tpu.memory_space<vmem>>, vector<8x512xf32>
    %cst_38 = arith.constant dense<0.000000e+00> : vector<8x512xf32>
    %76 = tpu.matmul %73, %12, %cst_38 {dimension_numbers = #tpu.dot_dimension_numbers<[1], [0], [0], [1], [0, 0, 1, 1], [], []>} : vector<8x128xf32>, vector<128x512xf32>, vector<8x512xf32> -> vector<8x512xf32>
    %77 = arith.addf %75, %76 : vector<8x512xf32>
    %78 = vector.extract_strided_slice %77 {offsets = [0, 0], sizes = [8, 128], strides = [1, 1]} : vector<8x512xf32> to vector<8x128xf32>
    %79 = arith.negf %78 : vector<8x128xf32>
    %80 = math.exp %79 : vector<8x128xf32>
    %cst_39 = arith.constant 1.000000e+00 : f32
    %81 = vector.broadcast %cst_39 : f32 to vector<8x128xf32>
    %82 = arith.addf %81, %80 : vector<8x128xf32>
    %83 = arith.divf %81, %82 : vector<8x128xf32>
    %84 = vector.extract_strided_slice %77 {offsets = [0, 128], sizes = [8, 128], strides = [1, 1]} : vector<8x512xf32> to vector<8x128xf32>
    %85 = arith.negf %84 : vector<8x128xf32>
    %86 = math.exp %85 : vector<8x128xf32>
    %cst_40 = arith.constant 1.000000e+00 : f32
    %87 = vector.broadcast %cst_40 : f32 to vector<8x128xf32>
    %88 = arith.addf %87, %86 : vector<8x128xf32>
    %89 = arith.divf %87, %88 : vector<8x128xf32>
    %90 = vector.extract_strided_slice %77 {offsets = [0, 256], sizes = [8, 128], strides = [1, 1]} : vector<8x512xf32> to vector<8x128xf32>
    %91 = math.tanh %90 : vector<8x128xf32>
    %92 = vector.extract_strided_slice %77 {offsets = [0, 384], sizes = [8, 128], strides = [1, 1]} : vector<8x512xf32> to vector<8x128xf32>
    %93 = arith.negf %92 : vector<8x128xf32>
    %94 = math.exp %93 : vector<8x128xf32>
    %cst_41 = arith.constant 1.000000e+00 : f32
    %95 = vector.broadcast %cst_41 : f32 to vector<8x128xf32>
    %96 = arith.addf %95, %94 : vector<8x128xf32>
    %97 = arith.divf %95, %96 : vector<8x128xf32>
    %98 = arith.mulf %89, %71 : vector<8x128xf32>
    %99 = arith.mulf %83, %91 : vector<8x128xf32>
    %100 = arith.addf %98, %99 : vector<8x128xf32>
    %101 = math.tanh %100 : vector<8x128xf32>
    %102 = arith.mulf %97, %101 : vector<8x128xf32>
    %c16_42 = arith.constant 16 : index
    %c0_43 = arith.constant 0 : index
    %103 = vector.load %arg12[%c16_42, %c0_43] : memref<64x128xf32, #tpu.memory_space<vmem>>, vector<8x128xf32>
    tpu.vector_store %arg12[%c16_42, %c0_43], %102 {strides = array<i32>} : memref<64x128xf32, #tpu.memory_space<vmem>>, vector<8x128xf32>,
    %c24 = arith.constant 24 : index
    %c0_44 = arith.constant 0 : index
    %104 = vector.load %arg13[%c24, %c0_44] : memref<64x512xf32, #tpu.memory_space<vmem>>, vector<8x512xf32>
    %cst_45 = arith.constant dense<0.000000e+00> : vector<8x512xf32>
    %105 = tpu.matmul %102, %12, %cst_45 {dimension_numbers = #tpu.dot_dimension_numbers<[1], [0], [0], [1], [0, 0, 1, 1], [], []>} : vector<8x128xf32>, vector<128x512xf32>, vector<8x512xf32> -> vector<8x512xf32>
    %106 = arith.addf %104, %105 : vector<8x512xf32>
    %107 = vector.extract_strided_slice %106 {offsets = [0, 0], sizes = [8, 128], strides = [1, 1]} : vector<8x512xf32> to vector<8x128xf32>
    %108 = arith.negf %107 : vector<8x128xf32>
    %109 = math.exp %108 : vector<8x128xf32>
    %cst_46 = arith.constant 1.000000e+00 : f32
    %110 = vector.broadcast %cst_46 : f32 to vector<8x128xf32>
    %111 = arith.addf %110, %109 : vector<8x128xf32>
    %112 = arith.divf %110, %111 : vector<8x128xf32>
    %113 = vector.extract_strided_slice %106 {offsets = [0, 128], sizes = [8, 128], strides = [1, 1]} : vector<8x512xf32> to vector<8x128xf32>
    %114 = arith.negf %113 : vector<8x128xf32>
    %115 = math.exp %114 : vector<8x128xf32>
    %cst_47 = arith.constant 1.000000e+00 : f32
    %116 = vector.broadcast %cst_47 : f32 to vector<8x128xf32>
    %117 = arith.addf %116, %115 : vector<8x128xf32>
    %118 = arith.divf %116, %117 : vector<8x128xf32>
    %119 = vector.extract_strided_slice %106 {offsets = [0, 256], sizes = [8, 128], strides = [1, 1]} : vector<8x512xf32> to vector<8x128xf32>
    %120 = math.tanh %119 : vector<8x128xf32>
    %121 = vector.extract_strided_slice %106 {offsets = [0, 384], sizes = [8, 128], strides = [1, 1]} : vector<8x512xf32> to vector<8x128xf32>
    %122 = arith.negf %121 : vector<8x128xf32>
    %123 = math.exp %122 : vector<8x128xf32>
    %cst_48 = arith.constant 1.000000e+00 : f32
    %124 = vector.broadcast %cst_48 : f32 to vector<8x128xf32>
    %125 = arith.addf %124, %123 : vector<8x128xf32>
    %126 = arith.divf %124, %125 : vector<8x128xf32>
    %127 = arith.mulf %118, %100 : vector<8x128xf32>
    %128 = arith.mulf %112, %120 : vector<8x128xf32>
    %129 = arith.addf %127, %128 : vector<8x128xf32>
    %130 = math.tanh %129 : vector<8x128xf32>
    %131 = arith.mulf %126, %130 : vector<8x128xf32>
    %c24_49 = arith.constant 24 : index
    %c0_50 = arith.constant 0 : index
    %132 = vector.load %arg12[%c24_49, %c0_50] : memref<64x128xf32, #tpu.memory_space<vmem>>, vector<8x128xf32>
    tpu.vector_store %arg12[%c24_49, %c0_50], %131 {strides = array<i32>} : memref<64x128xf32, #tpu.memory_space<vmem>>, vector<8x128xf32>,
    %c32 = arith.constant 32 : index
    %c0_51 = arith.constant 0 : index
    %133 = vector.load %arg13[%c32, %c0_51] : memref<64x512xf32, #tpu.memory_space<vmem>>, vector<8x512xf32>
    %cst_52 = arith.constant dense<0.000000e+00> : vector<8x512xf32>
    %134 = tpu.matmul %131, %12, %cst_52 {dimension_numbers = #tpu.dot_dimension_numbers<[1], [0], [0], [1], [0, 0, 1, 1], [], []>} : vector<8x128xf32>, vector<128x512xf32>, vector<8x512xf32> -> vector<8x512xf32>
    %135 = arith.addf %133, %134 : vector<8x512xf32>
    %136 = vector.extract_strided_slice %135 {offsets = [0, 0], sizes = [8, 128], strides = [1, 1]} : vector<8x512xf32> to vector<8x128xf32>
    %137 = arith.negf %136 : vector<8x128xf32>
    %138 = math.exp %137 : vector<8x128xf32>
    %cst_53 = arith.constant 1.000000e+00 : f32
    %139 = vector.broadcast %cst_53 : f32 to vector<8x128xf32>
    %140 = arith.addf %139, %138 : vector<8x128xf32>
    %141 = arith.divf %139, %140 : vector<8x128xf32>
    %142 = vector.extract_strided_slice %135 {offsets = [0, 128], sizes = [8, 128], strides = [1, 1]} : vector<8x512xf32> to vector<8x128xf32>
    %143 = arith.negf %142 : vector<8x128xf32>
    %144 = math.exp %143 : vector<8x128xf32>
    %cst_54 = arith.constant 1.000000e+00 : f32
    %145 = vector.broadcast %cst_54 : f32 to vector<8x128xf32>
    %146 = arith.addf %145, %144 : vector<8x128xf32>
    %147 = arith.divf %145, %146 : vector<8x128xf32>
    %148 = vector.extract_strided_slice %135 {offsets = [0, 256], sizes = [8, 128], strides = [1, 1]} : vector<8x512xf32> to vector<8x128xf32>
    %149 = math.tanh %148 : vector<8x128xf32>
    %150 = vector.extract_strided_slice %135 {offsets = [0, 384], sizes = [8, 128], strides = [1, 1]} : vector<8x512xf32> to vector<8x128xf32>
    %151 = arith.negf %150 : vector<8x128xf32>
    %152 = math.exp %151 : vector<8x128xf32>
    %cst_55 = arith.constant 1.000000e+00 : f32
    %153 = vector.broadcast %cst_55 : f32 to vector<8x128xf32>
    %154 = arith.addf %153, %152 : vector<8x128xf32>
    %155 = arith.divf %153, %154 : vector<8x128xf32>
    %156 = arith.mulf %147, %129 : vector<8x128xf32>
    %157 = arith.mulf %141, %149 : vector<8x128xf32>
    %158 = arith.addf %156, %157 : vector<8x128xf32>
    %159 = math.tanh %158 : vector<8x128xf32>
    %160 = arith.mulf %155, %159 : vector<8x128xf32>
    %c32_56 = arith.constant 32 : index
    %c0_57 = arith.constant 0 : index
    %161 = vector.load %arg12[%c32_56, %c0_57] : memref<64x128xf32, #tpu.memory_space<vmem>>, vector<8x128xf32>
    tpu.vector_store %arg12[%c32_56, %c0_57], %160 {strides = array<i32>} : memref<64x128xf32, #tpu.memory_space<vmem>>, vector<8x128xf32>,
    %c40 = arith.constant 40 : index
    %c0_58 = arith.constant 0 : index
    %162 = vector.load %arg13[%c40, %c0_58] : memref<64x512xf32, #tpu.memory_space<vmem>>, vector<8x512xf32>
    %cst_59 = arith.constant dense<0.000000e+00> : vector<8x512xf32>
    %163 = tpu.matmul %160, %12, %cst_59 {dimension_numbers = #tpu.dot_dimension_numbers<[1], [0], [0], [1], [0, 0, 1, 1], [], []>} : vector<8x128xf32>, vector<128x512xf32>, vector<8x512xf32> -> vector<8x512xf32>
    %164 = arith.addf %162, %163 : vector<8x512xf32>
    %165 = vector.extract_strided_slice %164 {offsets = [0, 0], sizes = [8, 128], strides = [1, 1]} : vector<8x512xf32> to vector<8x128xf32>
    %166 = arith.negf %165 : vector<8x128xf32>
    %167 = math.exp %166 : vector<8x128xf32>
    %cst_60 = arith.constant 1.000000e+00 : f32
    %168 = vector.broadcast %cst_60 : f32 to vector<8x128xf32>
    %169 = arith.addf %168, %167 : vector<8x128xf32>
    %170 = arith.divf %168, %169 : vector<8x128xf32>
    %171 = vector.extract_strided_slice %164 {offsets = [0, 128], sizes = [8, 128], strides = [1, 1]} : vector<8x512xf32> to vector<8x128xf32>
    %172 = arith.negf %171 : vector<8x128xf32>
    %173 = math.exp %172 : vector<8x128xf32>
    %cst_61 = arith.constant 1.000000e+00 : f32
    %174 = vector.broadcast %cst_61 : f32 to vector<8x128xf32>
    %175 = arith.addf %174, %173 : vector<8x128xf32>
    %176 = arith.divf %174, %175 : vector<8x128xf32>
    %177 = vector.extract_strided_slice %164 {offsets = [0, 256], sizes = [8, 128], strides = [1, 1]} : vector<8x512xf32> to vector<8x128xf32>
    %178 = math.tanh %177 : vector<8x128xf32>
    %179 = vector.extract_strided_slice %164 {offsets = [0, 384], sizes = [8, 128], strides = [1, 1]} : vector<8x512xf32> to vector<8x128xf32>
    %180 = arith.negf %179 : vector<8x128xf32>
    %181 = math.exp %180 : vector<8x128xf32>
    %cst_62 = arith.constant 1.000000e+00 : f32
    %182 = vector.broadcast %cst_62 : f32 to vector<8x128xf32>
    %183 = arith.addf %182, %181 : vector<8x128xf32>
    %184 = arith.divf %182, %183 : vector<8x128xf32>
    %185 = arith.mulf %176, %158 : vector<8x128xf32>
    %186 = arith.mulf %170, %178 : vector<8x128xf32>
    %187 = arith.addf %185, %186 : vector<8x128xf32>
    %188 = math.tanh %187 : vector<8x128xf32>
    %189 = arith.mulf %184, %188 : vector<8x128xf32>
    %c40_63 = arith.constant 40 : index
    %c0_64 = arith.constant 0 : index
    %190 = vector.load %arg12[%c40_63, %c0_64] : memref<64x128xf32, #tpu.memory_space<vmem>>, vector<8x128xf32>
    tpu.vector_store %arg12[%c40_63, %c0_64], %189 {strides = array<i32>} : memref<64x128xf32, #tpu.memory_space<vmem>>, vector<8x128xf32>,
    %c48 = arith.constant 48 : index
    %c0_65 = arith.constant 0 : index
    %191 = vector.load %arg13[%c48, %c0_65] : memref<64x512xf32, #tpu.memory_space<vmem>>, vector<8x512xf32>
    %cst_66 = arith.constant dense<0.000000e+00> : vector<8x512xf32>
    %192 = tpu.matmul %189, %12, %cst_66 {dimension_numbers = #tpu.dot_dimension_numbers<[1], [0], [0], [1], [0, 0, 1, 1], [], []>} : vector<8x128xf32>, vector<128x512xf32>, vector<8x512xf32> -> vector<8x512xf32>
    %193 = arith.addf %191, %192 : vector<8x512xf32>
    %194 = vector.extract_strided_slice %193 {offsets = [0, 0], sizes = [8, 128], strides = [1, 1]} : vector<8x512xf32> to vector<8x128xf32>
    %195 = arith.negf %194 : vector<8x128xf32>
    %196 = math.exp %195 : vector<8x128xf32>
    %cst_67 = arith.constant 1.000000e+00 : f32
    %197 = vector.broadcast %cst_67 : f32 to vector<8x128xf32>
    %198 = arith.addf %197, %196 : vector<8x128xf32>
    %199 = arith.divf %197, %198 : vector<8x128xf32>
    %200 = vector.extract_strided_slice %193 {offsets = [0, 128], sizes = [8, 128], strides = [1, 1]} : vector<8x512xf32> to vector<8x128xf32>
    %201 = arith.negf %200 : vector<8x128xf32>
    %202 = math.exp %201 : vector<8x128xf32>
    %cst_68 = arith.constant 1.000000e+00 : f32
    %203 = vector.broadcast %cst_68 : f32 to vector<8x128xf32>
    %204 = arith.addf %203, %202 : vector<8x128xf32>
    %205 = arith.divf %203, %204 : vector<8x128xf32>
    %206 = vector.extract_strided_slice %193 {offsets = [0, 256], sizes = [8, 128], strides = [1, 1]} : vector<8x512xf32> to vector<8x128xf32>
    %207 = math.tanh %206 : vector<8x128xf32>
    %208 = vector.extract_strided_slice %193 {offsets = [0, 384], sizes = [8, 128], strides = [1, 1]} : vector<8x512xf32> to vector<8x128xf32>
    %209 = arith.negf %208 : vector<8x128xf32>
    %210 = math.exp %209 : vector<8x128xf32>
    %cst_69 = arith.constant 1.000000e+00 : f32
    %211 = vector.broadcast %cst_69 : f32 to vector<8x128xf32>
    %212 = arith.addf %211, %210 : vector<8x128xf32>
    %213 = arith.divf %211, %212 : vector<8x128xf32>
    %214 = arith.mulf %205, %187 : vector<8x128xf32>
    %215 = arith.mulf %199, %207 : vector<8x128xf32>
    %216 = arith.addf %214, %215 : vector<8x128xf32>
    %217 = math.tanh %216 : vector<8x128xf32>
    %218 = arith.mulf %213, %217 : vector<8x128xf32>
    %c48_70 = arith.constant 48 : index
    %c0_71 = arith.constant 0 : index
    %219 = vector.load %arg12[%c48_70, %c0_71] : memref<64x128xf32, #tpu.memory_space<vmem>>, vector<8x128xf32>
    tpu.vector_store %arg12[%c48_70, %c0_71], %218 {strides = array<i32>} : memref<64x128xf32, #tpu.memory_space<vmem>>, vector<8x128xf32>,
    %c56 = arith.constant 56 : index
    %c0_72 = arith.constant 0 : index
    %220 = vector.load %arg13[%c56, %c0_72] : memref<64x512xf32, #tpu.memory_space<vmem>>, vector<8x512xf32>
    %cst_73 = arith.constant dense<0.000000e+00> : vector<8x512xf32>
    %221 = tpu.matmul %218, %12, %cst_73 {dimension_numbers = #tpu.dot_dimension_numbers<[1], [0], [0], [1], [0, 0, 1, 1], [], []>} : vector<8x128xf32>, vector<128x512xf32>, vector<8x512xf32> -> vector<8x512xf32>
    %222 = arith.addf %220, %221 : vector<8x512xf32>
    %223 = vector.extract_strided_slice %222 {offsets = [0, 0], sizes = [8, 128], strides = [1, 1]} : vector<8x512xf32> to vector<8x128xf32>
    %224 = arith.negf %223 : vector<8x128xf32>
    %225 = math.exp %224 : vector<8x128xf32>
    %cst_74 = arith.constant 1.000000e+00 : f32
    %226 = vector.broadcast %cst_74 : f32 to vector<8x128xf32>
    %227 = arith.addf %226, %225 : vector<8x128xf32>
    %228 = arith.divf %226, %227 : vector<8x128xf32>
    %229 = vector.extract_strided_slice %222 {offsets = [0, 128], sizes = [8, 128], strides = [1, 1]} : vector<8x512xf32> to vector<8x128xf32>
    %230 = arith.negf %229 : vector<8x128xf32>
    %231 = math.exp %230 : vector<8x128xf32>
    %cst_75 = arith.constant 1.000000e+00 : f32
    %232 = vector.broadcast %cst_75 : f32 to vector<8x128xf32>
    %233 = arith.addf %232, %231 : vector<8x128xf32>
    %234 = arith.divf %232, %233 : vector<8x128xf32>
    %235 = vector.extract_strided_slice %222 {offsets = [0, 256], sizes = [8, 128], strides = [1, 1]} : vector<8x512xf32> to vector<8x128xf32>
    %236 = math.tanh %235 : vector<8x128xf32>
    %237 = vector.extract_strided_slice %222 {offsets = [0, 384], sizes = [8, 128], strides = [1, 1]} : vector<8x512xf32> to vector<8x128xf32>
    %238 = arith.negf %237 : vector<8x128xf32>
    %239 = math.exp %238 : vector<8x128xf32>
    %cst_76 = arith.constant 1.000000e+00 : f32
    %240 = vector.broadcast %cst_76 : f32 to vector<8x128xf32>
    %241 = arith.addf %240, %239 : vector<8x128xf32>
    %242 = arith.divf %240, %241 : vector<8x128xf32>
    %243 = arith.mulf %234, %216 : vector<8x128xf32>
    %244 = arith.mulf %228, %236 : vector<8x128xf32>
    %245 = arith.addf %243, %244 : vector<8x128xf32>
    %246 = math.tanh %245 : vector<8x128xf32>
    %247 = arith.mulf %242, %246 : vector<8x128xf32>
    %c56_77 = arith.constant 56 : index
    %c0_78 = arith.constant 0 : index
    %248 = vector.load %arg12[%c56_77, %c0_78] : memref<64x128xf32, #tpu.memory_space<vmem>>, vector<8x128xf32>
    tpu.vector_store %arg12[%c56_77, %c0_78], %247 {strides = array<i32>} : memref<64x128xf32, #tpu.memory_space<vmem>>, vector<8x128xf32>,
    %c0_79 = arith.constant 0 : index
    %c0_80 = arith.constant 0 : index
    %c0_81 = arith.constant 0 : index
    %249 = vector.load %arg10[%c0_79, %c0_80, %c0_81] : memref<2x8x128xf32, #tpu.memory_space<vmem>>, vector<1x8x128xf32>
    %250 = vector.shape_cast %249 : vector<1x8x128xf32> to vector<8x128xf32>
    %251 = vector.shape_cast %247 : vector<8x128xf32> to vector<1x8x128xf32>
    tpu.vector_store %arg10[%c0_79, %c0_80, %c0_81], %251 {strides = array<i32>} : memref<2x8x128xf32, #tpu.memory_space<vmem>>, vector<1x8x128xf32>,
    %c0_82 = arith.constant 0 : index
    %c0_83 = arith.constant 0 : index
    %c0_84 = arith.constant 0 : index
    %252 = vector.load %arg11[%c0_82, %c0_83, %c0_84] : memref<2x8x128xf32, #tpu.memory_space<vmem>>, vector<1x8x128xf32>
    %253 = vector.shape_cast %252 : vector<1x8x128xf32> to vector<8x128xf32>
    %254 = vector.shape_cast %245 : vector<8x128xf32> to vector<1x8x128xf32>
    tpu.vector_store %arg11[%c0_82, %c0_83, %c0_84], %254 {strides = array<i32>} : memref<2x8x128xf32, #tpu.memory_space<vmem>>, vector<1x8x128xf32>,
    %c0_85 = arith.constant 0 : index
    %c0_86 = arith.constant 0 : index
    %255 = vector.load %arg12[%c0_85, %c0_86] : memref<64x128xf32, #tpu.memory_space<vmem>>, vector<64x128xf32>
    %c1 = arith.constant 1 : index
    %c0_87 = arith.constant 0 : index
    %c0_88 = arith.constant 0 : index
    %256 = vector.load %arg2[%c1, %c0_87, %c0_88] : memref<2x128x512xf32, #tpu.memory_space<vmem>>, vector<1x128x512xf32>
    %257 = vector.shape_cast %256 : vector<1x128x512xf32> to vector<128x512xf32>
    %cst_89 = arith.constant dense<0.000000e+00> : vector<64x512xf32>
    %258 = tpu.matmul %255, %257, %cst_89 {dimension_numbers = #tpu.dot_dimension_numbers<[1], [0], [0], [1], [0, 0, 1, 1], [], []>} : vector<64x128xf32>, vector<128x512xf32>, vector<64x512xf32> -> vector<64x512xf32>
    %c1_90 = arith.constant 1 : index
    %c0_91 = arith.constant 0 : index
    %c0_92 = arith.constant 0 : index
    %259 = vector.load %arg4[%c1_90, %c0_91, %c0_92] : memref<2x1x512xf32, #tpu.memory_space<vmem>>, vector<1x1x512xf32>
    %260 = vector.shape_cast %259 : vector<1x1x512xf32> to vector<1x512xf32>
    %261 = vector.broadcast %260 : vector<1x512xf32> to vector<64x512xf32>
    %262 = arith.addf %258, %261 : vector<64x512xf32>
    %c0_93 = arith.constant 0 : index
    %c0_94 = arith.constant 0 : index
    %263 = vector.load %arg13[%c0_93, %c0_94] : memref<64x512xf32, #tpu.memory_space<vmem>>, vector<64x512xf32>
    tpu.vector_store %arg13[%c0_93, %c0_94], %262 {strides = array<i32>} : memref<64x512xf32, #tpu.memory_space<vmem>>, vector<64x512xf32>,
    %c1_95 = arith.constant 1 : index
    %c0_96 = arith.constant 0 : index
    %c0_97 = arith.constant 0 : index
    %264 = vector.load %arg3[%c1_95, %c0_96, %c0_97] : memref<2x128x512xf32, #tpu.memory_space<vmem>>, vector<1x128x512xf32>
    %265 = vector.shape_cast %264 : vector<1x128x512xf32> to vector<128x512xf32>
    %c1_98 = arith.constant 1 : index
    %c0_99 = arith.constant 0 : index
    %c0_100 = arith.constant 0 : index
    %266 = vector.load %arg5[%c1_98, %c0_99, %c0_100] : memref<2x8x128xf32, #tpu.memory_space<vmem>>, vector<1x8x128xf32>
    %267 = vector.shape_cast %266 : vector<1x8x128xf32> to vector<8x128xf32>
    %c1_101 = arith.constant 1 : index
    %c0_102 = arith.constant 0 : index
    %c0_103 = arith.constant 0 : index
    %268 = vector.load %arg6[%c1_101, %c0_102, %c0_103] : memref<2x8x128xf32, #tpu.memory_space<vmem>>, vector<1x8x128xf32>
    %269 = vector.shape_cast %268 : vector<1x8x128xf32> to vector<8x128xf32>
    %c0_104 = arith.constant 0 : index
    %c0_105 = arith.constant 0 : index
    %270 = vector.load %arg13[%c0_104, %c0_105] : memref<64x512xf32, #tpu.memory_space<vmem>>, vector<8x512xf32>
    %cst_106 = arith.constant dense<0.000000e+00> : vector<8x512xf32>
    %271 = tpu.matmul %267, %265, %cst_106 {dimension_numbers = #tpu.dot_dimension_numbers<[1], [0], [0], [1], [0, 0, 1, 1], [], []>} : vector<8x128xf32>, vector<128x512xf32>, vector<8x512xf32> -> vector<8x512xf32>
    %272 = arith.addf %270, %271 : vector<8x512xf32>
    %273 = vector.extract_strided_slice %272 {offsets = [0, 0], sizes = [8, 128], strides = [1, 1]} : vector<8x512xf32> to vector<8x128xf32>
    %274 = arith.negf %273 : vector<8x128xf32>
    %275 = math.exp %274 : vector<8x128xf32>
    %cst_107 = arith.constant 1.000000e+00 : f32
    %276 = vector.broadcast %cst_107 : f32 to vector<8x128xf32>
    %277 = arith.addf %276, %275 : vector<8x128xf32>
    %278 = arith.divf %276, %277 : vector<8x128xf32>
    %279 = vector.extract_strided_slice %272 {offsets = [0, 128], sizes = [8, 128], strides = [1, 1]} : vector<8x512xf32> to vector<8x128xf32>
    %280 = arith.negf %279 : vector<8x128xf32>
    %281 = math.exp %280 : vector<8x128xf32>
    %cst_108 = arith.constant 1.000000e+00 : f32
    %282 = vector.broadcast %cst_108 : f32 to vector<8x128xf32>
    %283 = arith.addf %282, %281 : vector<8x128xf32>
    %284 = arith.divf %282, %283 : vector<8x128xf32>
    %285 = vector.extract_strided_slice %272 {offsets = [0, 256], sizes = [8, 128], strides = [1, 1]} : vector<8x512xf32> to vector<8x128xf32>
    %286 = math.tanh %285 : vector<8x128xf32>
    %287 = vector.extract_strided_slice %272 {offsets = [0, 384], sizes = [8, 128], strides = [1, 1]} : vector<8x512xf32> to vector<8x128xf32>
    %288 = arith.negf %287 : vector<8x128xf32>
    %289 = math.exp %288 : vector<8x128xf32>
    %cst_109 = arith.constant 1.000000e+00 : f32
    %290 = vector.broadcast %cst_109 : f32 to vector<8x128xf32>
    %291 = arith.addf %290, %289 : vector<8x128xf32>
    %292 = arith.divf %290, %291 : vector<8x128xf32>
    %293 = arith.mulf %284, %269 : vector<8x128xf32>
    %294 = arith.mulf %278, %286 : vector<8x128xf32>
    %295 = arith.addf %293, %294 : vector<8x128xf32>
    %296 = math.tanh %295 : vector<8x128xf32>
    %297 = arith.mulf %292, %296 : vector<8x128xf32>
    %c0_110 = arith.constant 0 : index
    %c0_111 = arith.constant 0 : index
    %298 = vector.load %arg12[%c0_110, %c0_111] : memref<64x128xf32, #tpu.memory_space<vmem>>, vector<8x128xf32>
    tpu.vector_store %arg12[%c0_110, %c0_111], %297 {strides = array<i32>} : memref<64x128xf32, #tpu.memory_space<vmem>>, vector<8x128xf32>,
    %c8_112 = arith.constant 8 : index
    %c0_113 = arith.constant 0 : index
    %299 = vector.load %arg13[%c8_112, %c0_113] : memref<64x512xf32, #tpu.memory_space<vmem>>, vector<8x512xf32>
    %cst_114 = arith.constant dense<0.000000e+00> : vector<8x512xf32>
    %300 = tpu.matmul %297, %265, %cst_114 {dimension_numbers = #tpu.dot_dimension_numbers<[1], [0], [0], [1], [0, 0, 1, 1], [], []>} : vector<8x128xf32>, vector<128x512xf32>, vector<8x512xf32> -> vector<8x512xf32>
    %301 = arith.addf %299, %300 : vector<8x512xf32>
    %302 = vector.extract_strided_slice %301 {offsets = [0, 0], sizes = [8, 128], strides = [1, 1]} : vector<8x512xf32> to vector<8x128xf32>
    %303 = arith.negf %302 : vector<8x128xf32>
    %304 = math.exp %303 : vector<8x128xf32>
    %cst_115 = arith.constant 1.000000e+00 : f32
    %305 = vector.broadcast %cst_115 : f32 to vector<8x128xf32>
    %306 = arith.addf %305, %304 : vector<8x128xf32>
    %307 = arith.divf %305, %306 : vector<8x128xf32>
    %308 = vector.extract_strided_slice %301 {offsets = [0, 128], sizes = [8, 128], strides = [1, 1]} : vector<8x512xf32> to vector<8x128xf32>
    %309 = arith.negf %308 : vector<8x128xf32>
    %310 = math.exp %309 : vector<8x128xf32>
    %cst_116 = arith.constant 1.000000e+00 : f32
    %311 = vector.broadcast %cst_116 : f32 to vector<8x128xf32>
    %312 = arith.addf %311, %310 : vector<8x128xf32>
    %313 = arith.divf %311, %312 : vector<8x128xf32>
    %314 = vector.extract_strided_slice %301 {offsets = [0, 256], sizes = [8, 128], strides = [1, 1]} : vector<8x512xf32> to vector<8x128xf32>
    %315 = math.tanh %314 : vector<8x128xf32>
    %316 = vector.extract_strided_slice %301 {offsets = [0, 384], sizes = [8, 128], strides = [1, 1]} : vector<8x512xf32> to vector<8x128xf32>
    %317 = arith.negf %316 : vector<8x128xf32>
    %318 = math.exp %317 : vector<8x128xf32>
    %cst_117 = arith.constant 1.000000e+00 : f32
    %319 = vector.broadcast %cst_117 : f32 to vector<8x128xf32>
    %320 = arith.addf %319, %318 : vector<8x128xf32>
    %321 = arith.divf %319, %320 : vector<8x128xf32>
    %322 = arith.mulf %313, %295 : vector<8x128xf32>
    %323 = arith.mulf %307, %315 : vector<8x128xf32>
    %324 = arith.addf %322, %323 : vector<8x128xf32>
    %325 = math.tanh %324 : vector<8x128xf32>
    %326 = arith.mulf %321, %325 : vector<8x128xf32>
    %c8_118 = arith.constant 8 : index
    %c0_119 = arith.constant 0 : index
    %327 = vector.load %arg12[%c8_118, %c0_119] : memref<64x128xf32, #tpu.memory_space<vmem>>, vector<8x128xf32>
    tpu.vector_store %arg12[%c8_118, %c0_119], %326 {strides = array<i32>} : memref<64x128xf32, #tpu.memory_space<vmem>>, vector<8x128xf32>,
    %c16_120 = arith.constant 16 : index
    %c0_121 = arith.constant 0 : index
    %328 = vector.load %arg13[%c16_120, %c0_121] : memref<64x512xf32, #tpu.memory_space<vmem>>, vector<8x512xf32>
    %cst_122 = arith.constant dense<0.000000e+00> : vector<8x512xf32>
    %329 = tpu.matmul %326, %265, %cst_122 {dimension_numbers = #tpu.dot_dimension_numbers<[1], [0], [0], [1], [0, 0, 1, 1], [], []>} : vector<8x128xf32>, vector<128x512xf32>, vector<8x512xf32> -> vector<8x512xf32>
    %330 = arith.addf %328, %329 : vector<8x512xf32>
    %331 = vector.extract_strided_slice %330 {offsets = [0, 0], sizes = [8, 128], strides = [1, 1]} : vector<8x512xf32> to vector<8x128xf32>
    %332 = arith.negf %331 : vector<8x128xf32>
    %333 = math.exp %332 : vector<8x128xf32>
    %cst_123 = arith.constant 1.000000e+00 : f32
    %334 = vector.broadcast %cst_123 : f32 to vector<8x128xf32>
    %335 = arith.addf %334, %333 : vector<8x128xf32>
    %336 = arith.divf %334, %335 : vector<8x128xf32>
    %337 = vector.extract_strided_slice %330 {offsets = [0, 128], sizes = [8, 128], strides = [1, 1]} : vector<8x512xf32> to vector<8x128xf32>
    %338 = arith.negf %337 : vector<8x128xf32>
    %339 = math.exp %338 : vector<8x128xf32>
    %cst_124 = arith.constant 1.000000e+00 : f32
    %340 = vector.broadcast %cst_124 : f32 to vector<8x128xf32>
    %341 = arith.addf %340, %339 : vector<8x128xf32>
    %342 = arith.divf %340, %341 : vector<8x128xf32>
    %343 = vector.extract_strided_slice %330 {offsets = [0, 256], sizes = [8, 128], strides = [1, 1]} : vector<8x512xf32> to vector<8x128xf32>
    %344 = math.tanh %343 : vector<8x128xf32>
    %345 = vector.extract_strided_slice %330 {offsets = [0, 384], sizes = [8, 128], strides = [1, 1]} : vector<8x512xf32> to vector<8x128xf32>
    %346 = arith.negf %345 : vector<8x128xf32>
    %347 = math.exp %346 : vector<8x128xf32>
    %cst_125 = arith.constant 1.000000e+00 : f32
    %348 = vector.broadcast %cst_125 : f32 to vector<8x128xf32>
    %349 = arith.addf %348, %347 : vector<8x128xf32>
    %350 = arith.divf %348, %349 : vector<8x128xf32>
    %351 = arith.mulf %342, %324 : vector<8x128xf32>
    %352 = arith.mulf %336, %344 : vector<8x128xf32>
    %353 = arith.addf %351, %352 : vector<8x128xf32>
    %354 = math.tanh %353 : vector<8x128xf32>
    %355 = arith.mulf %350, %354 : vector<8x128xf32>
    %c16_126 = arith.constant 16 : index
    %c0_127 = arith.constant 0 : index
    %356 = vector.load %arg12[%c16_126, %c0_127] : memref<64x128xf32, #tpu.memory_space<vmem>>, vector<8x128xf32>
    tpu.vector_store %arg12[%c16_126, %c0_127], %355 {strides = array<i32>} : memref<64x128xf32, #tpu.memory_space<vmem>>, vector<8x128xf32>,
    %c24_128 = arith.constant 24 : index
    %c0_129 = arith.constant 0 : index
    %357 = vector.load %arg13[%c24_128, %c0_129] : memref<64x512xf32, #tpu.memory_space<vmem>>, vector<8x512xf32>
    %cst_130 = arith.constant dense<0.000000e+00> : vector<8x512xf32>
    %358 = tpu.matmul %355, %265, %cst_130 {dimension_numbers = #tpu.dot_dimension_numbers<[1], [0], [0], [1], [0, 0, 1, 1], [], []>} : vector<8x128xf32>, vector<128x512xf32>, vector<8x512xf32> -> vector<8x512xf32>
    %359 = arith.addf %357, %358 : vector<8x512xf32>
    %360 = vector.extract_strided_slice %359 {offsets = [0, 0], sizes = [8, 128], strides = [1, 1]} : vector<8x512xf32> to vector<8x128xf32>
    %361 = arith.negf %360 : vector<8x128xf32>
    %362 = math.exp %361 : vector<8x128xf32>
    %cst_131 = arith.constant 1.000000e+00 : f32
    %363 = vector.broadcast %cst_131 : f32 to vector<8x128xf32>
    %364 = arith.addf %363, %362 : vector<8x128xf32>
    %365 = arith.divf %363, %364 : vector<8x128xf32>
    %366 = vector.extract_strided_slice %359 {offsets = [0, 128], sizes = [8, 128], strides = [1, 1]} : vector<8x512xf32> to vector<8x128xf32>
    %367 = arith.negf %366 : vector<8x128xf32>
    %368 = math.exp %367 : vector<8x128xf32>
    %cst_132 = arith.constant 1.000000e+00 : f32
    %369 = vector.broadcast %cst_132 : f32 to vector<8x128xf32>
    %370 = arith.addf %369, %368 : vector<8x128xf32>
    %371 = arith.divf %369, %370 : vector<8x128xf32>
    %372 = vector.extract_strided_slice %359 {offsets = [0, 256], sizes = [8, 128], strides = [1, 1]} : vector<8x512xf32> to vector<8x128xf32>
    %373 = math.tanh %372 : vector<8x128xf32>
    %374 = vector.extract_strided_slice %359 {offsets = [0, 384], sizes = [8, 128], strides = [1, 1]} : vector<8x512xf32> to vector<8x128xf32>
    %375 = arith.negf %374 : vector<8x128xf32>
    %376 = math.exp %375 : vector<8x128xf32>
    %cst_133 = arith.constant 1.000000e+00 : f32
    %377 = vector.broadcast %cst_133 : f32 to vector<8x128xf32>
    %378 = arith.addf %377, %376 : vector<8x128xf32>
    %379 = arith.divf %377, %378 : vector<8x128xf32>
    %380 = arith.mulf %371, %353 : vector<8x128xf32>
    %381 = arith.mulf %365, %373 : vector<8x128xf32>
    %382 = arith.addf %380, %381 : vector<8x128xf32>
    %383 = math.tanh %382 : vector<8x128xf32>
    %384 = arith.mulf %379, %383 : vector<8x128xf32>
    %c24_134 = arith.constant 24 : index
    %c0_135 = arith.constant 0 : index
    %385 = vector.load %arg12[%c24_134, %c0_135] : memref<64x128xf32, #tpu.memory_space<vmem>>, vector<8x128xf32>
    tpu.vector_store %arg12[%c24_134, %c0_135], %384 {strides = array<i32>} : memref<64x128xf32, #tpu.memory_space<vmem>>, vector<8x128xf32>,
    %c32_136 = arith.constant 32 : index
    %c0_137 = arith.constant 0 : index
    %386 = vector.load %arg13[%c32_136, %c0_137] : memref<64x512xf32, #tpu.memory_space<vmem>>, vector<8x512xf32>
    %cst_138 = arith.constant dense<0.000000e+00> : vector<8x512xf32>
    %387 = tpu.matmul %384, %265, %cst_138 {dimension_numbers = #tpu.dot_dimension_numbers<[1], [0], [0], [1], [0, 0, 1, 1], [], []>} : vector<8x128xf32>, vector<128x512xf32>, vector<8x512xf32> -> vector<8x512xf32>
    %388 = arith.addf %386, %387 : vector<8x512xf32>
    %389 = vector.extract_strided_slice %388 {offsets = [0, 0], sizes = [8, 128], strides = [1, 1]} : vector<8x512xf32> to vector<8x128xf32>
    %390 = arith.negf %389 : vector<8x128xf32>
    %391 = math.exp %390 : vector<8x128xf32>
    %cst_139 = arith.constant 1.000000e+00 : f32
    %392 = vector.broadcast %cst_139 : f32 to vector<8x128xf32>
    %393 = arith.addf %392, %391 : vector<8x128xf32>
    %394 = arith.divf %392, %393 : vector<8x128xf32>
    %395 = vector.extract_strided_slice %388 {offsets = [0, 128], sizes = [8, 128], strides = [1, 1]} : vector<8x512xf32> to vector<8x128xf32>
    %396 = arith.negf %395 : vector<8x128xf32>
    %397 = math.exp %396 : vector<8x128xf32>
    %cst_140 = arith.constant 1.000000e+00 : f32
    %398 = vector.broadcast %cst_140 : f32 to vector<8x128xf32>
    %399 = arith.addf %398, %397 : vector<8x128xf32>
    %400 = arith.divf %398, %399 : vector<8x128xf32>
    %401 = vector.extract_strided_slice %388 {offsets = [0, 256], sizes = [8, 128], strides = [1, 1]} : vector<8x512xf32> to vector<8x128xf32>
    %402 = math.tanh %401 : vector<8x128xf32>
    %403 = vector.extract_strided_slice %388 {offsets = [0, 384], sizes = [8, 128], strides = [1, 1]} : vector<8x512xf32> to vector<8x128xf32>
    %404 = arith.negf %403 : vector<8x128xf32>
    %405 = math.exp %404 : vector<8x128xf32>
    %cst_141 = arith.constant 1.000000e+00 : f32
    %406 = vector.broadcast %cst_141 : f32 to vector<8x128xf32>
    %407 = arith.addf %406, %405 : vector<8x128xf32>
    %408 = arith.divf %406, %407 : vector<8x128xf32>
    %409 = arith.mulf %400, %382 : vector<8x128xf32>
    %410 = arith.mulf %394, %402 : vector<8x128xf32>
    %411 = arith.addf %409, %410 : vector<8x128xf32>
    %412 = math.tanh %411 : vector<8x128xf32>
    %413 = arith.mulf %408, %412 : vector<8x128xf32>
    %c32_142 = arith.constant 32 : index
    %c0_143 = arith.constant 0 : index
    %414 = vector.load %arg12[%c32_142, %c0_143] : memref<64x128xf32, #tpu.memory_space<vmem>>, vector<8x128xf32>
    tpu.vector_store %arg12[%c32_142, %c0_143], %413 {strides = array<i32>} : memref<64x128xf32, #tpu.memory_space<vmem>>, vector<8x128xf32>,
    %c40_144 = arith.constant 40 : index
    %c0_145 = arith.constant 0 : index
    %415 = vector.load %arg13[%c40_144, %c0_145] : memref<64x512xf32, #tpu.memory_space<vmem>>, vector<8x512xf32>
    %cst_146 = arith.constant dense<0.000000e+00> : vector<8x512xf32>
    %416 = tpu.matmul %413, %265, %cst_146 {dimension_numbers = #tpu.dot_dimension_numbers<[1], [0], [0], [1], [0, 0, 1, 1], [], []>} : vector<8x128xf32>, vector<128x512xf32>, vector<8x512xf32> -> vector<8x512xf32>
    %417 = arith.addf %415, %416 : vector<8x512xf32>
    %418 = vector.extract_strided_slice %417 {offsets = [0, 0], sizes = [8, 128], strides = [1, 1]} : vector<8x512xf32> to vector<8x128xf32>
    %419 = arith.negf %418 : vector<8x128xf32>
    %420 = math.exp %419 : vector<8x128xf32>
    %cst_147 = arith.constant 1.000000e+00 : f32
    %421 = vector.broadcast %cst_147 : f32 to vector<8x128xf32>
    %422 = arith.addf %421, %420 : vector<8x128xf32>
    %423 = arith.divf %421, %422 : vector<8x128xf32>
    %424 = vector.extract_strided_slice %417 {offsets = [0, 128], sizes = [8, 128], strides = [1, 1]} : vector<8x512xf32> to vector<8x128xf32>
    %425 = arith.negf %424 : vector<8x128xf32>
    %426 = math.exp %425 : vector<8x128xf32>
    %cst_148 = arith.constant 1.000000e+00 : f32
    %427 = vector.broadcast %cst_148 : f32 to vector<8x128xf32>
    %428 = arith.addf %427, %426 : vector<8x128xf32>
    %429 = arith.divf %427, %428 : vector<8x128xf32>
    %430 = vector.extract_strided_slice %417 {offsets = [0, 256], sizes = [8, 128], strides = [1, 1]} : vector<8x512xf32> to vector<8x128xf32>
    %431 = math.tanh %430 : vector<8x128xf32>
    %432 = vector.extract_strided_slice %417 {offsets = [0, 384], sizes = [8, 128], strides = [1, 1]} : vector<8x512xf32> to vector<8x128xf32>
    %433 = arith.negf %432 : vector<8x128xf32>
    %434 = math.exp %433 : vector<8x128xf32>
    %cst_149 = arith.constant 1.000000e+00 : f32
    %435 = vector.broadcast %cst_149 : f32 to vector<8x128xf32>
    %436 = arith.addf %435, %434 : vector<8x128xf32>
    %437 = arith.divf %435, %436 : vector<8x128xf32>
    %438 = arith.mulf %429, %411 : vector<8x128xf32>
    %439 = arith.mulf %423, %431 : vector<8x128xf32>
    %440 = arith.addf %438, %439 : vector<8x128xf32>
    %441 = math.tanh %440 : vector<8x128xf32>
    %442 = arith.mulf %437, %441 : vector<8x128xf32>
    %c40_150 = arith.constant 40 : index
    %c0_151 = arith.constant 0 : index
    %443 = vector.load %arg12[%c40_150, %c0_151] : memref<64x128xf32, #tpu.memory_space<vmem>>, vector<8x128xf32>
    tpu.vector_store %arg12[%c40_150, %c0_151], %442 {strides = array<i32>} : memref<64x128xf32, #tpu.memory_space<vmem>>, vector<8x128xf32>,
    %c48_152 = arith.constant 48 : index
    %c0_153 = arith.constant 0 : index
    %444 = vector.load %arg13[%c48_152, %c0_153] : memref<64x512xf32, #tpu.memory_space<vmem>>, vector<8x512xf32>
    %cst_154 = arith.constant dense<0.000000e+00> : vector<8x512xf32>
    %445 = tpu.matmul %442, %265, %cst_154 {dimension_numbers = #tpu.dot_dimension_numbers<[1], [0], [0], [1], [0, 0, 1, 1], [], []>} : vector<8x128xf32>, vector<128x512xf32>, vector<8x512xf32> -> vector<8x512xf32>
    %446 = arith.addf %444, %445 : vector<8x512xf32>
    %447 = vector.extract_strided_slice %446 {offsets = [0, 0], sizes = [8, 128], strides = [1, 1]} : vector<8x512xf32> to vector<8x128xf32>
    %448 = arith.negf %447 : vector<8x128xf32>
    %449 = math.exp %448 : vector<8x128xf32>
    %cst_155 = arith.constant 1.000000e+00 : f32
    %450 = vector.broadcast %cst_155 : f32 to vector<8x128xf32>
    %451 = arith.addf %450, %449 : vector<8x128xf32>
    %452 = arith.divf %450, %451 : vector<8x128xf32>
    %453 = vector.extract_strided_slice %446 {offsets = [0, 128], sizes = [8, 128], strides = [1, 1]} : vector<8x512xf32> to vector<8x128xf32>
    %454 = arith.negf %453 : vector<8x128xf32>
    %455 = math.exp %454 : vector<8x128xf32>
    %cst_156 = arith.constant 1.000000e+00 : f32
    %456 = vector.broadcast %cst_156 : f32 to vector<8x128xf32>
    %457 = arith.addf %456, %455 : vector<8x128xf32>
    %458 = arith.divf %456, %457 : vector<8x128xf32>
    %459 = vector.extract_strided_slice %446 {offsets = [0, 256], sizes = [8, 128], strides = [1, 1]} : vector<8x512xf32> to vector<8x128xf32>
    %460 = math.tanh %459 : vector<8x128xf32>
    %461 = vector.extract_strided_slice %446 {offsets = [0, 384], sizes = [8, 128], strides = [1, 1]} : vector<8x512xf32> to vector<8x128xf32>
    %462 = arith.negf %461 : vector<8x128xf32>
    %463 = math.exp %462 : vector<8x128xf32>
    %cst_157 = arith.constant 1.000000e+00 : f32
    %464 = vector.broadcast %cst_157 : f32 to vector<8x128xf32>
    %465 = arith.addf %464, %463 : vector<8x128xf32>
    %466 = arith.divf %464, %465 : vector<8x128xf32>
    %467 = arith.mulf %458, %440 : vector<8x128xf32>
    %468 = arith.mulf %452, %460 : vector<8x128xf32>
    %469 = arith.addf %467, %468 : vector<8x128xf32>
    %470 = math.tanh %469 : vector<8x128xf32>
    %471 = arith.mulf %466, %470 : vector<8x128xf32>
    %c48_158 = arith.constant 48 : index
    %c0_159 = arith.constant 0 : index
    %472 = vector.load %arg12[%c48_158, %c0_159] : memref<64x128xf32, #tpu.memory_space<vmem>>, vector<8x128xf32>
    tpu.vector_store %arg12[%c48_158, %c0_159], %471 {strides = array<i32>} : memref<64x128xf32, #tpu.memory_space<vmem>>, vector<8x128xf32>,
    %c56_160 = arith.constant 56 : index
    %c0_161 = arith.constant 0 : index
    %473 = vector.load %arg13[%c56_160, %c0_161] : memref<64x512xf32, #tpu.memory_space<vmem>>, vector<8x512xf32>
    %cst_162 = arith.constant dense<0.000000e+00> : vector<8x512xf32>
    %474 = tpu.matmul %471, %265, %cst_162 {dimension_numbers = #tpu.dot_dimension_numbers<[1], [0], [0], [1], [0, 0, 1, 1], [], []>} : vector<8x128xf32>, vector<128x512xf32>, vector<8x512xf32> -> vector<8x512xf32>
    %475 = arith.addf %473, %474 : vector<8x512xf32>
    %476 = vector.extract_strided_slice %475 {offsets = [0, 0], sizes = [8, 128], strides = [1, 1]} : vector<8x512xf32> to vector<8x128xf32>
    %477 = arith.negf %476 : vector<8x128xf32>
    %478 = math.exp %477 : vector<8x128xf32>
    %cst_163 = arith.constant 1.000000e+00 : f32
    %479 = vector.broadcast %cst_163 : f32 to vector<8x128xf32>
    %480 = arith.addf %479, %478 : vector<8x128xf32>
    %481 = arith.divf %479, %480 : vector<8x128xf32>
    %482 = vector.extract_strided_slice %475 {offsets = [0, 128], sizes = [8, 128], strides = [1, 1]} : vector<8x512xf32> to vector<8x128xf32>
    %483 = arith.negf %482 : vector<8x128xf32>
    %484 = math.exp %483 : vector<8x128xf32>
    %cst_164 = arith.constant 1.000000e+00 : f32
    %485 = vector.broadcast %cst_164 : f32 to vector<8x128xf32>
    %486 = arith.addf %485, %484 : vector<8x128xf32>
    %487 = arith.divf %485, %486 : vector<8x128xf32>
    %488 = vector.extract_strided_slice %475 {offsets = [0, 256], sizes = [8, 128], strides = [1, 1]} : vector<8x512xf32> to vector<8x128xf32>
    %489 = math.tanh %488 : vector<8x128xf32>
    %490 = vector.extract_strided_slice %475 {offsets = [0, 384], sizes = [8, 128], strides = [1, 1]} : vector<8x512xf32> to vector<8x128xf32>
    %491 = arith.negf %490 : vector<8x128xf32>
    %492 = math.exp %491 : vector<8x128xf32>
    %cst_165 = arith.constant 1.000000e+00 : f32
    %493 = vector.broadcast %cst_165 : f32 to vector<8x128xf32>
    %494 = arith.addf %493, %492 : vector<8x128xf32>
    %495 = arith.divf %493, %494 : vector<8x128xf32>
    %496 = arith.mulf %487, %469 : vector<8x128xf32>
    %497 = arith.mulf %481, %489 : vector<8x128xf32>
    %498 = arith.addf %496, %497 : vector<8x128xf32>
    %499 = math.tanh %498 : vector<8x128xf32>
    %500 = arith.mulf %495, %499 : vector<8x128xf32>
    %c56_166 = arith.constant 56 : index
    %c0_167 = arith.constant 0 : index
    %501 = vector.load %arg12[%c56_166, %c0_167] : memref<64x128xf32, #tpu.memory_space<vmem>>, vector<8x128xf32>
    tpu.vector_store %arg12[%c56_166, %c0_167], %500 {strides = array<i32>} : memref<64x128xf32, #tpu.memory_space<vmem>>, vector<8x128xf32>,
    %c1_168 = arith.constant 1 : index
    %c0_169 = arith.constant 0 : index
    %c0_170 = arith.constant 0 : index
    %502 = vector.load %arg10[%c1_168, %c0_169, %c0_170] : memref<2x8x128xf32, #tpu.memory_space<vmem>>, vector<1x8x128xf32>
    %503 = vector.shape_cast %502 : vector<1x8x128xf32> to vector<8x128xf32>
    %504 = vector.shape_cast %500 : vector<8x128xf32> to vector<1x8x128xf32>
    tpu.vector_store %arg10[%c1_168, %c0_169, %c0_170], %504 {strides = array<i32>} : memref<2x8x128xf32, #tpu.memory_space<vmem>>, vector<1x8x128xf32>,
    %c1_171 = arith.constant 1 : index
    %c0_172 = arith.constant 0 : index
    %c0_173 = arith.constant 0 : index
    %505 = vector.load %arg11[%c1_171, %c0_172, %c0_173] : memref<2x8x128xf32, #tpu.memory_space<vmem>>, vector<1x8x128xf32>
    %506 = vector.shape_cast %505 : vector<1x8x128xf32> to vector<8x128xf32>
    %507 = vector.shape_cast %498 : vector<8x128xf32> to vector<1x8x128xf32>
    tpu.vector_store %arg11[%c1_171, %c0_172, %c0_173], %507 {strides = array<i32>} : memref<2x8x128xf32, #tpu.memory_space<vmem>>, vector<1x8x128xf32>,
    %c0_174 = arith.constant 0 : index
    %c0_175 = arith.constant 0 : index
    %508 = vector.load %arg12[%c0_174, %c0_175] : memref<64x128xf32, #tpu.memory_space<vmem>>, vector<64x128xf32>
    %c0_176 = arith.constant 0 : index
    %c0_177 = arith.constant 0 : index
    %509 = vector.load %arg7[%c0_176, %c0_177] : memref<128x128xf32, #tpu.memory_space<vmem>>, vector<128x128xf32>
    %cst_178 = arith.constant dense<0.000000e+00> : vector<64x128xf32>
    %510 = tpu.matmul %508, %509, %cst_178 {dimension_numbers = #tpu.dot_dimension_numbers<[1], [0], [0], [1], [0, 0, 1, 1], [], []>} : vector<64x128xf32>, vector<128x128xf32>, vector<64x128xf32> -> vector<64x128xf32>
    %c0_179 = arith.constant 0 : index
    %c0_180 = arith.constant 0 : index
    %511 = vector.load %arg8[%c0_179, %c0_180] : memref<1x128xf32, #tpu.memory_space<vmem>>, vector<1x128xf32>
    %512 = vector.broadcast %511 : vector<1x128xf32> to vector<64x128xf32>
    %513 = arith.addf %510, %512 : vector<64x128xf32>
    %514 = tpu.iota {dimensions = array<i32: 1>} : vector<64x128xi32>
    %c50_i32 = arith.constant 50 : i32
    %515 = vector.broadcast %c50_i32 : i32 to vector<64x128xi32>
    %516 = arith.cmpi slt, %514, %515 : vector<64x128xi32>
    %cst_181 = arith.constant -1.000000e+30 : f32
    %517 = vector.broadcast %cst_181 : f32 to vector<64x128xf32>
    %518 = arith.select %516, %513, %517 : vector<64x128xi1>, vector<64x128xf32>
    %cst_182 = arith.constant dense<0xFF800000> : vector<64xf32>
    %519 = vector.multi_reduction <maximumf>, %518, %cst_182 [1] : vector<64x128xf32> to vector<64xf32>
    %520 = vector.shape_cast %519 : vector<64xf32> to vector<64x1xf32>
    %521 = vector.broadcast %520 : vector<64x1xf32> to vector<64x128xf32>
    %522 = arith.subf %518, %521 : vector<64x128xf32>
    %523 = math.exp %522 : vector<64x128xf32>
    %cst_183 = arith.constant dense<0.000000e+00> : vector<64xf32>
    %524 = vector.multi_reduction <add>, %523, %cst_183 [1] : vector<64x128xf32> to vector<64xf32>
    %525 = vector.shape_cast %524 : vector<64xf32> to vector<64x1xf32>
    %526 = math.log %525 : vector<64x1xf32>
    %527 = vector.broadcast %526 : vector<64x1xf32> to vector<64x128xf32>
    %528 = arith.subf %522, %527 : vector<64x128xf32>
    %c0_184 = arith.constant 0 : index
    %c0_185 = arith.constant 0 : index
    %529 = vector.load %arg9[%c0_184, %c0_185] : memref<64x128xf32, #tpu.memory_space<vmem>>, vector<64x128xf32>
    tpu.vector_store %arg9[%c0_184, %c0_185], %528 {strides = array<i32>} : memref<64x128xf32, #tpu.memory_space<vmem>>, vector<64x128xf32>,
    return
  }
  func.func @transform_0(%arg0: i32) -> (i32, i32) {
    %c0_i32 = arith.constant 0 : i32
    %c0_i32_0 = arith.constant 0 : i32
    %c0_i32_1 = arith.constant 0 : i32
    return %c0_i32, %c0_i32_0 : i32, i32
  }
  func.func @transform_1(%arg0: i32) -> (i32, i32, i32) {
    %c0_i32 = arith.constant 0 : i32
    %c0_i32_0 = arith.constant 0 : i32
    %c0_i32_1 = arith.constant 0 : i32
    %c0_i32_2 = arith.constant 0 : i32
    return %c0_i32, %c0_i32_0, %c0_i32_1 : i32, i32, i32
  }
  func.func @transform_2(%arg0: i32) -> (i32, i32, i32) {
    %c0_i32 = arith.constant 0 : i32
    %c0_i32_0 = arith.constant 0 : i32
    %c0_i32_1 = arith.constant 0 : i32
    %c0_i32_2 = arith.constant 0 : i32
    return %c0_i32, %c0_i32_0, %c0_i32_1 : i32, i32, i32
  }
  func.func @transform_3(%arg0: i32) -> (i32, i32, i32) {
    %c0_i32 = arith.constant 0 : i32
    %c0_i32_0 = arith.constant 0 : i32
    %c0_i32_1 = arith.constant 0 : i32
    %c0_i32_2 = arith.constant 0 : i32
    return %c0_i32, %c0_i32_0, %c0_i32_1 : i32, i32, i32
  }
  func.func @transform_4(%arg0: i32) -> (i32, i32, i32) {
    %c0_i32 = arith.constant 0 : i32
    %c0_i32_0 = arith.constant 0 : i32
    %c0_i32_1 = arith.constant 0 : i32
    %c0_i32_2 = arith.constant 0 : i32
    return %c0_i32, %c0_i32_0, %c0_i32_1 : i32, i32, i32
  }
  func.func @transform_5(%arg0: i32) -> (i32, i32, i32) {
    %c0_i32 = arith.constant 0 : i32
    %c0_i32_0 = arith.constant 0 : i32
    %c0_i32_1 = arith.constant 0 : i32
    %c0_i32_2 = arith.constant 0 : i32
    return %c0_i32, %c0_i32_0, %c0_i32_1 : i32, i32, i32
  }
  func.func @transform_6(%arg0: i32) -> (i32, i32) {
    %c0_i32 = arith.constant 0 : i32
    %c0_i32_0 = arith.constant 0 : i32
    %c0_i32_1 = arith.constant 0 : i32
    return %c0_i32, %c0_i32_0 : i32, i32
  }
  func.func @transform_7(%arg0: i32) -> (i32, i32) {
    %c0_i32 = arith.constant 0 : i32
    %c0_i32_0 = arith.constant 0 : i32
    %c0_i32_1 = arith.constant 0 : i32
    return %c0_i32, %c0_i32_0 : i32, i32
  }
  func.func @transform_8(%arg0: i32) -> (i32, i32) {
    %c0_i32 = arith.constant 0 : i32
    %c0_i32_0 = arith.constant 0 : i32
    %c0_i32_1 = arith.constant 0 : i32
    return %c0_i32, %c0_i32_0 : i32, i32
  }
  func.func @transform_9(%arg0: i32) -> (i32, i32, i32) {
    %c0_i32 = arith.constant 0 : i32
    %c0_i32_0 = arith.constant 0 : i32
    %c0_i32_1 = arith.constant 0 : i32
    %c0_i32_2 = arith.constant 0 : i32
    return %c0_i32, %c0_i32_0, %c0_i32_1 : i32, i32, i32
  }
  func.func @transform_10(%arg0: i32) -> (i32, i32, i32) {
    %c0_i32 = arith.constant 0 : i32
    %c0_i32_0 = arith.constant 0 : i32
    %c0_i32_1 = arith.constant 0 : i32
    %c0_i32_2 = arith.constant 0 : i32
    return %c0_i32, %c0_i32_0, %c0_i32_1 : i32, i32, i32
  }
}

</mosaic_0001>

<bundles_post_ra>
// kernel: lstm_lm_forward.1
= control target key start
LH: loop header
LB: loop body
LE: loop exit
PB: predicated region body
PF: predicated region fallthrough
CT: control target
= control target key end

     0   :  { %v8007_v3 = vmov 0.0   ;;  %s7995_s1 = inlined_call_operand.vmem [shape: f32[2,128,512], index: 1, kind: input, shape index: {}]   ;;  %s7996_s2 = inlined_call_operand.vmem [shape: f32[2,128,512], index: 2, kind: input, shape index: {}]   ;;  %s7997_s0 = inlined_call_operand.vmem [shape: f32[64,128], index: 0, kind: input, shape index: {}]   ;;  %s7998_s4 = inlined_call_operand.vmem [shape: f32[2,8,128], index: 4, kind: input, shape index: {}, may-alias: {4,5}]   ;;  %s7999_s3 = inlined_call_operand.vmem [shape: f32[2,1,512], index: 3, kind: input, shape index: {}]   ;;  %s8000_s5 = inlined_call_operand.vmem [shape: f32[2,8,128], index: 5, kind: input, shape index: {}, may-alias: {4,5}]   ;;  %s8001_s10 = inlined_call_operand.vmem [shape: f32[2,8,128], index: 10, kind: output, shape index: {2}]   ;;  %s8002_s9 = inlined_call_operand.vmem [shape: f32[2,8,128], index: 9, kind: output, shape index: {1}]   ;;  %s8003_s6 = inlined_call_operand.vmem [shape: f32[128,128], index: 6, kind: input, shape index: {}]   ;;  %s8004_s7 = inlined_call_operand.vmem [shape: f32[1,128], index: 7, kind: input, shape index: {}]   ;;  %s8005_s8 = inlined_call_operand.vmem [shape: f32[64,128], index: 8, kind: output, shape index: {0}]  }
   0x1   :  { %v117_v0 = vld [vmem:[%s7995_s1 + $0x1e8] sm:$0xff]  ;;  %v116_v1 = vld [vmem:[%s7995_s1 + $0x1e0] sm:$0xff]  ;;  %206 = vmatprep.mubr.f32.mxu1 %v8007_v3  ;;  %534 = vmatprep.mubr.f32.mxu0 %v8007_v3 }
   0x2   :  { %v113_v2 = vld [vmem:[%s7995_s1 + $0x1c8] sm:$0xff]  ;;  %142 = vmatprep.subr.mxu1 %v117_v0  ;;  %v112_v5 = vld [vmem:[%s7995_s1 + $0x1c0] sm:$0xff] }
   0x3   :  { %v4679_v4 = vld [vmem:[%s7996_s2 + $0x1e8] sm:$0xff]  ;;  %v4687_v6 = vld [vmem:[%s7996_s2 + $0x1e0] sm:$0xff]  ;;  %143 = vmatpush1.msra.mxu1 %v116_v1  ;;  %v119_v1 = vld [vmem:[%s7995_s1 + $0x1f8] sm:$0xff] }
   0x4   :  { %470 = vmatprep.subr.mxu0 %v4679_v4  ;;  %v109_v7 = vld [vmem:[%s7995_s1 + $0x1a8] sm:$0xff]  ;;  %144 = vmatprep.subr.mxu1 %v113_v2  ;;  %v108_v9 = vld [vmem:[%s7995_s1 + $0x1a0] sm:$0xff]  ;;  %v118_v2 = vld [vmem:[%s7995_s1 + $0x1f0] sm:$0xff] }
   0x5   :  { %v4696_v8 = vld [vmem:[%s7996_s2 + $0x1c8] sm:$0xff]  ;;  %471 = vmatpush1.msra.mxu0 %v4687_v6  ;;  %v4705_v10 = vld [vmem:[%s7996_s2 + $0x1c0] sm:$0xff]  ;;  %145 = vmatpush1.msra.mxu1 %v112_v5 }
   0x6   :  { %v4710_v11 = vld [vmem:[%s7996_s2 + $0x1a8] sm:$0xff]  ;;  %472 = vmatprep.subr.mxu0 %v4696_v8  ;;  %v4719_v13 = vld [vmem:[%s7996_s2 + $0x1a0] sm:$0xff]  ;;  %146 = vmatprep.subr.mxu1 %v109_v7  ;;  %v115_v7 = vld [vmem:[%s7995_s1 + $0x1d8] sm:$0xff] }
   0x7   :  { %v105_v12 = vld [vmem:[%s7995_s1 + $0x188] sm:$0xff]  ;;  %473 = vmatpush1.msra.mxu0 %v4705_v10  ;;  %v104_v14 = vld [vmem:[%s7995_s1 + $0x180] sm:$0xff]  ;;  %147 = vmatpush1.msra.mxu1 %v108_v9 }
   0x8   :  { %v4728_v15 = vld [vmem:[%s7996_s2 + $0x188] sm:$0xff]  ;;  %474 = vmatprep.subr.mxu0 %v4710_v11  ;;  %v4737_v17 = vld [vmem:[%s7996_s2 + $0x180] sm:$0xff]  ;;  %148 = vmatprep.subr.mxu1 %v105_v12  ;;  %v114_v12 = vld [vmem:[%s7995_s1 + $0x1d0] sm:$0xff] }
   0x9   :  { %v101_v16 = vld [vmem:[%s7995_s1 + $0x168] sm:$0xff]  ;;  %475 = vmatpush1.msra.mxu0 %v4719_v13  ;;  %v100_v18 = vld [vmem:[%s7995_s1 + $0x160] sm:$0xff]  ;;  %149 = vmatpush1.msra.mxu1 %v104_v14 }
   0xa   :  { %v4746_v19 = vld [vmem:[%s7996_s2 + $0x168] sm:$0xff]  ;;  %476 = vmatprep.subr.mxu0 %v4728_v15  ;;  %v4755_v21 = vld [vmem:[%s7996_s2 + $0x160] sm:$0xff]  ;;  %150 = vmatprep.subr.mxu1 %v101_v16  ;;  %v111_v16 = vld [vmem:[%s7995_s1 + $0x1b8] sm:$0xff] }
   0xb   :  { %v97_v20 = vld [vmem:[%s7995_s1 + $0x148] sm:$0xff]  ;;  %477 = vmatpush1.msra.mxu0 %v4737_v17  ;;  %v96_v22 = vld [vmem:[%s7995_s1 + $0x140] sm:$0xff]  ;;  %151 = vmatpush1.msra.mxu1 %v100_v18  ;;  %v110_v18 = vld [vmem:[%s7995_s1 + $0x1b0] sm:$0xff] }
   0xc   :  { %v4764_v23 = vld [vmem:[%s7996_s2 + $0x148] sm:$0xff]  ;;  %478 = vmatprep.subr.mxu0 %v4746_v19  ;;  %v4773_v25 = vld [vmem:[%s7996_s2 + $0x140] sm:$0xff]  ;;  %152 = vmatprep.subr.mxu1 %v97_v20  ;;  %v107_v20 = vld [vmem:[%s7995_s1 + $0x198] sm:$0xff] }
   0xd   :  { %v93_v24 = vld [vmem:[%s7995_s1 + $0x128] sm:$0xff]  ;;  %479 = vmatpush1.msra.mxu0 %v4755_v21  ;;  %v92_v26 = vld [vmem:[%s7995_s1 + $0x120] sm:$0xff]  ;;  %153 = vmatpush1.msra.mxu1 %v96_v22  ;;  %v106_v22 = vld [vmem:[%s7995_s1 + $0x190] sm:$0xff] }
   0xe   :  { %v4782_v27 = vld [vmem:[%s7996_s2 + $0x128] sm:$0xff]  ;;  %480 = vmatprep.subr.mxu0 %v4764_v23  ;;  %v4791_v29 = vld [vmem:[%s7996_s2 + $0x120] sm:$0xff]  ;;  %154 = vmatprep.subr.mxu1 %v93_v24  ;;  %v5002_v24 = vld [vmem:[%s7997_s0 + $0x10] sm:$0xff] }
   0xf   :  { %v89_v28 = vld [vmem:[%s7995_s1 + $0x108] sm:$0xff]  ;;  %481 = vmatpush1.msra.mxu0 %v4773_v25  ;;  %v88_v30 = vld [vmem:[%s7995_s1 + $0x100] sm:$0xff]  ;;  %155 = vmatpush1.msra.mxu1 %v92_v26  ;;  %v103_v26 = vld [vmem:[%s7995_s1 + $0x178] sm:$0xff] }
  0x10   :  { %v4800_v31 = vld [vmem:[%s7996_s2 + $0x108] sm:$0xff]  ;;  %482 = vmatprep.subr.mxu0 %v4782_v27  ;;  %v4809_v33 = vld [vmem:[%s7996_s2 + $0x100] sm:$0xff]  ;;  %156 = vmatprep.subr.mxu1 %v89_v28  ;;  %v102_v28 = vld [vmem:[%s7995_s1 + $0x170] sm:$0xff] }
  0x11   :  { %v85_v32 = vld [vmem:[%s7995_s1 + $0xe8] sm:$0xff]  ;;  %483 = vmatpush1.msra.mxu0 %v4791_v29  ;;  %v84_v34 = vld [vmem:[%s7995_s1 + $0xe0] sm:$0xff]  ;;  %157 = vmatpush1.msra.mxu1 %v88_v30  ;;  %v99_v30 = vld [vmem:[%s7995_s1 + $0x158] sm:$0xff] }
  0x12   :  { %v4818_v35 = vld [vmem:[%s7996_s2 + $0xe8] sm:$0xff]  ;;  %484 = vmatprep.subr.mxu0 %v4800_v31  ;;  %v4827_v37 = vld [vmem:[%s7996_s2 + $0xe0] sm:$0xff]  ;;  %158 = vmatprep.subr.mxu1 %v85_v32  ;;  %v98_v32 = vld [vmem:[%s7995_s1 + $0x150] sm:$0xff] }
  0x13   :  { %v81_v36 = vld [vmem:[%s7995_s1 + $0xc8] sm:$0xff]  ;;  %485 = vmatpush1.msra.mxu0 %v4809_v33  ;;  %v80_v38 = vld [vmem:[%s7995_s1 + $0xc0] sm:$0xff]  ;;  %159 = vmatpush1.msra.mxu1 %v84_v34  ;;  %v5023_v34 = vld [vmem:[%s7997_s0 + $0x18] sm:$0xff] }
  0x14   :  { %v4836_v39 = vld [vmem:[%s7996_s2 + $0xc8] sm:$0xff]  ;;  %486 = vmatprep.subr.mxu0 %v4818_v35  ;;  %v4845_v41 = vld [vmem:[%s7996_s2 + $0xc0] sm:$0xff]  ;;  %160 = vmatprep.subr.mxu1 %v81_v36  ;;  %v95_v36 = vld [vmem:[%s7995_s1 + $0x138] sm:$0xff] }
  0x15   :  { %v77_v40 = vld [vmem:[%s7995_s1 + $0xa8] sm:$0xff]  ;;  %487 = vmatpush1.msra.mxu0 %v4827_v37  ;;  %v76_v42 = vld [vmem:[%s7995_s1 + $0xa0] sm:$0xff]  ;;  %161 = vmatpush1.msra.mxu1 %v80_v38  ;;  %v94_v38 = vld [vmem:[%s7995_s1 + $0x130] sm:$0xff] }
  0x16   :  { %v4854_v43 = vld [vmem:[%s7996_s2 + $0xa8] sm:$0xff]  ;;  %488 = vmatprep.subr.mxu0 %v4836_v39  ;;  %v4863_v45 = vld [vmem:[%s7996_s2 + $0xa0] sm:$0xff]  ;;  %162 = vmatprep.subr.mxu1 %v77_v40  ;;  %v91_v40 = vld [vmem:[%s7995_s1 + $0x118] sm:$0xff] }
  0x17   :  { %v73_v44 = vld [vmem:[%s7995_s1 + $0x88] sm:$0xff]  ;;  %8222 = vst [vmem:[#allocation4_spill] sm:$0xff] %v4863_v45  ;;  %489 = vmatpush1.msra.mxu0 %v4845_v41  ;;  %v72_v46 = vld [vmem:[%s7995_s1 + $0x80] sm:$0xff]  ;;  %163 = vmatpush1.msra.mxu1 %v76_v42  ;;  %v90_v42 = vld [vmem:[%s7995_s1 + $0x110] sm:$0xff] }
  0x18   :  { %v4872_v47 = vld [vmem:[%s7996_s2 + $0x88] sm:$0xff]  ;;  %490 = vmatprep.subr.mxu0 %v4854_v43  ;;  %v4881_v49 = vld [vmem:[%s7996_s2 + $0x80] sm:$0xff]  ;;  %164 = vmatprep.subr.mxu1 %v73_v44 }
  0x19   :  { %8223 = vst [vmem:[#allocation5_spill] sm:$0xff] %v4872_v47  ;;  %v69_v48 = vld [vmem:[%s7995_s1 + $0x68] sm:$0xff]  ;;  %8224 = vst [vmem:[#allocation6_spill] sm:$0xff] %v4881_v49  ;;  %491 = vmatpush1.msra.mxu0 %v4863_v45  ;;  %v68_v50 = vld [vmem:[%s7995_s1 + $0x60] sm:$0xff]  ;;  %165 = vmatpush1.msra.mxu1 %v72_v46 }
  0x1a   :  { %v4890_v51 = vld [vmem:[%s7996_s2 + $0x68] sm:$0xff]  ;;  %492 = vmatprep.subr.mxu0 %v4872_v47  ;;  %v4899_v53 = vld [vmem:[%s7996_s2 + $0x60] sm:$0xff]  ;;  %166 = vmatprep.subr.mxu1 %v69_v48  ;;  %v87_v46 = vld [vmem:[%s7995_s1 + $0xf8] sm:$0xff] }
  0x1b   :  { %8225 = vst [vmem:[#allocation7_spill] sm:$0xff] %v4890_v51  ;;  %v65_v52 = vld [vmem:[%s7995_s1 + $0x48] sm:$0xff]  ;;  %8226 = vst [vmem:[#allocation8_spill] sm:$0xff] %v4899_v53  ;;  %493 = vmatpush1.msra.mxu0 %v4881_v49  ;;  %v64_v54 = vld [vmem:[%s7995_s1 + $0x40] sm:$0xff]  ;;  %167 = vmatpush1.msra.mxu1 %v68_v50 }
  0x1c   :  { %v4908_v55 = vld [vmem:[%s7996_s2 + $0x48] sm:$0xff]  ;;  %494 = vmatprep.subr.mxu0 %v4890_v51  ;;  %v4917_v57 = vld [vmem:[%s7996_s2 + $0x40] sm:$0xff]  ;;  %168 = vmatprep.subr.mxu1 %v65_v52  ;;  %v86_v48 = vld [vmem:[%s7995_s1 + $0xf0] sm:$0xff] }
  0x1d   :  { %8227 = vst [vmem:[#allocation9_spill] sm:$0xff] %v4908_v55  ;;  %v61_v56 = vld [vmem:[%s7995_s1 + $0x28] sm:$0xff]  ;;  %8228 = vst [vmem:[#allocation10_spill] sm:$0xff] %v4917_v57  ;;  %495 = vmatpush1.msra.mxu0 %v4899_v53  ;;  %v60_v58 = vld [vmem:[%s7995_s1 + $0x20] sm:$0xff]  ;;  %169 = vmatpush1.msra.mxu1 %v64_v54 }
  0x1e   :  { %v4926_v59 = vld [vmem:[%s7996_s2 + $0x28] sm:$0xff]  ;;  %496 = vmatprep.subr.mxu0 %v4908_v55  ;;  %v4935_v61 = vld [vmem:[%s7996_s2 + $0x20] sm:$0xff]  ;;  %170 = vmatprep.subr.mxu1 %v61_v56  ;;  %v83_v50 = vld [vmem:[%s7995_s1 + $0xd8] sm:$0xff] }
  0x1f   :  { %8229 = vst [vmem:[#allocation11_spill] sm:$0xff] %v4926_v59  ;;  %v57_v60 = vld [vmem:[%s7995_s1 + $0x8] sm:$0xff]  ;;  %8230 = vst [vmem:[#allocation12_spill] sm:$0xff] %v4935_v61  ;;  %497 = vmatpush1.msra.mxu0 %v4917_v57  ;;  %v56_v62 = vld [vmem:[%s7995_s1] sm:$0xff]  ;;  %171 = vmatpush1.msra.mxu1 %v60_v58 }
  0x20   :  { %v4944_v63 = vld [vmem:[%s7996_s2 + $0x8] sm:$0xff]  ;;  %498 = vmatprep.subr.mxu0 %v4926_v59  ;;  %v4950_v0 = vld [vmem:[%s7997_s0] sm:$0xff]  ;;  %172 = vmatprep.subr.mxu1 %v57_v60  ;;  %v82_v52 = vld [vmem:[%s7995_s1 + $0xd0] sm:$0xff] }
  0x21   :  { %8231 = vst [vmem:[#allocation13_spill] sm:$0xff] %v4944_v63  ;;  %499 = vmatpush1.msra.mxu0 %v4935_v61  ;;  %v4962_v5 = vld [vmem:[%s7996_s2] sm:$0xff]  ;;  %173 = vmatpush1.msra.mxu1 %v56_v62  ;;  %v4981_v14 = vld [vmem:[%s7997_s0 + $0x8] sm:$0xff]  ;;  %v79_v56 = vld [vmem:[%s7995_s1 + $0xb8] sm:$0xff] }
  0x22   :  { %8232 = vst [vmem:[#allocation14_spill] sm:$0xff] %v4962_v5  ;;  %500 = vmatprep.subr.mxu0 %v4944_v63  ;;  %v4971_v9 = vld [vmem:[%s7998_s4] sm:$0xff]  ;;  %207 = vmatmul.mubr.f32.vlgmr.msra.gmra.mxu1 %v4950_v0  ;;  %v5065_v54 = vld [vmem:[%s7997_s0 + $0x28] sm:$0xff]  ;;  %v78_v58 = vld [vmem:[%s7995_s1 + $0xb0] sm:$0xff] }
  0x23   :  { %255 = vmatprep.subr.mxu1 %v119_v1  ;;  %501 = vmatpush1.msra.mxu0 %v4962_v5  ;;  %v5044_v44 = vld [vmem:[%s7997_s0 + $0x20] sm:$0xff]  ;;  %v75_v60 = vld [vmem:[%s7995_s1 + $0x98] sm:$0xff]  ;;  %v74_v62 = vld [vmem:[%s7995_s1 + $0x90] sm:$0xff] }
  0x24   :  { %256 = vmatpush1.msra.mxu1 %v118_v2  ;;  %535 = vmatmul.mubr.f32.vlgmr.msra.gmra.mxu0 %v4971_v9  ;;  %v5086_v1 = vld [vmem:[%s7997_s0 + $0x30] sm:$0xff]  ;;  %v71_v2 = vld [vmem:[%s7995_s1 + $0x78] sm:$0xff] }
  0x25   :  { %257 = vmatprep.subr.mxu1 %v115_v7  ;;  %212 = vmatprep.mubr.f32.mxu1 %v8007_v3  ;;  %v70_v7 = vld [vmem:[%s7995_s1 + $0x70] sm:$0xff] }
  0x26   :  { %258 = vmatpush1.msra.mxu1 %v114_v12  ;;  %645 = vmatprep.subr.mxu0 %v4679_v4  ;;  %v67_v12 = vld [vmem:[%s7995_s1 + $0x58] sm:$0xff] }
  0x27   :  { %213 = vmatmul.mubr.f32.gmra.mxu1 %v4981_v14  ;;  %259 = vmatprep.subr.mxu1 %v111_v16  ;;  %v66_v16 = vld [vmem:[%s7995_s1 + $0x50] sm:$0xff] }
  0x28   :  { %260 = vmatpush1.msra.mxu1 %v110_v18  ;;  %218 = vmatprep.mubr.f32.mxu1 %v8007_v3  ;;  %v5107_v18 = vld [vmem:[%s7997_s0 + $0x38] sm:$0xff] }
  0x29   :  { %261 = vmatprep.subr.mxu1 %v107_v20  ;;  %646 = vmatpush1.msra.mxu0 %v4687_v6  ;;  %v63_v20 = vld [vmem:[%s7995_s1 + $0x38] sm:$0xff] }
  0x2a   :  { %262 = vmatpush1.msra.mxu1 %v106_v22  ;;  %647 = vmatprep.subr.mxu0 %v4696_v8  ;;  %v62_v22 = vld [vmem:[%s7995_s1 + $0x30] sm:$0xff] }
  0x2b   :  { %219 = vmatmul.mubr.f32.gmra.mxu1 %v5002_v24  ;;  %263 = vmatprep.subr.mxu1 %v103_v26  ;;  %v59_v26 = vld [vmem:[%s7995_s1 + $0x18] sm:$0xff] }
  0x2c   :  { %264 = vmatpush1.msra.mxu1 %v102_v28  ;;  %224 = vmatprep.mubr.f32.mxu1 %v8007_v3  ;;  %v58_v28 = vld [vmem:[%s7995_s1 + $0x10] sm:$0xff] }
  0x2d   :  { %265 = vmatprep.subr.mxu1 %v99_v30  ;;  %648 = vmatpush1.msra.mxu0 %v4705_v10  ;;  %v5128_v30 = vld [vmem:[%s7996_s2 + $0x1f8] sm:$0xff] }
  0x2e   :  { %266 = vmatpush1.msra.mxu1 %v98_v32  ;;  %649 = vmatprep.subr.mxu0 %v4710_v11  ;;  %8233 = vst [vmem:[#allocation15_spill] sm:$0xff] %v5128_v30  ;;  %v5133_v32 = vld [vmem:[%s7996_s2 + $0x1f0] sm:$0xff] }
  0x2f   :  { %225 = vmatmul.mubr.f32.gmra.mxu1 %v5023_v34  ;;  %267 = vmatprep.subr.mxu1 %v95_v36  ;;  %v5139_v36 = vld [vmem:[%s7996_s2 + $0x1d8] sm:$0xff] }
  0x30   :  { %268 = vmatpush1.msra.mxu1 %v94_v38  ;;  %230 = vmatprep.mubr.f32.mxu1 %v8007_v3  ;;  %v5147_v38 = vld [vmem:[%s7996_s2 + $0x1d0] sm:$0xff] }
  0x31   :  { %269 = vmatprep.subr.mxu1 %v91_v40  ;;  %650 = vmatpush1.msra.mxu0 %v4719_v13  ;;  %v5154_v40 = vld [vmem:[%s7996_s2 + $0x1b8] sm:$0xff] }
  0x32   :  { %270 = vmatpush1.msra.mxu1 %v90_v42  ;;  %651 = vmatprep.subr.mxu0 %v4728_v15  ;;  %v5167_v42 = vld [vmem:[%s7996_s2 + $0x198] sm:$0xff] }
  0x33   :  { %231 = vmatmul.mubr.f32.gmra.mxu1 %v5044_v44  ;;  %271 = vmatprep.subr.mxu1 %v87_v46  ;;  %v5175_v46 = vld [vmem:[%s7996_s2 + $0x190] sm:$0xff] }
  0x34   :  { %272 = vmatpush1.msra.mxu1 %v86_v48  ;;  %236 = vmatprep.mubr.f32.mxu1 %v8007_v3  ;;  %v5182_v48 = vld [vmem:[%s7996_s2 + $0x178] sm:$0xff] }
  0x35   :  { %273 = vmatprep.subr.mxu1 %v83_v50  ;;  %652 = vmatpush1.msra.mxu0 %v4737_v17  ;;  %v5195_v50 = vld [vmem:[%s7996_s2 + $0x158] sm:$0xff] }
  0x36   :  { %274 = vmatpush1.msra.mxu1 %v82_v52  ;;  %653 = vmatprep.subr.mxu0 %v4746_v19  ;;  %v5203_v52 = vld [vmem:[%s7996_s2 + $0x150] sm:$0xff] }
  0x37   :  { %237 = vmatmul.mubr.f32.gmra.mxu1 %v5065_v54  ;;  %275 = vmatprep.subr.mxu1 %v79_v56  ;;  %v5210_v56 = vld [vmem:[%s7996_s2 + $0x138] sm:$0xff] }
  0x38   :  { %276 = vmatpush1.msra.mxu1 %v78_v58  ;;  %242 = vmatprep.mubr.f32.mxu1 %v8007_v3  ;;  %v5223_v58 = vld [vmem:[%s7996_s2 + $0x118] sm:$0xff] }
  0x39   :  { %277 = vmatprep.subr.mxu1 %v75_v60  ;;  %654 = vmatpush1.msra.mxu0 %v4755_v21  ;;  %v5231_v60 = vld [vmem:[%s7996_s2 + $0x110] sm:$0xff] }
  0x3a   :  { %278 = vmatpush1.msra.mxu1 %v74_v62  ;;  %655 = vmatprep.subr.mxu0 %v4764_v23  ;;  %v5238_v62 = vld [vmem:[%s7996_s2 + $0xf8] sm:$0xff] }
  0x3b   :  { %243 = vmatmul.mubr.f32.gmra.mxu1 %v5086_v1  ;;  %279 = vmatprep.subr.mxu1 %v71_v2  ;;  %v5251_v2 = vld [vmem:[%s7996_s2 + $0xd8] sm:$0xff] }
  0x3c   :  { %280 = vmatpush1.msra.mxu1 %v70_v7  ;;  %248 = vmatprep.mubr.f32.mxu1 %v8007_v3  ;;  %v5259_v7 = vld [vmem:[%s7996_s2 + $0xd0] sm:$0xff] }
  0x3d   :  { %281 = vmatprep.subr.mxu1 %v67_v12  ;;  %656 = vmatpush1.msra.mxu0 %v4773_v25  ;;  %v5266_v12 = vld [vmem:[%s7996_s2 + $0xb8] sm:$0xff] }
  0x3e   :  { %282 = vmatpush1.msra.mxu1 %v66_v16  ;;  %657 = vmatprep.subr.mxu0 %v4782_v27  ;;  %v5279_v16 = vld [vmem:[%s7996_s2 + $0x98] sm:$0xff] }
  0x3f   :  { %249 = vmatmul.mubr.f32.gmra.mxu1 %v5107_v18  ;;  %283 = vmatprep.subr.mxu1 %v63_v20  ;;  %8235 = vst [vmem:[#allocation17_spill] sm:$0xff] %v5279_v16  ;;  %v5287_v20 = vld [vmem:[%s7996_s2 + $0x90] sm:$0xff] }
  0x40   :  { %284 = vmatpush1.msra.mxu1 %v62_v22  ;;  %319 = vmatprep.mubr.f32.mxu1 %v8007_v3  ;;  %8236 = vst [vmem:[#allocation18_spill] sm:$0xff] %v5287_v20  ;;  %v5294_v22 = vld [vmem:[%s7996_s2 + $0x78] sm:$0xff] }
  0x41   :  { %285 = vmatprep.subr.mxu1 %v59_v26  ;;  %658 = vmatpush1.msra.mxu0 %v4791_v29  ;;  %8237 = vst [vmem:[#allocation19_spill] sm:$0xff] %v5294_v22  ;;  %v5307_v26 = vld [vmem:[%s7996_s2 + $0x58] sm:$0xff] }
  0x42   :  { %286 = vmatpush1.msra.mxu1 %v58_v28  ;;  %659 = vmatprep.subr.mxu0 %v4800_v31  ;;  %8239 = vst [vmem:[#allocation21_spill] sm:$0xff] %v5307_v26  ;;  %v5315_v28 = vld [vmem:[%s7996_s2 + $0x50] sm:$0xff] }
  0x43   :  { %320 = vmatmul.mubr.f32.vlgmr.msra.gmra.mxu1 %v4950_v0  ;;  %541 = vmatprep.subr.mxu1 %v5128_v30  ;;  %v5160_v0 = vld [vmem:[%s7996_s2 + $0x1b0] sm:$0xff]  ;;  %8240 = vst [vmem:[#allocation22_spill] sm:$0xff] %v5315_v28 }
  0x44   :  { %542 = vmatpush1.msra.mxu1 %v5133_v32  ;;  %325 = vmatprep.mubr.f32.mxu1 %v8007_v3 }
  0x45   :  { %543 = vmatprep.subr.mxu1 %v5139_v36  ;;  %660 = vmatpush1.msra.mxu0 %v4809_v33 }
  0x46   :  { %544 = vmatpush1.msra.mxu1 %v5147_v38  ;;  %661 = vmatprep.subr.mxu0 %v4818_v35 }
  0x47   :  { %326 = vmatmul.mubr.f32.gmra.mxu1 %v4981_v14  ;;  %545 = vmatprep.subr.mxu1 %v5154_v40  ;;  %v5188_v14 = vld [vmem:[%s7996_s2 + $0x170] sm:$0xff] }
  0x48   :  { %546 = vmatpush1.msra.mxu1 %v5160_v0  ;;  %331 = vmatprep.mubr.f32.mxu1 %v8007_v3 }
  0x49   :  { %547 = vmatprep.subr.mxu1 %v5167_v42  ;;  %662 = vmatpush1.msra.mxu0 %v4827_v37 }
  0x4a   :  { %548 = vmatpush1.msra.mxu1 %v5175_v46  ;;  %663 = vmatprep.subr.mxu0 %v4836_v39 }
  0x4b   :  { %332 = vmatmul.mubr.f32.gmra.mxu1 %v5002_v24  ;;  %549 = vmatprep.subr.mxu1 %v5182_v48  ;;  %v5216_v24 = vld [vmem:[%s7996_s2 + $0x130] sm:$0xff] }
  0x4c   :  { %550 = vmatpush1.msra.mxu1 %v5188_v14  ;;  %337 = vmatprep.mubr.f32.mxu1 %v8007_v3 }
  0x4d   :  { %551 = vmatprep.subr.mxu1 %v5195_v50  ;;  %664 = vmatpush1.msra.mxu0 %v4845_v41 }
  0x4e   :  { %552 = vmatpush1.msra.mxu1 %v5203_v52  ;;  %665 = vmatprep.subr.mxu0 %v4854_v43 }
  0x4f   :  { %338 = vmatmul.mubr.f32.gmra.mxu1 %v5023_v34  ;;  %553 = vmatprep.subr.mxu1 %v5210_v56  ;;  %v5244_v34 = vld [vmem:[%s7996_s2 + $0xf0] sm:$0xff] }
  0x50   :  { %554 = vmatpush1.msra.mxu1 %v5216_v24  ;;  %343 = vmatprep.mubr.f32.mxu1 %v8007_v3 }
  0x51   :  { %555 = vmatprep.subr.mxu1 %v5223_v58  ;;  %666 = vmatpush1.msra.mxu0 %v4863_v45 }
  0x52   :  { %556 = vmatpush1.msra.mxu1 %v5231_v60  ;;  %667 = vmatprep.subr.mxu0 %v4872_v47 }
  0x53   :  { %344 = vmatmul.mubr.f32.gmra.mxu1 %v5044_v44  ;;  %557 = vmatprep.subr.mxu1 %v5238_v62  ;;  %v5272_v44 = vld [vmem:[%s7996_s2 + $0xb0] sm:$0xff] }
  0x54   :  { %558 = vmatpush1.msra.mxu1 %v5244_v34  ;;  %349 = vmatprep.mubr.f32.mxu1 %v8007_v3  ;;  %8234 = vst [vmem:[#allocation16_spill] sm:$0xff] %v5272_v44 }
  0x55   :  { %559 = vmatprep.subr.mxu1 %v5251_v2  ;;  %668 = vmatpush1.msra.mxu0 %v4881_v49 }
  0x56   :  { %560 = vmatpush1.msra.mxu1 %v5259_v7  ;;  %669 = vmatprep.subr.mxu0 %v4890_v51  ;;  %v5322_v51 = vld [vmem:[%s7996_s2 + $0x38] sm:$0xff] }
  0x57   :  { %350 = vmatmul.mubr.f32.gmra.mxu1 %v5065_v54  ;;  %561 = vmatprep.subr.mxu1 %v5266_v12  ;;  %v5300_v54 = vld [vmem:[%s7996_s2 + $0x70] sm:$0xff]  ;;  %8241 = vst [vmem:[#allocation23_spill] sm:$0xff] %v5322_v51 }
  0x58   :  { %562 = vmatpush1.msra.mxu1 %v5272_v44  ;;  %355 = vmatprep.mubr.f32.mxu1 %v8007_v3  ;;  %8238 = vst [vmem:[#allocation20_spill] sm:$0xff] %v5300_v54 }
  0x59   :  { %563 = vmatprep.subr.mxu1 %v5279_v16  ;;  %670 = vmatpush1.msra.mxu0 %v4899_v53  ;;  %v5343_v53 = vld [vmem:[%s7996_s2 + $0x10] sm:$0xff] }
  0x5a   :  { %564 = vmatpush1.msra.mxu1 %v5287_v20  ;;  %671 = vmatprep.subr.mxu0 %v4908_v55  ;;  %8244 = vst [vmem:[#allocation26_spill] sm:$0xff] %v5343_v53  ;;  %v8245_v55 = vmov 0.0  }
  0x5b   :  { %356 = vmatmul.mubr.f32.gmra.mxu1 %v5086_v1  ;;  %565 = vmatprep.subr.mxu1 %v5294_v22  ;;  %v5328_v1 = vld [vmem:[%s7996_s2 + $0x30] sm:$0xff] }
  0x5c   :  { %566 = vmatpush1.msra.mxu1 %v5300_v54  ;;  %361 = vmatprep.mubr.f32.mxu1 %v8007_v3  ;;  %8242 = vst [vmem:[#allocation24_spill] sm:$0xff] %v5328_v1  ;;  %v5335_v3 = vld [vmem:[%s7996_s2 + $0x18] sm:$0xff] }
  0x5d   :  { %567 = vmatprep.subr.mxu1 %v5307_v26  ;;  %8243 = vst [vmem:[#allocation25_spill] sm:$0xff] %v5335_v3  ;;  %672 = vmatpush1.msra.mxu0 %v4917_v57 }
  0x5e   :  { %568 = vmatpush1.msra.mxu1 %v5315_v28  ;;  %673 = vmatprep.subr.mxu0 %v4926_v59 }
  0x5f   :  { %362 = vmatmul.mubr.f32.gmra.mxu1 %v5107_v18  ;;  %569 = vmatprep.subr.mxu1 %v5322_v51 }
  0x60   :  { %570 = vmatpush1.msra.mxu1 %v5328_v1  ;;  %605 = vmatprep.mubr.f32.mxu1 %v8245_v55 }
  0x61   :  { %571 = vmatprep.subr.mxu1 %v5335_v3  ;;  %674 = vmatpush1.msra.mxu0 %v4935_v61 }
  0x62   :  { %572 = vmatpush1.msra.mxu1 %v5343_v53  ;;  %675 = vmatprep.subr.mxu0 %v4944_v63 }
  0x63   :  { %606 = vmatmul.mubr.f32.vlgmr.msra.gmra.mxu1 %v4971_v9  ;;  %716 = vmatprep.subr.mxu1 %v5128_v30 }
  0x64   :  { %717 = vmatpush1.msra.mxu1 %v5133_v32  ;;  %676 = vmatpush1.msra.mxu0 %v4962_v5 }
  0x65   :  { %718 = vmatprep.subr.mxu1 %v5139_v36  ;;  %709 = vmatprep.mubr.f32.mxu0 %v8245_v55 }
  0x66   :  { %719 = vmatpush1.msra.mxu1 %v5147_v38  ;;  %780 = vmatprep.mubr.f32.mxu1 %v8245_v55  ;;  %v120_v55 = vld [vmem:[%s7999_s3] sm:$0xf] }
  0x67   :  { %720 = vmatprep.subr.mxu1 %v5154_v40  ;;  %820 = vmatprep.subr.mxu0 %v4679_v4  ;;  %v8023_v4 = vlaneseq }
  0x68   :  { %721 = vmatpush1.msra.mxu1 %v5160_v0 }
  0x69   :  { %722 = vmatprep.subr.mxu1 %v5167_v42  ;;  %v5391_v9 = vshrl.u32 %v8023_v4, 7 }
  0x6a   :  { %723 = vmatpush1.msra.mxu1 %v5175_v46 }
  0x6b   :  { %724 = vmatprep.subr.mxu1 %v5182_v48  ;;  %8246 = vst [vmem:[#allocation27_spill] sm:$0xff] %v5391_v9  ;;  %v8038_v18 = vsub.s32 0, %v5391_v9  ;;  %v8042_v63 = vsub.s32 1, %v5391_v9 }
  0x6c   :  { %725 = vmatpush1.msra.mxu1 %v5188_v14 }
  0x6d   :  { %726 = vmatprep.subr.mxu1 %v5195_v50 }
  0x6e   :  { %727 = vmatpush1.msra.mxu1 %v5203_v52 }
  0x6f   :  { %728 = vmatprep.subr.mxu1 %v5210_v56 }
  0x70   :  { %729 = vmatpush1.msra.mxu1 %v5216_v24 }
  0x71   :  { %730 = vmatprep.subr.mxu1 %v5223_v58 }
  0x72   :  { %731 = vmatpush1.msra.mxu1 %v5231_v60 }
  0x73   :  { %732 = vmatprep.subr.mxu1 %v5238_v62 }
  0x74   :  { %733 = vmatpush1.msra.mxu1 %v5244_v34 }
  0x75   :  { %734 = vmatprep.subr.mxu1 %v5251_v2 }
  0x76   :  { %735 = vmatpush1.msra.mxu1 %v5259_v7 }
  0x77   :  { %736 = vmatprep.subr.mxu1 %v5266_v12 }
  0x78   :  { %737 = vmatpush1.msra.mxu1 %v5272_v44 }
  0x79   :  { %738 = vmatprep.subr.mxu1 %v5279_v16 }
  0x7a   :  { %739 = vmatpush1.msra.mxu1 %v5287_v20 }
  0x7b   :  { %740 = vmatprep.subr.mxu1 %v5294_v22 }
  0x7c   :  { %741 = vmatpush1.msra.mxu1 %v5300_v54 }
  0x7d   :  { %742 = vmatprep.subr.mxu1 %v5307_v26 }
  0x7e   :  { %743 = vmatpush1.msra.mxu1 %v5315_v28 }
  0x7f   :  { %744 = vmatprep.subr.mxu1 %v5322_v51 }
  0x80   :  { %745 = vmatpush1.msra.mxu1 %v5328_v1 }
  0x81   :  { %746 = vmatprep.subr.mxu1 %v5335_v3  ;;  %v125_v3 = vrot.slane %v120_v55, %v8038_v18 }
  0x82   :  { %747 = vmatpush1.msra.mxu1 %v5343_v53 }
  0x83   :  { %891 = vmatprep.subr.mxu1 %v5128_v30  ;;  %v129_v30 = vrot.slane %v120_v55, %v8042_v63 }
  0xe2   :  { %v208_v5 = vpop.f32.mrf.mxu1 }
  0xe4   :  { %v210_v1 = vpop.f32.mrf.mxu1 }
  0xe7   :  { %v214_v53 = vpop.f32.mrf.mxu1 }
  0xe8   :  { %v5402_v61 = vadd.f32 %v214_v53, %v125_v3 }
  0xe9   :  { %v216_v4 = vpop.f32.mrf.mxu1 }
  0xea   :  { %8247 = vst [vmem:[#allocation28_spill] sm:$0xff] %v5402_v61  ;;  %v5404_v51 = vadd.f32 %v216_v4, %v129_v30 }
  0xeb   :  { %v220_v59 = vpop.f32.mrf.mxu1 }
  0xec   :  { %8248 = vst [vmem:[#allocation29_spill] sm:$0xff] %v5404_v51  ;;  %v5406_v28 = vadd.f32 %v220_v59, %v125_v3 }
  0xed   :  { %v222_v57 = vpop.f32.mrf.mxu1 }
  0xee   :  { %8249 = vst [vmem:[#allocation30_spill] sm:$0xff] %v5406_v28  ;;  %v5408_v26 = vadd.f32 %v222_v57, %v129_v30 }
  0xef   :  { %v226_v54 = vpop.f32.mrf.mxu1 }
  0xf0   :  { %8250 = vst [vmem:[#allocation31_spill] sm:$0xff] %v5408_v26  ;;  %v5410_v22 = vadd.f32 %v226_v54, %v125_v3 }
  0xf1   :  { %v228_v20 = vpop.f32.mrf.mxu1 }
  0xf2   :  { %8251 = vst [vmem:[#allocation32_spill] sm:$0xff] %v5410_v22  ;;  %v5412_v18 = vadd.f32 %v228_v20, %v129_v30 }
  0xf3   :  { %v232_v49 = vpop.f32.mrf.mxu1 }
  0xf4   :  { %8252 = vst [vmem:[#allocation33_spill] sm:$0xff] %v5412_v18  ;;  %v5414_v16 = vadd.f32 %v232_v49, %v125_v3  ;;  %v536_v49 = vpop.f32.mrf.mxu0 }
  0xf5   :  { %v234_v53 = vpop.f32.mrf.mxu1 }
  0xf6   :  { %8253 = vst [vmem:[#allocation34_spill] sm:$0xff] %v5414_v16  ;;  %v5416_v63 = vadd.f32 %v234_v53, %v129_v30  ;;  %v8047_v53 = vsub.s32 2, %v5391_v9 }
  0xf7   :  { %v238_v4 = vpop.f32.mrf.mxu1 }
  0xf8   :  { %8254 = vst [vmem:[#allocation35_spill] sm:$0xff] %v5416_v63  ;;  %v5418_v51 = vadd.f32 %v238_v4, %v125_v3  ;;  %v538_v63 = vpop.f32.mrf.mxu0 }
  0xf9   :  { %v240_v59 = vpop.f32.mrf.mxu1 }
  0xfa   :  { %8255 = vst [vmem:[#allocation36_spill] sm:$0xff] %v5418_v51  ;;  %v5420_v28 = vadd.f32 %v240_v59, %v129_v30  ;;  %v211_v51 = vadd.f32 %v210_v1, %v129_v30  ;;  %v8048_v59 = vsub.s32 3, %v5391_v9 }
  0xfb   :  { %v244_v57 = vpop.f32.mrf.mxu1 }
  0xfc   :  { %8256 = vst [vmem:[#allocation37_spill] sm:$0xff] %v5420_v28  ;;  %v5422_v26 = vadd.f32 %v244_v57, %v125_v3  ;;  %v209_v28 = vadd.f32 %v208_v5, %v125_v3 }
  0xfd   :  { %v246_v54 = vpop.f32.mrf.mxu1 }
  0xfe   :  { %8257 = vst [vmem:[#allocation38_spill] sm:$0xff] %v5422_v26  ;;  %v5424_v22 = vadd.f32 %v246_v54, %v129_v30  ;;  %v133_v54 = vrot.slane %v120_v55, %v8047_v53  ;;  %v613_v26 = vadd.f32 %v538_v63, %v211_v51 }
  0xff   :  { %v250_v20 = vpop.f32.mrf.mxu1 }
 0x100   :  { %8258 = vst [vmem:[#allocation39_spill] sm:$0xff] %v5424_v22  ;;  %v5426_v18 = vadd.f32 %v250_v20, %v125_v3  ;;  %v137_v20 = vrot.slane %v120_v55, %v8048_v59  ;;  %v3943_v1 = vmul.f32 -1.442695, %v613_v26 }
 0x101   :  { %v252_v16 = vpop.f32.mrf.mxu1 }
 0x102   :  { %8259 = vst [vmem:[#allocation40_spill] sm:$0xff] %v5426_v18  ;;  %v5428_v61 = vadd.f32 %v252_v16, %v129_v30  ;;  %v612_v16 = vadd.f32 %v536_v49, %v209_v28  ;;  %4193 = vpow2.f32 %v3943_v1 }
 0x103   :  { %v321_v4 = vpop.f32.mrf.mxu1 }
 0x104   :  { %8260 = vst [vmem:[#allocation41_spill] sm:$0xff] %v5428_v61  ;;  %v3942_v3 = vmul.f32 -1.442695, %v612_v16 }
 0x105   :  { %v323_v57 = vpop.f32.mrf.mxu1 }
 0x106   :  { %4195 = vpow2.f32 %v3942_v3 }
 0x107   :  { %v327_v22 = vpop.f32.mrf.mxu1 }
 0x108   :  { %v5436_v18 = vadd.f32 %v327_v22, %v133_v54 }
 0x109   :  { %v329_v61 = vpop.f32.mrf.mxu1 }
 0x10a   :  { %v5438_v47 = vadd.f32 %v329_v61, %v137_v20 }
 0x10b   :  { %v333_v30 = vpop.f32.mrf.mxu1 }
 0x10c   :  { %v5440_v44 = vadd.f32 %v333_v30, %v133_v54 }
 0x10d   :  { %v335_v5 = vpop.f32.mrf.mxu1 }
 0x10e   :  { %8261 = vst [vmem:[#allocation42_spill] sm:$0xff] %v5440_v44  ;;  %v5442_v45 = vadd.f32 %v335_v5, %v137_v20 }
 0x10f   :  { %v339_v53 = vpop.f32.mrf.mxu1 }
 0x110   :  { %v5444_v51 = vadd.f32 %v339_v53, %v133_v54  ;;  %v4194_v53 = vpop.eup %4193 }
 0x111   :  { %v341_v55 = vpop.f32.mrf.mxu1 }
 0x112   :  { %8262 = vst [vmem:[#allocation43_spill] sm:$0xff] %v5444_v51  ;;  %v5446_v63 = vadd.f32 %v341_v55, %v137_v20 }
 0x113   :  { %v345_v22 = vpop.f32.mrf.mxu1  ;;  %v4196_v9 = vpop.eup %4195 }
 0x114   :  { %8263 = vst [vmem:[#allocation44_spill] sm:$0xff] %v5446_v63  ;;  %v5448_v28 = vadd.f32 %v345_v22, %v133_v54  ;;  %v625_v22 = vadd.f32 1.0, %v4194_v53  ;;  %v322_v63 = vadd.f32 %v321_v4, %v133_v54 }
 0x115   :  { %v347_v61 = vpop.f32.mrf.mxu1 }
 0x116   :  { %8264 = vst [vmem:[#allocation45_spill] sm:$0xff] %v5448_v28  ;;  %v5450_v49 = vadd.f32 %v347_v61, %v137_v20  ;;  %v619_v61 = vadd.f32 1.0, %v4196_v9  ;;  %4197 = vrcp.f32 %v625_v22 }
 0x117   :  { %v351_v26 = vpop.f32.mrf.mxu1 }
 0x118   :  { %8265 = vst [vmem:[#allocation46_spill] sm:$0xff] %v5450_v49  ;;  %v5452_v30 = vadd.f32 %v351_v26, %v133_v54  ;;  %4199 = vrcp.f32 %v619_v61  ;;  %v5541_v61 = vld [vmem:[%s7996_s2 + $0x1e8] sm:$0xff] }
 0x119   :  { %v353_v16 = vpop.f32.mrf.mxu1 }
 0x11a   :  { %8266 = vst [vmem:[#allocation47_spill] sm:$0xff] %v5452_v30  ;;  %v5454_v5 = vadd.f32 %v353_v16, %v137_v20  ;;  %v324_v16 = vadd.f32 %v323_v57, %v137_v20 }
 0x11b   :  { %v357_v59 = vpop.f32.mrf.mxu1 }
 0x11c   :  { %8267 = vst [vmem:[#allocation48_spill] sm:$0xff] %v5454_v5  ;;  %v5456_v1 = vadd.f32 %v357_v59, %v133_v54 }
 0x11d   :  { %v359_v3 = vpop.f32.mrf.mxu1 }
 0x11e   :  { %8268 = vst [vmem:[#allocation49_spill] sm:$0xff] %v5456_v1  ;;  %v5458_v55 = vadd.f32 %v359_v3, %v137_v20 }
 0x11f   :  { %v363_v51 = vpop.f32.mrf.mxu1 }
 0x120   :  { %8269 = vst [vmem:[#allocation50_spill] sm:$0xff] %v5458_v55  ;;  %v5460_v28 = vadd.f32 %v363_v51, %v133_v54  ;;  %v465_v51 = vld [vmem:[%s8000_s5] sm:$0xff]  ;;  %v5749_v55 = vld [vmem:[%s7996_s2 + $0x28] sm:$0xff] }
 0x121   :  { %v365_v49 = vpop.f32.mrf.mxu1 }
 0x122   :  { %8270 = vst [vmem:[#allocation51_spill] sm:$0xff] %v5460_v28  ;;  %v5462_v26 = vadd.f32 %v365_v49, %v137_v20  ;;  %v5721_v28 = vld [vmem:[%s7996_s2 + $0x68] sm:$0xff] }
 0x123   :  { %v607_v30 = vpop.f32.mrf.mxu1  ;;  %v4198_v3 = vpop.eup %4197 }
 0x124   :  { %8271 = vst [vmem:[#allocation52_spill] sm:$0xff] %v5462_v26  ;;  %v614_v5 = vadd.f32 %v607_v30, %v322_v63  ;;  %v635_v4 = vmul.f32 %v4198_v3, %v465_v51  ;;  %v8298_v3 = vld [vmem:[#allocation28_spill] sm:$0xff] }
 0x125   :  { %v609_v59 = vpop.f32.mrf.mxu1  ;;  %v4200_v9 = vpop.eup %4199  ;;  %v5728_v26 = vld [vmem:[%s7996_s2 + $0x60] sm:$0xff] }
 0x126   :  { %4201 = vtanh.f32 %v614_v5  ;;  %v615_v1 = vadd.f32 %v609_v59, %v324_v16  ;;  %v8294_v5 = vmov 0.0   ;;  %v8297_v16 = vld [vmem:[#allocation15_spill] sm:$0xff] }
 0x128   :  { %v3944_v44 = vmul.f32 -1.442695, %v615_v1  ;;  %v8295_v1 = vld [vmem:[#allocation26_spill] sm:$0xff] }
 0x12a   :  { %4203 = vpow2.f32 %v3944_v44  ;;  %v8293_v44 = vld [vmem:[#allocation14_spill] sm:$0xff] }
 0x133   :  { %v4202_v53 = vpop.eup %4201 }
 0x134   :  { %v636_v54 = vmul.f32 %v4202_v53, %v4200_v9 }
 0x136   :  { %v5467_v49 = vadd.f32 %v636_v54, %v635_v4  ;;  %v8299_v4 = vld [vmem:[#allocation29_spill] sm:$0xff] }
 0x137   :  { %v4204_v22 = vpop.eup %4203 }
 0x138   :  { %v632_v57 = vadd.f32 1.0, %v4204_v22  ;;  %4205 = vtanh.f32 %v5467_v49 }
 0x13a   :  { %4207 = vrcp.f32 %v632_v57 }
 0x145   :  { %v4206_v20 = vpop.eup %4205 }
 0x147   :  { %v4208_v63 = vpop.eup %4207 }
 0x148   :  { %v5470_v30 = vmul.f32 %v4208_v63, %v4206_v20 }
 0x14a   :  { %8272 = vst [vmem:[#allocation53_spill] sm:$0xff] %v5470_v30  ;;  %710 = vmatmul.mubr.f32.vlgmr.msra.gmra.mxu0 %v5470_v30  ;;  %781 = vmatmul.mubr.f32.vlgmr.msra.gmra.mxu1 %v5470_v30  ;;  %v5742_v30 = vld [vmem:[%s7996_s2 + $0x40] sm:$0xff] }
 0x14b   :  { %821 = vmatpush1.msra.mxu0 %v4687_v6  ;;  %892 = vmatpush1.msra.mxu1 %v5133_v32  ;;  %v8273_v6 = vld [vmem:[#allocation4_spill] sm:$0xff] }
 0x14c   :  { %822 = vmatprep.subr.mxu0 %v4696_v8  ;;  %893 = vmatprep.subr.mxu1 %v5139_v36  ;;  %v8274_v8 = vld [vmem:[#allocation16_spill] sm:$0xff]  ;;  %8296 = vst [vmem:[#allocation4_spill] sm:$0xff] %v5541_v61 }
 0x14d   :  { %823 = vmatpush1.msra.mxu0 %v4705_v10  ;;  %894 = vmatpush1.msra.mxu1 %v5147_v38  ;;  %v8275_v10 = vld [vmem:[#allocation5_spill] sm:$0xff] }
 0x14e   :  { %824 = vmatprep.subr.mxu0 %v4710_v11  ;;  %895 = vmatprep.subr.mxu1 %v5154_v40  ;;  %v8276_v11 = vld [vmem:[#allocation17_spill] sm:$0xff]  ;;  %8301 = vst [vmem:[#allocation5_spill] sm:$0xff] %v5721_v28 }
 0x14f   :  { %825 = vmatpush1.msra.mxu0 %v4719_v13  ;;  %896 = vmatpush1.msra.mxu1 %v5160_v0  ;;  %v8277_v13 = vld [vmem:[#allocation6_spill] sm:$0xff]  ;;  %8302 = vst [vmem:[#allocation17_spill] sm:$0xff] %v5728_v26 }
 0x150   :  { %826 = vmatprep.subr.mxu0 %v4728_v15  ;;  %897 = vmatprep.subr.mxu1 %v5167_v42  ;;  %v8278_v15 = vld [vmem:[#allocation18_spill] sm:$0xff] }
 0x151   :  { %827 = vmatpush1.msra.mxu0 %v4737_v17  ;;  %898 = vmatpush1.msra.mxu1 %v5175_v46  ;;  %v8279_v17 = vld [vmem:[#allocation7_spill] sm:$0xff] }
 0x152   :  { %828 = vmatprep.subr.mxu0 %v4746_v19  ;;  %899 = vmatprep.subr.mxu1 %v5182_v48  ;;  %v8280_v19 = vld [vmem:[#allocation19_spill] sm:$0xff]  ;;  %8304 = vst [vmem:[#allocation7_spill] sm:$0xff] %v5742_v30 }
 0x153   :  { %829 = vmatpush1.msra.mxu0 %v4755_v21  ;;  %900 = vmatpush1.msra.mxu1 %v5188_v14  ;;  %v8281_v21 = vld [vmem:[#allocation8_spill] sm:$0xff] }
 0x154   :  { %830 = vmatprep.subr.mxu0 %v4764_v23  ;;  %901 = vmatprep.subr.mxu1 %v5195_v50  ;;  %v8282_v23 = vld [vmem:[#allocation20_spill] sm:$0xff]  ;;  %8305 = vst [vmem:[#allocation8_spill] sm:$0xff] %v5749_v55 }
 0x155   :  { %831 = vmatpush1.msra.mxu0 %v4773_v25  ;;  %902 = vmatpush1.msra.mxu1 %v5203_v52  ;;  %v8283_v25 = vld [vmem:[#allocation9_spill] sm:$0xff] }
 0x156   :  { %832 = vmatprep.subr.mxu0 %v4782_v27  ;;  %903 = vmatprep.subr.mxu1 %v5210_v56  ;;  %v8284_v27 = vld [vmem:[#allocation21_spill] sm:$0xff] }
 0x157   :  { %833 = vmatpush1.msra.mxu0 %v4791_v29  ;;  %904 = vmatpush1.msra.mxu1 %v5216_v24  ;;  %v8285_v29 = vld [vmem:[#allocation10_spill] sm:$0xff] }
 0x158   :  { %834 = vmatprep.subr.mxu0 %v4800_v31  ;;  %905 = vmatprep.subr.mxu1 %v5223_v58  ;;  %v8286_v31 = vld [vmem:[#allocation22_spill] sm:$0xff] }
 0x159   :  { %835 = vmatpush1.msra.mxu0 %v4809_v33  ;;  %906 = vmatpush1.msra.mxu1 %v5231_v60  ;;  %v8287_v33 = vld [vmem:[#allocation11_spill] sm:$0xff] }
 0x15a   :  { %836 = vmatprep.subr.mxu0 %v4818_v35  ;;  %907 = vmatprep.subr.mxu1 %v5238_v62  ;;  %v8288_v35 = vld [vmem:[#allocation23_spill] sm:$0xff] }
 0x15b   :  { %837 = vmatpush1.msra.mxu0 %v4827_v37  ;;  %908 = vmatpush1.msra.mxu1 %v5244_v34  ;;  %v8289_v37 = vld [vmem:[#allocation12_spill] sm:$0xff] }
 0x15c   :  { %838 = vmatprep.subr.mxu0 %v4836_v39  ;;  %909 = vmatprep.subr.mxu1 %v5251_v2  ;;  %v8290_v39 = vld [vmem:[#allocation24_spill] sm:$0xff] }
 0x15d   :  { %839 = vmatpush1.msra.mxu0 %v4845_v41  ;;  %910 = vmatpush1.msra.mxu1 %v5259_v7  ;;  %v8291_v41 = vld [vmem:[#allocation13_spill] sm:$0xff] }
 0x15e   :  { %840 = vmatprep.subr.mxu0 %v4854_v43  ;;  %911 = vmatprep.subr.mxu1 %v5266_v12  ;;  %v8292_v43 = vld [vmem:[#allocation25_spill] sm:$0xff] }
 0x15f   :  { %841 = vmatpush1.msra.mxu0 %v8273_v6  ;;  %912 = vmatpush1.msra.mxu1 %v8274_v8 }
 0x160   :  { %842 = vmatprep.subr.mxu0 %v8275_v10  ;;  %913 = vmatprep.subr.mxu1 %v8276_v11 }
 0x161   :  { %843 = vmatpush1.msra.mxu0 %v8277_v13  ;;  %914 = vmatpush1.msra.mxu1 %v8278_v15 }
 0x162   :  { %844 = vmatprep.subr.mxu0 %v8279_v17  ;;  %915 = vmatprep.subr.mxu1 %v8280_v19 }
 0x163   :  { %845 = vmatpush1.msra.mxu0 %v8281_v21  ;;  %916 = vmatpush1.msra.mxu1 %v8282_v23 }
 0x164   :  { %846 = vmatprep.subr.mxu0 %v8283_v25  ;;  %917 = vmatprep.subr.mxu1 %v8284_v27 }
 0x165   :  { %847 = vmatpush1.msra.mxu0 %v8285_v29  ;;  %918 = vmatpush1.msra.mxu1 %v8286_v31 }
 0x166   :  { %848 = vmatprep.subr.mxu0 %v8287_v33  ;;  %919 = vmatprep.subr.mxu1 %v8288_v35 }
 0x167   :  { %849 = vmatpush1.msra.mxu0 %v8289_v37  ;;  %920 = vmatpush1.msra.mxu1 %v8290_v39 }
 0x168   :  { %850 = vmatprep.subr.mxu0 %v8291_v41  ;;  %921 = vmatprep.subr.mxu1 %v8292_v43 }
 0x169   :  { %851 = vmatpush1.msra.mxu0 %v8293_v44  ;;  %884 = vmatprep.mubr.f32.mxu0 %v8294_v5 }
 0x16a   :  { %922 = vmatpush1.msra.mxu1 %v8295_v1  ;;  %955 = vmatprep.mubr.f32.mxu1 %v8294_v5 }
 0x16b   :  { %995 = vmatprep.subr.mxu0 %v5541_v61  ;;  %1066 = vmatprep.subr.mxu1 %v8297_v16 }
 0x20a   :  { %v711_v59 = vpop.f32.mrf.mxu0  ;;  %v782_v22 = vpop.f32.mrf.mxu1 }
 0x20b   :  { %v787_v51 = vadd.f32 %v711_v59, %v8298_v3  ;;  %v789_v6 = vadd.f32 %v782_v22, %v5436_v18  ;;  %v5588_v22 = vld [vmem:[%s7996_s2 + $0x1a0] sm:$0xff] }
 0x20c   :  { %v713_v9 = vpop.f32.mrf.mxu0  ;;  %v784_v20 = vpop.f32.mrf.mxu1 }
 0x20d   :  { %v3945_v53 = vmul.f32 -1.442695, %v787_v51  ;;  %v788_v54 = vadd.f32 %v713_v9, %v8299_v4  ;;  %v790_v63 = vadd.f32 %v784_v20, %v5438_v47  ;;  %v5574_v4 = vld [vmem:[%s7996_s2 + $0x1c0] sm:$0xff] }
 0x20e   :  { %v5602_v20 = vld [vmem:[%s7996_s2 + $0x180] sm:$0xff] }
 0x20f   :  { %4209 = vpow2.f32 %v3945_v53  ;;  %v3946_v57 = vmul.f32 -1.442695, %v788_v54  ;;  %v3947_v10 = vmul.f32 -1.442695, %v790_v63  ;;  %v5560_v53 = vld [vmem:[%s7996_s2 + $0x1e0] sm:$0xff]  ;;  %v5581_v54 = vld [vmem:[%s7996_s2 + $0x1a8] sm:$0xff] }
 0x210   :  { %v5609_v63 = vld [vmem:[%s7996_s2 + $0x168] sm:$0xff] }
 0x211   :  { %4211 = vpow2.f32 %v3946_v57  ;;  %v5595_v57 = vld [vmem:[%s7996_s2 + $0x188] sm:$0xff] }
 0x212   :  { %4213 = vtanh.f32 %v789_v6  ;;  %v5616_v6 = vld [vmem:[%s7996_s2 + $0x160] sm:$0xff] }
 0x213   :  { %4215 = vpow2.f32 %v3947_v10  ;;  %v5623_v10 = vld [vmem:[%s7996_s2 + $0x148] sm:$0xff] }
 0x21c   :  { %v4210_v13 = vpop.eup %4209 }
 0x21d   :  { %v794_v17 = vadd.f32 1.0, %v4210_v13  ;;  %v5630_v13 = vld [vmem:[%s7996_s2 + $0x140] sm:$0xff] }
 0x21e   :  { %v4212_v21 = vpop.eup %4211 }
 0x21f   :  { %4217 = vrcp.f32 %v794_v17  ;;  %v800_v25 = vadd.f32 1.0, %v4212_v21  ;;  %v4214_v29 = vpop.eup %4213  ;;  %v5637_v17 = vld [vmem:[%s7996_s2 + $0x128] sm:$0xff]  ;;  %v5644_v21 = vld [vmem:[%s7996_s2 + $0x120] sm:$0xff] }
 0x220   :  { %v4216_v33 = vpop.eup %4215 }
 0x221   :  { %4219 = vrcp.f32 %v800_v25  ;;  %v807_v59 = vadd.f32 1.0, %v4216_v33  ;;  %v5651_v25 = vld [vmem:[%s7996_s2 + $0x108] sm:$0xff] }
 0x222   :  { %v5665_v33 = vld [vmem:[%s7996_s2 + $0xe8] sm:$0xff] }
 0x223   :  { %4221 = vrcp.f32 %v807_v59  ;;  %v5693_v59 = vld [vmem:[%s7996_s2 + $0xa8] sm:$0xff] }
 0x22c   :  { %v4218_v37 = vpop.eup %4217 }
 0x22d   :  { %v811_v41 = vmul.f32 %v4218_v37, %v4214_v29  ;;  %v5658_v29 = vld [vmem:[%s7996_s2 + $0x100] sm:$0xff] }
 0x22e   :  { %v4220_v44 = vpop.eup %4219  ;;  %v5672_v37 = vld [vmem:[%s7996_s2 + $0xe0] sm:$0xff] }
 0x22f   :  { %v810_v3 = vmul.f32 %v4220_v44, %v5467_v49  ;;  %v5567_v49 = vld [vmem:[%s7996_s2 + $0x1c8] sm:$0xff]  ;;  %v5686_v44 = vld [vmem:[%s7996_s2 + $0xc0] sm:$0xff] }
 0x230   :  { %v4222_v18 = vpop.eup %4221 }
 0x231   :  { %v5550_v47 = vadd.f32 %v811_v41, %v810_v3  ;;  %v5679_v41 = vld [vmem:[%s7996_s2 + $0xc8] sm:$0xff]  ;;  %v5700_v3 = vld [vmem:[%s7996_s2 + $0xa0] sm:$0xff] }
 0x233   :  { %4223 = vtanh.f32 %v5550_v47 }
 0x240   :  { %v4224_v51 = vpop.eup %4223 }
 0x241   :  { %v5553_v9 = vmul.f32 %v4224_v51, %v4222_v18  ;;  %v5707_v18 = vld [vmem:[%s7996_s2 + $0x88] sm:$0xff]  ;;  %v5714_v51 = vld [vmem:[%s7996_s2 + $0x80] sm:$0xff] }
 0x243   :  { %8300 = vst [vmem:[#allocation16_spill] sm:$0xff] %v5553_v9  ;;  %885 = vmatmul.mubr.f32.vlgmr.msra.gmra.mxu0 %v5553_v9  ;;  %956 = vmatmul.mubr.f32.vlgmr.msra.gmra.mxu1 %v5553_v9  ;;  %v5735_v9 = vld [vmem:[%s7996_s2 + $0x48] sm:$0xff] }
 0x244   :  { %996 = vmatpush1.msra.mxu0 %v5560_v53  ;;  %1067 = vmatpush1.msra.mxu1 %v5133_v32  ;;  %8303 = vst [vmem:[#allocation6_spill] sm:$0xff] %v5735_v9 }
 0x245   :  { %997 = vmatprep.subr.mxu0 %v5567_v49  ;;  %1068 = vmatprep.subr.mxu1 %v5139_v36 }
 0x246   :  { %998 = vmatpush1.msra.mxu0 %v5574_v4  ;;  %1069 = vmatpush1.msra.mxu1 %v5147_v38 }
 0x247   :  { %999 = vmatprep.subr.mxu0 %v5581_v54  ;;  %1070 = vmatprep.subr.mxu1 %v5154_v40 }
 0x248   :  { %1000 = vmatpush1.msra.mxu0 %v5588_v22  ;;  %1071 = vmatpush1.msra.mxu1 %v5160_v0 }
 0x249   :  { %1001 = vmatprep.subr.mxu0 %v5595_v57  ;;  %1072 = vmatprep.subr.mxu1 %v5167_v42 }
 0x24a   :  { %1002 = vmatpush1.msra.mxu0 %v5602_v20  ;;  %1073 = vmatpush1.msra.mxu1 %v5175_v46 }
 0x24b   :  { %1003 = vmatprep.subr.mxu0 %v5609_v63  ;;  %1074 = vmatprep.subr.mxu1 %v5182_v48 }
 0x24c   :  { %1004 = vmatpush1.msra.mxu0 %v5616_v6  ;;  %1075 = vmatpush1.msra.mxu1 %v5188_v14 }
 0x24d   :  { %1005 = vmatprep.subr.mxu0 %v5623_v10  ;;  %1076 = vmatprep.subr.mxu1 %v5195_v50 }
 0x24e   :  { %1006 = vmatpush1.msra.mxu0 %v5630_v13  ;;  %1077 = vmatpush1.msra.mxu1 %v5203_v52 }
 0x24f   :  { %1007 = vmatprep.subr.mxu0 %v5637_v17  ;;  %1078 = vmatprep.subr.mxu1 %v5210_v56 }
 0x250   :  { %1008 = vmatpush1.msra.mxu0 %v5644_v21  ;;  %1079 = vmatpush1.msra.mxu1 %v5216_v24 }
 0x251   :  { %1009 = vmatprep.subr.mxu0 %v5651_v25  ;;  %1080 = vmatprep.subr.mxu1 %v5223_v58 }
 0x252   :  { %1010 = vmatpush1.msra.mxu0 %v5658_v29  ;;  %1081 = vmatpush1.msra.mxu1 %v5231_v60 }
 0x253   :  { %1011 = vmatprep.subr.mxu0 %v5665_v33  ;;  %1082 = vmatprep.subr.mxu1 %v5238_v62 }
 0x254   :  { %1012 = vmatpush1.msra.mxu0 %v5672_v37  ;;  %1083 = vmatpush1.msra.mxu1 %v5244_v34 }
 0x255   :  { %1013 = vmatprep.subr.mxu0 %v5679_v41  ;;  %1084 = vmatprep.subr.mxu1 %v5251_v2 }
 0x256   :  { %1014 = vmatpush1.msra.mxu0 %v5686_v44  ;;  %1085 = vmatpush1.msra.mxu1 %v5259_v7 }
 0x257   :  { %1015 = vmatprep.subr.mxu0 %v5693_v59  ;;  %1086 = vmatprep.subr.mxu1 %v5266_v12 }
 0x258   :  { %1016 = vmatpush1.msra.mxu0 %v5700_v3  ;;  %1087 = vmatpush1.msra.mxu1 %v8274_v8 }
 0x259   :  { %1017 = vmatprep.subr.mxu0 %v5707_v18  ;;  %1088 = vmatprep.subr.mxu1 %v8276_v11 }
 0x25a   :  { %1018 = vmatpush1.msra.mxu0 %v5714_v51  ;;  %1089 = vmatpush1.msra.mxu1 %v8278_v15 }
 0x25b   :  { %1019 = vmatprep.subr.mxu0 %v5721_v28  ;;  %1090 = vmatprep.subr.mxu1 %v8280_v19  ;;  %v8311_v19 = vld [vmem:[#allocation42_spill] sm:$0xff] }
 0x25c   :  { %1020 = vmatpush1.msra.mxu0 %v5728_v26  ;;  %1091 = vmatpush1.msra.mxu1 %v8282_v23 }
 0x25d   :  { %1021 = vmatprep.subr.mxu0 %v5735_v9  ;;  %1092 = vmatprep.subr.mxu1 %v8284_v27  ;;  %v5756_v27 = vld [vmem:[%s7996_s2 + $0x20] sm:$0xff] }
 0x25e   :  { %1022 = vmatpush1.msra.mxu0 %v5742_v30  ;;  %1093 = vmatpush1.msra.mxu1 %v8286_v31  ;;  %8306 = vst [vmem:[#allocation9_spill] sm:$0xff] %v5756_v27  ;;  %v5763_v31 = vld [vmem:[%s7996_s2 + $0x8] sm:$0xff]  ;;  %v8310_v30 = vld [vmem:[#allocation31_spill] sm:$0xff] }
 0x25f   :  { %1023 = vmatprep.subr.mxu0 %v5749_v55  ;;  %1094 = vmatprep.subr.mxu1 %v8288_v35  ;;  %8307 = vst [vmem:[#allocation10_spill] sm:$0xff] %v5763_v31  ;;  %v5770_v35 = vld [vmem:[%s7996_s2] sm:$0xff] }
 0x260   :  { %1024 = vmatpush1.msra.mxu0 %v5756_v27  ;;  %1095 = vmatpush1.msra.mxu1 %v8290_v39  ;;  %8308 = vst [vmem:[#allocation11_spill] sm:$0xff] %v5770_v35  ;;  %v8309_v39 = vld [vmem:[#allocation30_spill] sm:$0xff] }
 0x261   :  { %1025 = vmatprep.subr.mxu0 %v5763_v31  ;;  %1096 = vmatprep.subr.mxu1 %v8292_v43 }
 0x262   :  { %1026 = vmatpush1.msra.mxu0 %v5770_v35  ;;  %1059 = vmatprep.mubr.f32.mxu0 %v8294_v5 }
 0x263   :  { %1097 = vmatpush1.msra.mxu1 %v8295_v1  ;;  %1130 = vmatprep.mubr.f32.mxu1 %v8294_v5 }
 0x264   :  { %1170 = vmatprep.subr.mxu0 %v5541_v61  ;;  %1241 = vmatprep.subr.mxu1 %v8297_v16 }
 0x303   :  { %v886_v31 = vpop.f32.mrf.mxu0  ;;  %v957_v23 = vpop.f32.mrf.mxu1 }
 0x304   :  { %v962_v43 = vadd.f32 %v886_v31, %v8309_v39  ;;  %v964_v5 = vadd.f32 %v957_v23, %v8311_v19 }
 0x305   :  { %v888_v27 = vpop.f32.mrf.mxu0  ;;  %v959_v26 = vpop.f32.mrf.mxu1 }
 0x306   :  { %v3948_v55 = vmul.f32 -1.442695, %v962_v43  ;;  %v963_v9 = vadd.f32 %v888_v27, %v8310_v30  ;;  %v965_v1 = vadd.f32 %v959_v26, %v5442_v45 }
 0x308   :  { %4225 = vpow2.f32 %v3948_v55  ;;  %v3949_v35 = vmul.f32 -1.442695, %v963_v9  ;;  %v3950_v28 = vmul.f32 -1.442695, %v965_v1  ;;  %v8334_v1 = vld [vmem:[#allocation33_spill] sm:$0xff] }
 0x30a   :  { %4227 = vpow2.f32 %v3949_v35 }
 0x30b   :  { %4229 = vtanh.f32 %v964_v5 }
 0x30c   :  { %4231 = vpow2.f32 %v3950_v28 }
 0x315   :  { %v4226_v61 = vpop.eup %4225 }
 0x316   :  { %v969_v15 = vadd.f32 1.0, %v4226_v61 }
 0x317   :  { %v4228_v16 = vpop.eup %4227 }
 0x318   :  { %4233 = vrcp.f32 %v969_v15  ;;  %v975_v31 = vadd.f32 1.0, %v4228_v16  ;;  %v4230_v39 = vpop.eup %4229 }
 0x319   :  { %v4232_v30 = vpop.eup %4231 }
 0x31a   :  { %4235 = vrcp.f32 %v975_v31  ;;  %v982_v35 = vadd.f32 1.0, %v4232_v30 }
 0x31c   :  { %4237 = vrcp.f32 %v982_v35 }
 0x325   :  { %v4234_v55 = vpop.eup %4233 }
 0x326   :  { %v986_v27 = vmul.f32 %v4234_v55, %v4230_v39  ;;  %v8335_v39 = vld [vmem:[#allocation44_spill] sm:$0xff]  ;;  %v8336_v55 = vld [vmem:[#allocation43_spill] sm:$0xff] }
 0x327   :  { %v4236_v43 = vpop.eup %4235 }
 0x328   :  { %v985_v9 = vmul.f32 %v4236_v43, %v5550_v47 }
 0x329   :  { %v4238_v26 = vpop.eup %4237 }
 0x32a   :  { %v5783_v45 = vadd.f32 %v986_v27, %v985_v9 }
 0x32c   :  { %4239 = vtanh.f32 %v5783_v45 }
 0x339   :  { %v4240_v19 = vpop.eup %4239 }
 0x33a   :  { %v5786_v23 = vmul.f32 %v4240_v19, %v4238_v26 }
 0x33c   :  { %8312 = vst [vmem:[#allocation12_spill] sm:$0xff] %v5786_v23  ;;  %1060 = vmatmul.mubr.f32.vlgmr.msra.gmra.mxu0 %v5786_v23  ;;  %1131 = vmatmul.mubr.f32.vlgmr.msra.gmra.mxu1 %v5786_v23  ;;  %v6073_v23 = vld [vmem:[%s7996_s2 + $0x30] sm:$0xff] }
 0x33d   :  { %1171 = vmatpush1.msra.mxu0 %v5560_v53  ;;  %1242 = vmatpush1.msra.mxu1 %v5133_v32  ;;  %v8313_v32 = vld [vmem:[#allocation18_spill] sm:$0xff] }
 0x33e   :  { %1172 = vmatprep.subr.mxu0 %v5567_v49  ;;  %1243 = vmatprep.subr.mxu1 %v5139_v36  ;;  %v8314_v36 = vld [vmem:[#allocation5_spill] sm:$0xff]  ;;  %8344 = vst [vmem:[#allocation18_spill] sm:$0xff] %v6073_v23 }
 0x33f   :  { %1173 = vmatpush1.msra.mxu0 %v5574_v4  ;;  %1244 = vmatpush1.msra.mxu1 %v5147_v38  ;;  %v8315_v38 = vld [vmem:[#allocation19_spill] sm:$0xff] }
 0x340   :  { %1174 = vmatprep.subr.mxu0 %v5581_v54  ;;  %1245 = vmatprep.subr.mxu1 %v5154_v40  ;;  %v8316_v40 = vld [vmem:[#allocation17_spill] sm:$0xff] }
 0x341   :  { %1175 = vmatpush1.msra.mxu0 %v5588_v22  ;;  %1246 = vmatpush1.msra.mxu1 %v5160_v0  ;;  %v8317_v0 = vld [vmem:[#allocation20_spill] sm:$0xff] }
 0x342   :  { %1176 = vmatprep.subr.mxu0 %v5595_v57  ;;  %1247 = vmatprep.subr.mxu1 %v5167_v42  ;;  %v8318_v42 = vld [vmem:[#allocation6_spill] sm:$0xff] }
 0x343   :  { %1177 = vmatpush1.msra.mxu0 %v5602_v20  ;;  %1248 = vmatpush1.msra.mxu1 %v5175_v46  ;;  %v8319_v46 = vld [vmem:[#allocation21_spill] sm:$0xff] }
 0x344   :  { %1178 = vmatprep.subr.mxu0 %v5609_v63  ;;  %1249 = vmatprep.subr.mxu1 %v5182_v48  ;;  %v8320_v48 = vld [vmem:[#allocation7_spill] sm:$0xff] }
 0x345   :  { %1179 = vmatpush1.msra.mxu0 %v5616_v6  ;;  %1250 = vmatpush1.msra.mxu1 %v5188_v14  ;;  %v8321_v14 = vld [vmem:[#allocation22_spill] sm:$0xff] }
 0x346   :  { %1180 = vmatprep.subr.mxu0 %v5623_v10  ;;  %1251 = vmatprep.subr.mxu1 %v5195_v50  ;;  %v8322_v50 = vld [vmem:[#allocation8_spill] sm:$0xff] }
 0x347   :  { %1181 = vmatpush1.msra.mxu0 %v5630_v13  ;;  %1252 = vmatpush1.msra.mxu1 %v5203_v52  ;;  %v8323_v52 = vld [vmem:[#allocation23_spill] sm:$0xff] }
 0x348   :  { %1182 = vmatprep.subr.mxu0 %v5637_v17  ;;  %1253 = vmatprep.subr.mxu1 %v5210_v56  ;;  %v8324_v56 = vld [vmem:[#allocation9_spill] sm:$0xff] }
 0x349   :  { %1183 = vmatpush1.msra.mxu0 %v5644_v21  ;;  %1254 = vmatpush1.msra.mxu1 %v5216_v24  ;;  %v8325_v24 = vld [vmem:[#allocation24_spill] sm:$0xff] }
 0x34a   :  { %1184 = vmatprep.subr.mxu0 %v5651_v25  ;;  %1255 = vmatprep.subr.mxu1 %v5223_v58  ;;  %v8326_v58 = vld [vmem:[#allocation10_spill] sm:$0xff] }
 0x34b   :  { %1185 = vmatpush1.msra.mxu0 %v5658_v29  ;;  %1256 = vmatpush1.msra.mxu1 %v5231_v60  ;;  %v8327_v60 = vld [vmem:[#allocation25_spill] sm:$0xff] }
 0x34c   :  { %1186 = vmatprep.subr.mxu0 %v5665_v33  ;;  %1257 = vmatprep.subr.mxu1 %v5238_v62  ;;  %v8328_v62 = vld [vmem:[#allocation11_spill] sm:$0xff] }
 0x34d   :  { %1187 = vmatpush1.msra.mxu0 %v5672_v37  ;;  %1258 = vmatpush1.msra.mxu1 %v5244_v34  ;;  %v8329_v34 = vmov 0.0  }
 0x34e   :  { %1188 = vmatprep.subr.mxu0 %v5679_v41  ;;  %1259 = vmatprep.subr.mxu1 %v5251_v2  ;;  %v8330_v2 = vld [vmem:[#allocation26_spill] sm:$0xff] }
 0x34f   :  { %1189 = vmatpush1.msra.mxu0 %v5686_v44  ;;  %1260 = vmatpush1.msra.mxu1 %v5259_v7  ;;  %v8331_v7 = vld [vmem:[#allocation4_spill] sm:$0xff] }
 0x350   :  { %1190 = vmatprep.subr.mxu0 %v5693_v59  ;;  %1261 = vmatprep.subr.mxu1 %v5266_v12  ;;  %v5858_v12 = vld [vmem:[%s7996_s2 + $0x1f8] sm:$0xff] }
 0x351   :  { %1191 = vmatpush1.msra.mxu0 %v5700_v3  ;;  %1262 = vmatpush1.msra.mxu1 %v8274_v8  ;;  %8332 = vst [vmem:[#allocation13_spill] sm:$0xff] %v5858_v12  ;;  %v8333_v8 = vld [vmem:[#allocation32_spill] sm:$0xff] }
 0x352   :  { %1192 = vmatprep.subr.mxu0 %v5707_v18  ;;  %1263 = vmatprep.subr.mxu1 %v8276_v11 }
 0x353   :  { %1193 = vmatpush1.msra.mxu0 %v5714_v51  ;;  %1264 = vmatpush1.msra.mxu1 %v8313_v32 }
 0x354   :  { %1194 = vmatprep.subr.mxu0 %v8314_v36  ;;  %1265 = vmatprep.subr.mxu1 %v8315_v38 }
 0x355   :  { %1195 = vmatpush1.msra.mxu0 %v8316_v40  ;;  %1266 = vmatpush1.msra.mxu1 %v8317_v0 }
 0x356   :  { %1196 = vmatprep.subr.mxu0 %v8318_v42  ;;  %1267 = vmatprep.subr.mxu1 %v8319_v46 }
 0x357   :  { %1197 = vmatpush1.msra.mxu0 %v8320_v48  ;;  %1268 = vmatpush1.msra.mxu1 %v8321_v14 }
 0x358   :  { %1198 = vmatprep.subr.mxu0 %v8322_v50  ;;  %1269 = vmatprep.subr.mxu1 %v8323_v52 }
 0x359   :  { %1199 = vmatpush1.msra.mxu0 %v8324_v56  ;;  %1270 = vmatpush1.msra.mxu1 %v8325_v24 }
 0x35a   :  { %1200 = vmatprep.subr.mxu0 %v8326_v58  ;;  %1271 = vmatprep.subr.mxu1 %v8327_v60 }
 0x35b   :  { %1201 = vmatpush1.msra.mxu0 %v8328_v62  ;;  %1234 = vmatprep.mubr.f32.mxu0 %v8329_v34 }
 0x35c   :  { %1272 = vmatpush1.msra.mxu1 %v8330_v2  ;;  %1305 = vmatprep.mubr.f32.mxu1 %v8329_v34 }
 0x35d   :  { %1345 = vmatprep.subr.mxu0 %v8331_v7  ;;  %1416 = vmatprep.subr.mxu1 %v5858_v12 }
 0x3fc   :  { %v1061_v28 = vpop.f32.mrf.mxu0  ;;  %v1132_v47 = vpop.f32.mrf.mxu1 }
 0x3fd   :  { %v1137_v11 = vadd.f32 %v1061_v28, %v8333_v8  ;;  %v1139_v27 = vadd.f32 %v1132_v47, %v8336_v55  ;;  %v5919_v47 = vld [vmem:[%s7996_s2 + $0x190] sm:$0xff]  ;;  %v5954_v55 = vld [vmem:[%s7996_s2 + $0x138] sm:$0xff] }
 0x3fe   :  { %v1063_v15 = vpop.f32.mrf.mxu0  ;;  %v1134_v31 = vpop.f32.mrf.mxu1 }
 0x3ff   :  { %v3951_v5 = vmul.f32 -1.442695, %v1137_v11  ;;  %v1138_v61 = vadd.f32 %v1063_v15, %v8334_v1  ;;  %v1140_v30 = vadd.f32 %v1134_v31, %v8335_v39  ;;  %v5877_v11 = vld [vmem:[%s7996_s2 + $0x1f0] sm:$0xff]  ;;  %v5940_v39 = vld [vmem:[%s7996_s2 + $0x158] sm:$0xff] }
 0x400   :  { %v5891_v15 = vld [vmem:[%s7996_s2 + $0x1d0] sm:$0xff] }
 0x401   :  { %4241 = vpow2.f32 %v3951_v5  ;;  %v3952_v16 = vmul.f32 -1.442695, %v1138_v61  ;;  %v3953_v43 = vmul.f32 -1.442695, %v1140_v30  ;;  %v5898_v5 = vld [vmem:[%s7996_s2 + $0x1b8] sm:$0xff]  ;;  %v5905_v1 = vld [vmem:[%s7996_s2 + $0x1b0] sm:$0xff] }
 0x402   :  { %v5912_v61 = vld [vmem:[%s7996_s2 + $0x198] sm:$0xff]  ;;  %v5933_v31 = vld [vmem:[%s7996_s2 + $0x170] sm:$0xff] }
 0x403   :  { %4243 = vpow2.f32 %v3952_v16  ;;  %v5926_v16 = vld [vmem:[%s7996_s2 + $0x178] sm:$0xff]  ;;  %v5947_v30 = vld [vmem:[%s7996_s2 + $0x150] sm:$0xff] }
 0x404   :  { %4245 = vtanh.f32 %v1139_v27  ;;  %v5961_v27 = vld [vmem:[%s7996_s2 + $0x130] sm:$0xff] }
 0x405   :  { %4247 = vpow2.f32 %v3953_v43  ;;  %v5968_v43 = vld [vmem:[%s7996_s2 + $0x118] sm:$0xff] }
 0x40e   :  { %v4242_v35 = vpop.eup %4241 }
 0x40f   :  { %v1144_v9 = vadd.f32 1.0, %v4242_v35  ;;  %v5975_v35 = vld [vmem:[%s7996_s2 + $0x110] sm:$0xff] }
 0x410   :  { %v4244_v26 = vpop.eup %4243 }
 0x411   :  { %4249 = vrcp.f32 %v1144_v9  ;;  %v1150_v19 = vadd.f32 1.0, %v4244_v26  ;;  %v4246_v32 = vpop.eup %4245  ;;  %v5982_v9 = vld [vmem:[%s7996_s2 + $0xf8] sm:$0xff]  ;;  %v5989_v26 = vld [vmem:[%s7996_s2 + $0xf0] sm:$0xff] }
 0x412   :  { %v4248_v38 = vpop.eup %4247 }
 0x413   :  { %4251 = vrcp.f32 %v1150_v19  ;;  %v1157_v52 = vadd.f32 1.0, %v4248_v38  ;;  %v5996_v19 = vld [vmem:[%s7996_s2 + $0xd8] sm:$0xff] }
 0x414   :  { %v6010_v38 = vld [vmem:[%s7996_s2 + $0xb8] sm:$0xff] }
 0x415   :  { %4253 = vrcp.f32 %v1157_v52  ;;  %v6038_v52 = vld [vmem:[%s7996_s2 + $0x78] sm:$0xff] }
 0x416   :  { %8339 = vst [vmem:[#allocation28_spill] sm:$0xff] %v6038_v52 }
 0x41e   :  { %v4250_v0 = vpop.eup %4249 }
 0x41f   :  { %v1161_v46 = vmul.f32 %v4250_v0, %v4246_v32  ;;  %v6003_v32 = vld [vmem:[%s7996_s2 + $0xd0] sm:$0xff] }
 0x420   :  { %v4252_v14 = vpop.eup %4251  ;;  %v6017_v0 = vld [vmem:[%s7996_s2 + $0xb0] sm:$0xff] }
 0x421   :  { %v1160_v24 = vmul.f32 %v4252_v14, %v5783_v45  ;;  %v5884_v45 = vld [vmem:[%s7996_s2 + $0x1d8] sm:$0xff]  ;;  %v6031_v14 = vld [vmem:[%s7996_s2 + $0x90] sm:$0xff] }
 0x422   :  { %v4254_v2 = vpop.eup %4253  ;;  %8338 = vst [vmem:[#allocation15_spill] sm:$0xff] %v6031_v14 }
 0x423   :  { %v5866_v60 = vadd.f32 %v1161_v46, %v1160_v24  ;;  %v6024_v46 = vld [vmem:[%s7996_s2 + $0x98] sm:$0xff]  ;;  %v6045_v24 = vld [vmem:[%s7996_s2 + $0x70] sm:$0xff] }
 0x424   :  { %8340 = vst [vmem:[#allocation29_spill] sm:$0xff] %v6045_v24 }
 0x425   :  { %4255 = vtanh.f32 %v5866_v60 }
 0x432   :  { %v4256_v28 = vpop.eup %4255 }
 0x433   :  { %v5869_v8 = vmul.f32 %v4256_v28, %v4254_v2  ;;  %v6052_v2 = vld [vmem:[%s7996_s2 + $0x58] sm:$0xff]  ;;  %v6059_v28 = vld [vmem:[%s7996_s2 + $0x50] sm:$0xff] }
 0x434   :  { %8341 = vst [vmem:[#allocation30_spill] sm:$0xff] %v6052_v2  ;;  %8342 = vst [vmem:[#allocation31_spill] sm:$0xff] %v6059_v28 }
 0x435   :  { %8337 = vst [vmem:[#allocation14_spill] sm:$0xff] %v5869_v8  ;;  %1235 = vmatmul.mubr.f32.vlgmr.msra.gmra.mxu0 %v5869_v8  ;;  %1306 = vmatmul.mubr.f32.vlgmr.msra.gmra.mxu1 %v5869_v8  ;;  %v6066_v8 = vld [vmem:[%s7996_s2 + $0x38] sm:$0xff] }
 0x436   :  { %1346 = vmatpush1.msra.mxu0 %v5560_v53  ;;  %1417 = vmatpush1.msra.mxu1 %v5877_v11  ;;  %8343 = vst [vmem:[#allocation42_spill] sm:$0xff] %v6066_v8 }
 0x437   :  { %1347 = vmatprep.subr.mxu0 %v5567_v49  ;;  %1418 = vmatprep.subr.mxu1 %v5884_v45 }
 0x438   :  { %1348 = vmatpush1.msra.mxu0 %v5574_v4  ;;  %1419 = vmatpush1.msra.mxu1 %v5891_v15 }
 0x439   :  { %1349 = vmatprep.subr.mxu0 %v5581_v54  ;;  %1420 = vmatprep.subr.mxu1 %v5898_v5 }
 0x43a   :  { %1350 = vmatpush1.msra.mxu0 %v5588_v22  ;;  %1421 = vmatpush1.msra.mxu1 %v5905_v1 }
 0x43b   :  { %1351 = vmatprep.subr.mxu0 %v5595_v57  ;;  %1422 = vmatprep.subr.mxu1 %v5912_v61 }
 0x43c   :  { %1352 = vmatpush1.msra.mxu0 %v5602_v20  ;;  %1423 = vmatpush1.msra.mxu1 %v5919_v47 }
 0x43d   :  { %1353 = vmatprep.subr.mxu0 %v5609_v63  ;;  %1424 = vmatprep.subr.mxu1 %v5926_v16 }
 0x43e   :  { %1354 = vmatpush1.msra.mxu0 %v5616_v6  ;;  %1425 = vmatpush1.msra.mxu1 %v5933_v31 }
 0x43f   :  { %1355 = vmatprep.subr.mxu0 %v5623_v10  ;;  %1426 = vmatprep.subr.mxu1 %v5940_v39 }
 0x440   :  { %1356 = vmatpush1.msra.mxu0 %v5630_v13  ;;  %1427 = vmatpush1.msra.mxu1 %v5947_v30 }
 0x441   :  { %1357 = vmatprep.subr.mxu0 %v5637_v17  ;;  %1428 = vmatprep.subr.mxu1 %v5954_v55 }
 0x442   :  { %1358 = vmatpush1.msra.mxu0 %v5644_v21  ;;  %1429 = vmatpush1.msra.mxu1 %v5961_v27 }
 0x443   :  { %1359 = vmatprep.subr.mxu0 %v5651_v25  ;;  %1430 = vmatprep.subr.mxu1 %v5968_v43 }
 0x444   :  { %1360 = vmatpush1.msra.mxu0 %v5658_v29  ;;  %1431 = vmatpush1.msra.mxu1 %v5975_v35 }
 0x445   :  { %1361 = vmatprep.subr.mxu0 %v5665_v33  ;;  %1432 = vmatprep.subr.mxu1 %v5982_v9 }
 0x446   :  { %1362 = vmatpush1.msra.mxu0 %v5672_v37  ;;  %1433 = vmatpush1.msra.mxu1 %v5989_v26 }
 0x447   :  { %1363 = vmatprep.subr.mxu0 %v5679_v41  ;;  %1434 = vmatprep.subr.mxu1 %v5996_v19 }
 0x448   :  { %1364 = vmatpush1.msra.mxu0 %v5686_v44  ;;  %1435 = vmatpush1.msra.mxu1 %v6003_v32 }
 0x449   :  { %1365 = vmatprep.subr.mxu0 %v5693_v59  ;;  %1436 = vmatprep.subr.mxu1 %v6010_v38 }
 0x44a   :  { %1366 = vmatpush1.msra.mxu0 %v5700_v3  ;;  %1437 = vmatpush1.msra.mxu1 %v6017_v0 }
 0x44b   :  { %1367 = vmatprep.subr.mxu0 %v5707_v18  ;;  %1438 = vmatprep.subr.mxu1 %v6024_v46 }
 0x44c   :  { %1368 = vmatpush1.msra.mxu0 %v5714_v51  ;;  %1439 = vmatpush1.msra.mxu1 %v6031_v14 }
 0x44d   :  { %1369 = vmatprep.subr.mxu0 %v8314_v36  ;;  %1440 = vmatprep.subr.mxu1 %v6038_v52  ;;  %v8350_v52 = vld [vmem:[#allocation45_spill] sm:$0xff] }
 0x44e   :  { %1370 = vmatpush1.msra.mxu0 %v8316_v40  ;;  %1441 = vmatpush1.msra.mxu1 %v6045_v24  ;;  %v8349_v40 = vld [vmem:[#allocation46_spill] sm:$0xff] }
 0x44f   :  { %1371 = vmatprep.subr.mxu0 %v8318_v42  ;;  %1442 = vmatprep.subr.mxu1 %v6052_v2 }
 0x450   :  { %1372 = vmatpush1.msra.mxu0 %v8320_v48  ;;  %1443 = vmatpush1.msra.mxu1 %v6059_v28  ;;  %v8348_v28 = vld [vmem:[#allocation35_spill] sm:$0xff] }
 0x451   :  { %1373 = vmatprep.subr.mxu0 %v8322_v50  ;;  %1444 = vmatprep.subr.mxu1 %v6066_v8  ;;  %v6080_v50 = vld [vmem:[%s7996_s2 + $0x18] sm:$0xff] }
 0x452   :  { %1374 = vmatpush1.msra.mxu0 %v8324_v56  ;;  %1445 = vmatpush1.msra.mxu1 %v6073_v23  ;;  %8345 = vst [vmem:[#allocation19_spill] sm:$0xff] %v6080_v50  ;;  %v6088_v56 = vld [vmem:[%s7996_s2 + $0x10] sm:$0xff] }
 0x453   :  { %1375 = vmatprep.subr.mxu0 %v8326_v58  ;;  %1446 = vmatprep.subr.mxu1 %v6080_v50  ;;  %8346 = vst [vmem:[#allocation20_spill] sm:$0xff] %v6088_v56  ;;  %v8347_v23 = vld [vmem:[#allocation34_spill] sm:$0xff] }
 0x454   :  { %1376 = vmatpush1.msra.mxu0 %v8328_v62  ;;  %1409 = vmatprep.mubr.f32.mxu0 %v8329_v34 }
 0x455   :  { %1447 = vmatpush1.msra.mxu1 %v6088_v56  ;;  %1480 = vmatprep.mubr.f32.mxu1 %v8329_v34 }
 0x456   :  { %1520 = vmatprep.subr.mxu0 %v8331_v7  ;;  %1591 = vmatprep.subr.mxu1 %v5858_v12 }
 0x4f5   :  { %v1236_v58 = vpop.f32.mrf.mxu0  ;;  %v1307_v2 = vpop.f32.mrf.mxu1 }
 0x4f6   :  { %v1312_v50 = vadd.f32 %v1236_v58, %v8347_v23  ;;  %v1314_v34 = vadd.f32 %v1307_v2, %v8350_v52  ;;  %v8356_v52 = vld [vmem:[#allocation29_spill] sm:$0xff]  ;;  %v8358_v2 = vld [vmem:[#allocation30_spill] sm:$0xff] }
 0x4f7   :  { %v1238_v8 = vpop.f32.mrf.mxu0  ;;  %v1309_v24 = vpop.f32.mrf.mxu1 }
 0x4f8   :  { %v3954_v62 = vmul.f32 -1.442695, %v1312_v50  ;;  %v1313_v48 = vadd.f32 %v1238_v8, %v8348_v28  ;;  %v1315_v56 = vadd.f32 %v1309_v24, %v8349_v40  ;;  %v8357_v24 = vld [vmem:[#allocation6_spill] sm:$0xff] }
 0x4fa   :  { %4257 = vpow2.f32 %v3954_v62  ;;  %v3955_v42 = vmul.f32 -1.442695, %v1313_v48  ;;  %v3956_v36 = vmul.f32 -1.442695, %v1315_v56 }
 0x4fc   :  { %4259 = vpow2.f32 %v3955_v42 }
 0x4fd   :  { %4261 = vtanh.f32 %v1314_v34 }
 0x4fe   :  { %4263 = vpow2.f32 %v3956_v36  ;;  %v8352_v36 = vld [vmem:[#allocation15_spill] sm:$0xff] }
 0x507   :  { %v4258_v7 = vpop.eup %4257 }
 0x508   :  { %v1319_v14 = vadd.f32 1.0, %v4258_v7 }
 0x509   :  { %v4260_v12 = vpop.eup %4259 }
 0x50a   :  { %4265 = vrcp.f32 %v1319_v14  ;;  %v1325_v23 = vadd.f32 1.0, %v4260_v12  ;;  %v4262_v50 = vpop.eup %4261  ;;  %v8353_v12 = vld [vmem:[#allocation5_spill] sm:$0xff] }
 0x50b   :  { %v4264_v58 = vpop.eup %4263  ;;  %v8355_v14 = vld [vmem:[#allocation17_spill] sm:$0xff] }
 0x50c   :  { %4267 = vrcp.f32 %v1325_v23  ;;  %v1332_v42 = vadd.f32 1.0, %v4264_v58  ;;  %v8359_v23 = vld [vmem:[#allocation7_spill] sm:$0xff]  ;;  %v8361_v58 = vld [vmem:[#allocation8_spill] sm:$0xff] }
 0x50e   :  { %4269 = vrcp.f32 %v1332_v42  ;;  %v8365_v42 = vld [vmem:[#allocation10_spill] sm:$0xff] }
 0x517   :  { %v4266_v62 = vpop.eup %4265 }
 0x518   :  { %v1336_v8 = vmul.f32 %v4266_v62, %v4262_v50  ;;  %v8360_v50 = vld [vmem:[#allocation31_spill] sm:$0xff]  ;;  %v8362_v62 = vld [vmem:[#allocation42_spill] sm:$0xff] }
 0x519   :  { %v4268_v48 = vpop.eup %4267 }
 0x51a   :  { %v1335_v28 = vmul.f32 %v4268_v48, %v5866_v60  ;;  %v8354_v60 = vld [vmem:[#allocation28_spill] sm:$0xff]  ;;  %v8364_v48 = vld [vmem:[#allocation18_spill] sm:$0xff] }
 0x51b   :  { %v4270_v56 = vpop.eup %4269 }
 0x51c   :  { %v6099_v40 = vadd.f32 %v1336_v8, %v1335_v28  ;;  %v8363_v8 = vld [vmem:[#allocation9_spill] sm:$0xff]  ;;  %v8366_v28 = vld [vmem:[#allocation19_spill] sm:$0xff] }
 0x51e   :  { %4271 = vtanh.f32 %v6099_v40 }
 0x52b   :  { %v4272_v34 = vpop.eup %4271 }
 0x52c   :  { %v6102_v7 = vmul.f32 %v4272_v34, %v4270_v56  ;;  %v8367_v56 = vld [vmem:[#allocation11_spill] sm:$0xff]  ;;  %v8368_v34 = vmov 0.0  }
 0x52e   :  { %8351 = vst [vmem:[#allocation21_spill] sm:$0xff] %v6102_v7  ;;  %1410 = vmatmul.mubr.f32.vlgmr.msra.gmra.mxu0 %v6102_v7  ;;  %1481 = vmatmul.mubr.f32.vlgmr.msra.gmra.mxu1 %v6102_v7  ;;  %v8369_v7 = vld [vmem:[#allocation20_spill] sm:$0xff] }
 0x52f   :  { %1521 = vmatpush1.msra.mxu0 %v5560_v53  ;;  %1592 = vmatpush1.msra.mxu1 %v5877_v11 }
 0x530   :  { %1522 = vmatprep.subr.mxu0 %v5567_v49  ;;  %1593 = vmatprep.subr.mxu1 %v5884_v45 }
 0x531   :  { %1523 = vmatpush1.msra.mxu0 %v5574_v4  ;;  %1594 = vmatpush1.msra.mxu1 %v5891_v15 }
 0x532   :  { %1524 = vmatprep.subr.mxu0 %v5581_v54  ;;  %1595 = vmatprep.subr.mxu1 %v5898_v5 }
 0x533   :  { %1525 = vmatpush1.msra.mxu0 %v5588_v22  ;;  %1596 = vmatpush1.msra.mxu1 %v5905_v1 }
 0x534   :  { %1526 = vmatprep.subr.mxu0 %v5595_v57  ;;  %1597 = vmatprep.subr.mxu1 %v5912_v61 }
 0x535   :  { %1527 = vmatpush1.msra.mxu0 %v5602_v20  ;;  %1598 = vmatpush1.msra.mxu1 %v5919_v47 }
 0x536   :  { %1528 = vmatprep.subr.mxu0 %v5609_v63  ;;  %1599 = vmatprep.subr.mxu1 %v5926_v16 }
 0x537   :  { %1529 = vmatpush1.msra.mxu0 %v5616_v6  ;;  %1600 = vmatpush1.msra.mxu1 %v5933_v31 }
 0x538   :  { %1530 = vmatprep.subr.mxu0 %v5623_v10  ;;  %1601 = vmatprep.subr.mxu1 %v5940_v39 }
 0x539   :  { %1531 = vmatpush1.msra.mxu0 %v5630_v13  ;;  %1602 = vmatpush1.msra.mxu1 %v5947_v30 }
 0x53a   :  { %1532 = vmatprep.subr.mxu0 %v5637_v17  ;;  %1603 = vmatprep.subr.mxu1 %v5954_v55 }
 0x53b   :  { %1533 = vmatpush1.msra.mxu0 %v5644_v21  ;;  %1604 = vmatpush1.msra.mxu1 %v5961_v27 }
 0x53c   :  { %1534 = vmatprep.subr.mxu0 %v5651_v25  ;;  %1605 = vmatprep.subr.mxu1 %v5968_v43 }
 0x53d   :  { %1535 = vmatpush1.msra.mxu0 %v5658_v29  ;;  %1606 = vmatpush1.msra.mxu1 %v5975_v35 }
 0x53e   :  { %1536 = vmatprep.subr.mxu0 %v5665_v33  ;;  %1607 = vmatprep.subr.mxu1 %v5982_v9 }
 0x53f   :  { %1537 = vmatpush1.msra.mxu0 %v5672_v37  ;;  %1608 = vmatpush1.msra.mxu1 %v5989_v26 }
 0x540   :  { %1538 = vmatprep.subr.mxu0 %v5679_v41  ;;  %1609 = vmatprep.subr.mxu1 %v5996_v19 }
 0x541   :  { %1539 = vmatpush1.msra.mxu0 %v5686_v44  ;;  %1610 = vmatpush1.msra.mxu1 %v6003_v32 }
 0x542   :  { %1540 = vmatprep.subr.mxu0 %v5693_v59  ;;  %1611 = vmatprep.subr.mxu1 %v6010_v38 }
 0x543   :  { %1541 = vmatpush1.msra.mxu0 %v5700_v3  ;;  %1612 = vmatpush1.msra.mxu1 %v6017_v0 }
 0x544   :  { %1542 = vmatprep.subr.mxu0 %v5707_v18  ;;  %1613 = vmatprep.subr.mxu1 %v6024_v46 }
 0x545   :  { %1543 = vmatpush1.msra.mxu0 %v5714_v51  ;;  %1614 = vmatpush1.msra.mxu1 %v8352_v36 }
 0x546   :  { %1544 = vmatprep.subr.mxu0 %v8353_v12  ;;  %1615 = vmatprep.subr.mxu1 %v8354_v60  ;;  %v8375_v60 = vld [vmem:[#allocation47_spill] sm:$0xff] }
 0x547   :  { %1545 = vmatpush1.msra.mxu0 %v8355_v14  ;;  %1616 = vmatpush1.msra.mxu1 %v8356_v52  ;;  %v8374_v14 = vld [vmem:[#allocation48_spill] sm:$0xff] }
 0x548   :  { %1546 = vmatprep.subr.mxu0 %v8357_v24  ;;  %1617 = vmatprep.subr.mxu1 %v8358_v2 }
 0x549   :  { %1547 = vmatpush1.msra.mxu0 %v8359_v23  ;;  %1618 = vmatpush1.msra.mxu1 %v8360_v50  ;;  %v8370_v50 = vld [vmem:[#allocation4_spill] sm:$0xff] }
 0x54a   :  { %1548 = vmatprep.subr.mxu0 %v8361_v58  ;;  %1619 = vmatprep.subr.mxu1 %v8362_v62  ;;  %v8371_v58 = vld [vmem:[#allocation13_spill] sm:$0xff] }
 0x54b   :  { %1549 = vmatpush1.msra.mxu0 %v8363_v8  ;;  %1620 = vmatpush1.msra.mxu1 %v8364_v48  ;;  %v8372_v8 = vld [vmem:[#allocation36_spill] sm:$0xff] }
 0x54c   :  { %1550 = vmatprep.subr.mxu0 %v8365_v42  ;;  %1621 = vmatprep.subr.mxu1 %v8366_v28  ;;  %v8373_v42 = vld [vmem:[#allocation37_spill] sm:$0xff] }
 0x54d   :  { %1551 = vmatpush1.msra.mxu0 %v8367_v56  ;;  %1584 = vmatprep.mubr.f32.mxu0 %v8368_v34 }
 0x54e   :  { %1622 = vmatpush1.msra.mxu1 %v8369_v7  ;;  %1655 = vmatprep.mubr.f32.mxu1 %v8368_v34 }
 0x54f   :  { %1695 = vmatprep.subr.mxu0 %v8370_v50  ;;  %1766 = vmatprep.subr.mxu1 %v8371_v58 }
 0x5ee   :  { %v1411_v62 = vpop.f32.mrf.mxu0  ;;  %v1482_v28 = vpop.f32.mrf.mxu1 }
 0x5ef   :  { %v1487_v23 = vadd.f32 %v1411_v62, %v8372_v8  ;;  %v1489_v34 = vadd.f32 %v1482_v28, %v8375_v60 }
 0x5f0   :  { %v1413_v48 = vpop.f32.mrf.mxu0  ;;  %v1484_v52 = vpop.f32.mrf.mxu1 }
 0x5f1   :  { %v3957_v2 = vmul.f32 -1.442695, %v1487_v23  ;;  %v1488_v24 = vadd.f32 %v1413_v48, %v8373_v42  ;;  %v1490_v7 = vadd.f32 %v1484_v52, %v8374_v14 }
 0x5f3   :  { %4273 = vpow2.f32 %v3957_v2  ;;  %v3958_v56 = vmul.f32 -1.442695, %v1488_v24  ;;  %v3959_v12 = vmul.f32 -1.442695, %v1490_v7 }
 0x5f5   :  { %4275 = vpow2.f32 %v3958_v56 }
 0x5f6   :  { %4277 = vtanh.f32 %v1489_v34 }
 0x5f7   :  { %4279 = vpow2.f32 %v3959_v12 }
 0x600   :  { %v4274_v50 = vpop.eup %4273 }
 0x601   :  { %v1494_v36 = vadd.f32 1.0, %v4274_v50  ;;  %v4026_v50 = vld [vmem:[%s7995_s1 + $0x3e0] sm:$0xff] }
 0x602   :  { %v4276_v58 = vpop.eup %4275 }
 0x603   :  { %4281 = vrcp.f32 %v1494_v36  ;;  %v1500_v62 = vadd.f32 1.0, %v4276_v58  ;;  %v4278_v23 = vpop.eup %4277  ;;  %v4028_v58 = vld [vmem:[%s7995_s1 + $0x3f0] sm:$0xff] }
 0x604   :  { %v4280_v8 = vpop.eup %4279 }
 0x605   :  { %4283 = vrcp.f32 %v1500_v62  ;;  %v1507_v42 = vadd.f32 1.0, %v4280_v8  ;;  %v4023_v62 = vld [vmem:[%s7995_s1 + $0x3c8] sm:$0xff]  ;;  %v4022_v8 = vld [vmem:[%s7995_s1 + $0x3c0] sm:$0xff] }
 0x607   :  { %4285 = vrcp.f32 %v1507_v42  ;;  %v4018_v42 = vld [vmem:[%s7995_s1 + $0x3a0] sm:$0xff] }
 0x610   :  { %v4282_v2 = vpop.eup %4281 }
 0x611   :  { %v1511_v48 = vmul.f32 %v4282_v2, %v4278_v23  ;;  %v4025_v23 = vld [vmem:[%s7995_s1 + $0x3d8] sm:$0xff]  ;;  %v4024_v2 = vld [vmem:[%s7995_s1 + $0x3d0] sm:$0xff] }
 0x612   :  { %v4284_v24 = vpop.eup %4283 }
 0x613   :  { %v1510_v56 = vmul.f32 %v4284_v24, %v6099_v40  ;;  %v4021_v24 = vld [vmem:[%s7995_s1 + $0x3b8] sm:$0xff] }
 0x614   :  { %v4286_v7 = vpop.eup %4285 }
 0x615   :  { %v6177_v14 = vadd.f32 %v1511_v48, %v1510_v56  ;;  %v4019_v48 = vld [vmem:[%s7995_s1 + $0x3a8] sm:$0xff]  ;;  %v4020_v56 = vld [vmem:[%s7995_s1 + $0x3b0] sm:$0xff] }
 0x617   :  { %4287 = vtanh.f32 %v6177_v14 }
 0x624   :  { %v4288_v60 = vpop.eup %4287 }
 0x625   :  { %v6180_v52 = vmul.f32 %v4288_v60, %v4286_v7  ;;  %v4017_v7 = vld [vmem:[%s7995_s1 + $0x398] sm:$0xff]  ;;  %v4014_v60 = vld [vmem:[%s7995_s1 + $0x380] sm:$0xff] }
 0x627   :  { %1585 = vmatmul.mubr.f32.vlgmr.msra.gmra.mxu0 %v6180_v52  ;;  %1656 = vmatmul.mubr.f32.vlgmr.msra.gmra.mxu1 %v6180_v52 }
 0x628   :  { %1696 = vmatpush1.msra.mxu0 %v5560_v53  ;;  %1767 = vmatpush1.msra.mxu1 %v5877_v11  ;;  %v8376_v53 = vld [vmem:[#allocation15_spill] sm:$0xff] }
 0x629   :  { %1697 = vmatprep.subr.mxu0 %v5567_v49  ;;  %1768 = vmatprep.subr.mxu1 %v5884_v45  ;;  %v8377_v49 = vld [vmem:[#allocation5_spill] sm:$0xff] }
 0x62a   :  { %1698 = vmatpush1.msra.mxu0 %v5574_v4  ;;  %1769 = vmatpush1.msra.mxu1 %v5891_v15  ;;  %v8378_v4 = vld [vmem:[#allocation28_spill] sm:$0xff]  ;;  %v8395_v15 = vld [vmem:[#allocation39_spill] sm:$0xff] }
 0x62b   :  { %1699 = vmatprep.subr.mxu0 %v5581_v54  ;;  %1770 = vmatprep.subr.mxu1 %v5898_v5  ;;  %v8379_v54 = vld [vmem:[#allocation17_spill] sm:$0xff] }
 0x62c   :  { %1700 = vmatpush1.msra.mxu0 %v5588_v22  ;;  %1771 = vmatpush1.msra.mxu1 %v5905_v1  ;;  %v8380_v22 = vld [vmem:[#allocation29_spill] sm:$0xff] }
 0x62d   :  { %1701 = vmatprep.subr.mxu0 %v5595_v57  ;;  %1772 = vmatprep.subr.mxu1 %v5912_v61  ;;  %v8381_v57 = vld [vmem:[#allocation6_spill] sm:$0xff] }
 0x62e   :  { %1702 = vmatpush1.msra.mxu0 %v5602_v20  ;;  %1773 = vmatpush1.msra.mxu1 %v5919_v47  ;;  %v8382_v20 = vld [vmem:[#allocation30_spill] sm:$0xff] }
 0x62f   :  { %1703 = vmatprep.subr.mxu0 %v5609_v63  ;;  %1774 = vmatprep.subr.mxu1 %v5926_v16  ;;  %v8383_v63 = vld [vmem:[#allocation7_spill] sm:$0xff]  ;;  %v8396_v16 = vld [vmem:[#allocation50_spill] sm:$0xff] }
 0x630   :  { %1704 = vmatpush1.msra.mxu0 %v5616_v6  ;;  %1775 = vmatpush1.msra.mxu1 %v5933_v31  ;;  %v8384_v6 = vld [vmem:[#allocation31_spill] sm:$0xff] }
 0x631   :  { %1705 = vmatprep.subr.mxu0 %v5623_v10  ;;  %1776 = vmatprep.subr.mxu1 %v5940_v39  ;;  %v8385_v10 = vld [vmem:[#allocation8_spill] sm:$0xff]  ;;  %v8397_v39 = vld [vmem:[#allocation49_spill] sm:$0xff] }
 0x632   :  { %1706 = vmatpush1.msra.mxu0 %v5630_v13  ;;  %1777 = vmatpush1.msra.mxu1 %v5947_v30  ;;  %v8386_v13 = vld [vmem:[#allocation42_spill] sm:$0xff] }
 0x633   :  { %1707 = vmatprep.subr.mxu0 %v5637_v17  ;;  %1778 = vmatprep.subr.mxu1 %v5954_v55  ;;  %v8387_v17 = vld [vmem:[#allocation9_spill] sm:$0xff] }
 0x634   :  { %1708 = vmatpush1.msra.mxu0 %v5644_v21  ;;  %1779 = vmatpush1.msra.mxu1 %v5961_v27  ;;  %v8388_v21 = vld [vmem:[#allocation18_spill] sm:$0xff] }
 0x635   :  { %1709 = vmatprep.subr.mxu0 %v5651_v25  ;;  %1780 = vmatprep.subr.mxu1 %v5968_v43  ;;  %v8389_v25 = vld [vmem:[#allocation10_spill] sm:$0xff] }
 0x636   :  { %1710 = vmatpush1.msra.mxu0 %v5658_v29  ;;  %1781 = vmatpush1.msra.mxu1 %v5975_v35  ;;  %v8390_v29 = vld [vmem:[#allocation19_spill] sm:$0xff] }
 0x637   :  { %1711 = vmatprep.subr.mxu0 %v5665_v33  ;;  %1782 = vmatprep.subr.mxu1 %v5982_v9  ;;  %v8391_v33 = vld [vmem:[#allocation11_spill] sm:$0xff] }
 0x638   :  { %1712 = vmatpush1.msra.mxu0 %v5672_v37  ;;  %1783 = vmatpush1.msra.mxu1 %v5989_v26  ;;  %v8392_v37 = vld [vmem:[#allocation20_spill] sm:$0xff] }
 0x639   :  { %1713 = vmatprep.subr.mxu0 %v5679_v41  ;;  %1784 = vmatprep.subr.mxu1 %v5996_v19  ;;  %v8393_v41 = vmov 0.0  }
 0x63a   :  { %1714 = vmatpush1.msra.mxu0 %v5686_v44  ;;  %1785 = vmatpush1.msra.mxu1 %v6003_v32  ;;  %v4027_v44 = vld [vmem:[%s7995_s1 + $0x3e8] sm:$0xff] }
 0x63b   :  { %1715 = vmatprep.subr.mxu0 %v5693_v59  ;;  %1786 = vmatprep.subr.mxu1 %v6010_v38  ;;  %v4029_v59 = vld [vmem:[%s7995_s1 + $0x3f8] sm:$0xff] }
 0x63c   :  { %1716 = vmatpush1.msra.mxu0 %v5700_v3  ;;  %1787 = vmatpush1.msra.mxu1 %v6017_v0 }
 0x63d   :  { %1717 = vmatprep.subr.mxu0 %v5707_v18  ;;  %1788 = vmatprep.subr.mxu1 %v6024_v46  ;;  %v8394_v18 = vld [vmem:[#allocation38_spill] sm:$0xff] }
 0x63e   :  { %1718 = vmatpush1.msra.mxu0 %v5714_v51  ;;  %1789 = vmatpush1.msra.mxu1 %v8376_v53  ;;  %v4016_v53 = vld [vmem:[%s7995_s1 + $0x390] sm:$0xff] }
 0x63f   :  { %1719 = vmatprep.subr.mxu0 %v8377_v49  ;;  %1790 = vmatprep.subr.mxu1 %v8378_v4  ;;  %v4011_v49 = vld [vmem:[%s7995_s1 + $0x368] sm:$0xff]  ;;  %v4013_v4 = vld [vmem:[%s7995_s1 + $0x378] sm:$0xff] }
 0x640   :  { %1720 = vmatpush1.msra.mxu0 %v8379_v54  ;;  %1791 = vmatpush1.msra.mxu1 %v8380_v22  ;;  %v4010_v54 = vld [vmem:[%s7995_s1 + $0x360] sm:$0xff]  ;;  %v4012_v22 = vld [vmem:[%s7995_s1 + $0x370] sm:$0xff] }
 0x641   :  { %1721 = vmatprep.subr.mxu0 %v8381_v57  ;;  %1792 = vmatprep.subr.mxu1 %v8382_v20  ;;  %v4007_v57 = vld [vmem:[%s7995_s1 + $0x348] sm:$0xff]  ;;  %v4009_v20 = vld [vmem:[%s7995_s1 + $0x358] sm:$0xff] }
 0x642   :  { %1722 = vmatpush1.msra.mxu0 %v8383_v63  ;;  %1793 = vmatpush1.msra.mxu1 %v8384_v6  ;;  %v4006_v63 = vld [vmem:[%s7995_s1 + $0x340] sm:$0xff]  ;;  %v4008_v6 = vld [vmem:[%s7995_s1 + $0x350] sm:$0xff] }
 0x643   :  { %1723 = vmatprep.subr.mxu0 %v8385_v10  ;;  %1794 = vmatprep.subr.mxu1 %v8386_v13  ;;  %v4003_v10 = vld [vmem:[%s7995_s1 + $0x328] sm:$0xff]  ;;  %v4005_v13 = vld [vmem:[%s7995_s1 + $0x338] sm:$0xff] }
 0x644   :  { %1724 = vmatpush1.msra.mxu0 %v8387_v17  ;;  %1795 = vmatpush1.msra.mxu1 %v8388_v21  ;;  %v4002_v17 = vld [vmem:[%s7995_s1 + $0x320] sm:$0xff]  ;;  %v4004_v21 = vld [vmem:[%s7995_s1 + $0x330] sm:$0xff] }
 0x645   :  { %1725 = vmatprep.subr.mxu0 %v8389_v25  ;;  %1796 = vmatprep.subr.mxu1 %v8390_v29  ;;  %v3999_v25 = vld [vmem:[%s7995_s1 + $0x308] sm:$0xff]  ;;  %v4001_v29 = vld [vmem:[%s7995_s1 + $0x318] sm:$0xff] }
 0x646   :  { %1726 = vmatpush1.msra.mxu0 %v8391_v33  ;;  %1797 = vmatpush1.msra.mxu1 %v8392_v37  ;;  %v3998_v33 = vld [vmem:[%s7995_s1 + $0x300] sm:$0xff]  ;;  %v4000_v37 = vld [vmem:[%s7995_s1 + $0x310] sm:$0xff] }
 0x647   :  { %1759 = vmatprep.mubr.f32.mxu0 %v8393_v41  ;;  %1830 = vmatprep.mubr.f32.mxu1 %v8393_v41 }
 0x648   :  { %1964 = vmatprep.subr.mxu0 %v4027_v44  ;;  %2077 = vmatprep.subr.mxu1 %v4029_v59  ;;  %v3995_v44 = vld [vmem:[%s7995_s1 + $0x2e8] sm:$0xff]  ;;  %v3997_v59 = vld [vmem:[%s7995_s1 + $0x2f8] sm:$0xff] }
 0x6e7   :  { %v1586_v3 = vpop.f32.mrf.mxu0  ;;  %v1657_v1 = vpop.f32.mrf.mxu1 }
 0x6e8   :  { %v1662_v51 = vadd.f32 %v1586_v3, %v8394_v18  ;;  %v1664_v30 = vadd.f32 %v1657_v1, %v8397_v39  ;;  %v3994_v3 = vld [vmem:[%s7995_s1 + $0x2e0] sm:$0xff]  ;;  %v3996_v18 = vld [vmem:[%s7995_s1 + $0x2f0] sm:$0xff]  ;;  %v3989_v1 = vld [vmem:[%s7995_s1 + $0x2b8] sm:$0xff] }
 0x6e9   :  { %v1588_v11 = vpop.f32.mrf.mxu0  ;;  %v1659_v47 = vpop.f32.mrf.mxu1  ;;  %v3982_v39 = vld [vmem:[%s7995_s1 + $0x280] sm:$0xff] }
 0x6ea   :  { %v3960_v45 = vmul.f32 -1.442695, %v1662_v51  ;;  %v1663_v5 = vadd.f32 %v1588_v11, %v8395_v15  ;;  %v1665_v31 = vadd.f32 %v1659_v47, %v8396_v16  ;;  %v3991_v51 = vld [vmem:[%s7995_s1 + $0x2c8] sm:$0xff]  ;;  %v3993_v11 = vld [vmem:[%s7995_s1 + $0x2d8] sm:$0xff]  ;;  %v3992_v15 = vld [vmem:[%s7995_s1 + $0x2d0] sm:$0xff] }
 0x6eb   :  { %v3988_v47 = vld [vmem:[%s7995_s1 + $0x2b0] sm:$0xff]  ;;  %v3983_v16 = vld [vmem:[%s7995_s1 + $0x288] sm:$0xff] }
 0x6ec   :  { %4289 = vpow2.f32 %v3960_v45  ;;  %v3961_v61 = vmul.f32 -1.442695, %v1663_v5  ;;  %v3962_v55 = vmul.f32 -1.442695, %v1665_v31  ;;  %v3990_v45 = vld [vmem:[%s7995_s1 + $0x2c0] sm:$0xff]  ;;  %v3987_v5 = vld [vmem:[%s7995_s1 + $0x2a8] sm:$0xff] }
 0x6ed   :  { %v3985_v31 = vld [vmem:[%s7995_s1 + $0x298] sm:$0xff] }
 0x6ee   :  { %4291 = vpow2.f32 %v3961_v61  ;;  %v3986_v61 = vld [vmem:[%s7995_s1 + $0x2a0] sm:$0xff] }
 0x6ef   :  { %4293 = vtanh.f32 %v1664_v30  ;;  %v3984_v30 = vld [vmem:[%s7995_s1 + $0x290] sm:$0xff] }
 0x6f0   :  { %4295 = vpow2.f32 %v3962_v55  ;;  %v3979_v55 = vld [vmem:[%s7995_s1 + $0x268] sm:$0xff] }
 0x6f9   :  { %v4290_v27 = vpop.eup %4289 }
 0x6fa   :  { %v1669_v43 = vadd.f32 1.0, %v4290_v27  ;;  %v3981_v27 = vld [vmem:[%s7995_s1 + $0x278] sm:$0xff] }
 0x6fb   :  { %v4292_v35 = vpop.eup %4291 }
 0x6fc   :  { %4297 = vrcp.f32 %v1669_v43  ;;  %v1675_v9 = vadd.f32 1.0, %v4292_v35  ;;  %v4294_v26 = vpop.eup %4293  ;;  %v3978_v43 = vld [vmem:[%s7995_s1 + $0x260] sm:$0xff]  ;;  %v3980_v35 = vld [vmem:[%s7995_s1 + $0x270] sm:$0xff] }
 0x6fd   :  { %v4296_v19 = vpop.eup %4295 }
 0x6fe   :  { %4299 = vrcp.f32 %v1675_v9  ;;  %v1682_v46 = vadd.f32 1.0, %v4296_v19  ;;  %v3975_v9 = vld [vmem:[%s7995_s1 + $0x248] sm:$0xff]  ;;  %v3974_v19 = vld [vmem:[%s7995_s1 + $0x240] sm:$0xff] }
 0x700   :  { %4301 = vrcp.f32 %v1682_v46  ;;  %v3970_v46 = vld [vmem:[%s7995_s1 + $0x220] sm:$0xff] }
 0x709   :  { %v4298_v32 = vpop.eup %4297 }
 0x70a   :  { %v1686_v38 = vmul.f32 %v4298_v32, %v4294_v26  ;;  %v3977_v26 = vld [vmem:[%s7995_s1 + $0x258] sm:$0xff]  ;;  %v3976_v32 = vld [vmem:[%s7995_s1 + $0x250] sm:$0xff] }
 0x70b   :  { %v4300_v0 = vpop.eup %4299 }
 0x70c   :  { %v1685_v40 = vmul.f32 %v4300_v0, %v6177_v14  ;;  %v4015_v14 = vld [vmem:[%s7995_s1 + $0x388] sm:$0xff]  ;;  %v3973_v0 = vld [vmem:[%s7995_s1 + $0x238] sm:$0xff] }
 0x70d   :  { %v4302_v12 = vpop.eup %4301 }
 0x70e   :  { %v6259_v36 = vadd.f32 %v1686_v38, %v1685_v40  ;;  %v3971_v38 = vld [vmem:[%s7995_s1 + $0x228] sm:$0xff]  ;;  %v3972_v40 = vld [vmem:[%s7995_s1 + $0x230] sm:$0xff] }
 0x710   :  { %4303 = vtanh.f32 %v6259_v36 }
 0x71d   :  { %v4304_v28 = vpop.eup %4303 }
 0x71e   :  { %v6262_v34 = vmul.f32 %v4304_v28, %v4302_v12  ;;  %v3967_v12 = vld [vmem:[%s7995_s1 + $0x208] sm:$0xff]  ;;  %v3969_v28 = vld [vmem:[%s7995_s1 + $0x218] sm:$0xff] }
 0x720   :  { %1760 = vmatmul.mubr.f32.vlgmr.msra.gmra.mxu0 %v6262_v34  ;;  %1831 = vmatmul.mubr.f32.vlgmr.msra.gmra.mxu1 %v6262_v34 }
 0x721   :  { %1965 = vmatpush1.msra.mxu0 %v4026_v50  ;;  %2078 = vmatpush1.msra.mxu1 %v4028_v58  ;;  %v3966_v50 = vld [vmem:[%s7995_s1 + $0x200] sm:$0xff]  ;;  %v3968_v58 = vld [vmem:[%s7995_s1 + $0x210] sm:$0xff] }
 0x722   :  { %1966 = vmatprep.subr.mxu0 %v4023_v62  ;;  %2079 = vmatprep.subr.mxu1 %v4025_v23  ;;  %v8398_v62 = vld [vmem:[#allocation53_spill] sm:$0xff]  ;;  %v8399_v23 = vld [vmem:[#allocation16_spill] sm:$0xff] }
 0x723   :  { %1967 = vmatpush1.msra.mxu0 %v4022_v8  ;;  %2080 = vmatpush1.msra.mxu1 %v4024_v2  ;;  %v8400_v8 = vld [vmem:[#allocation12_spill] sm:$0xff]  ;;  %v8401_v2 = vld [vmem:[#allocation14_spill] sm:$0xff] }
 0x724   :  { %1968 = vmatprep.subr.mxu0 %v4019_v48  ;;  %2081 = vmatprep.subr.mxu1 %v4021_v24  ;;  %v8402_v48 = vld [vmem:[#allocation21_spill] sm:$0xff] }
 0x725   :  { %1969 = vmatpush1.msra.mxu0 %v4018_v42  ;;  %2082 = vmatpush1.msra.mxu1 %v4020_v56  ;;  %v6485_v24 = vld [vmem:[%s7996_s2 + $0x3e8] sm:$0xff]  ;;  %v6502_v42 = vld [vmem:[%s7996_s2 + $0x3f0] sm:$0xff] }
 0x726   :  { %1970 = vmatprep.subr.mxu0 %v4015_v14  ;;  %2083 = vmatprep.subr.mxu1 %v4017_v7  ;;  %8403 = vst [vmem:[#allocation22_spill] sm:$0xff] %v6485_v24  ;;  %v6509_v56 = vld [vmem:[%s7996_s2 + $0x3c8] sm:$0xff]  ;;  %v6514_v14 = vld [vmem:[%s7996_s2 + $0x3d8] sm:$0xff]  ;;  %v6521_v7 = vld [vmem:[%s7996_s2 + $0x3c0] sm:$0xff] }
 0x727   :  { %1971 = vmatpush1.msra.mxu0 %v4014_v60  ;;  %2084 = vmatpush1.msra.mxu1 %v4016_v53  ;;  %v6526_v60 = vld [vmem:[%s7996_s2 + $0x3d0] sm:$0xff]  ;;  %v6533_v53 = vld [vmem:[%s7996_s2 + $0x3a8] sm:$0xff] }
 0x728   :  { %1972 = vmatprep.subr.mxu0 %v4011_v49  ;;  %2085 = vmatprep.subr.mxu1 %v4013_v4  ;;  %v6538_v49 = vld [vmem:[%s7996_s2 + $0x3b8] sm:$0xff]  ;;  %v6545_v4 = vld [vmem:[%s7996_s2 + $0x3a0] sm:$0xff] }
 0x729   :  { %1973 = vmatpush1.msra.mxu0 %v4010_v54  ;;  %2086 = vmatpush1.msra.mxu1 %v4012_v22  ;;  %v6550_v54 = vld [vmem:[%s7996_s2 + $0x3b0] sm:$0xff]  ;;  %v6557_v22 = vld [vmem:[%s7996_s2 + $0x388] sm:$0xff] }
 0x72a   :  { %1974 = vmatprep.subr.mxu0 %v4007_v57  ;;  %2087 = vmatprep.subr.mxu1 %v4009_v20  ;;  %v6562_v57 = vld [vmem:[%s7996_s2 + $0x398] sm:$0xff]  ;;  %v6569_v20 = vld [vmem:[%s7996_s2 + $0x380] sm:$0xff] }
 0x72b   :  { %1975 = vmatpush1.msra.mxu0 %v4006_v63  ;;  %2088 = vmatpush1.msra.mxu1 %v4008_v6  ;;  %v6574_v63 = vld [vmem:[%s7996_s2 + $0x390] sm:$0xff]  ;;  %v6581_v6 = vld [vmem:[%s7996_s2 + $0x368] sm:$0xff] }
 0x72c   :  { %1976 = vmatprep.subr.mxu0 %v4003_v10  ;;  %2089 = vmatprep.subr.mxu1 %v4005_v13  ;;  %v6586_v10 = vld [vmem:[%s7996_s2 + $0x378] sm:$0xff]  ;;  %v6593_v13 = vld [vmem:[%s7996_s2 + $0x360] sm:$0xff] }
 0x72d   :  { %1977 = vmatpush1.msra.mxu0 %v4002_v17  ;;  %2090 = vmatpush1.msra.mxu1 %v4004_v21  ;;  %v6598_v17 = vld [vmem:[%s7996_s2 + $0x370] sm:$0xff]  ;;  %v6605_v21 = vld [vmem:[%s7996_s2 + $0x348] sm:$0xff] }
 0x72e   :  { %1978 = vmatprep.subr.mxu0 %v3999_v25  ;;  %2091 = vmatprep.subr.mxu1 %v4001_v29  ;;  %v6610_v25 = vld [vmem:[%s7996_s2 + $0x358] sm:$0xff]  ;;  %v6617_v29 = vld [vmem:[%s7996_s2 + $0x340] sm:$0xff] }
 0x72f   :  { %1979 = vmatpush1.msra.mxu0 %v3998_v33  ;;  %2092 = vmatpush1.msra.mxu1 %v4000_v37  ;;  %v6622_v33 = vld [vmem:[%s7996_s2 + $0x350] sm:$0xff]  ;;  %v6629_v37 = vld [vmem:[%s7996_s2 + $0x328] sm:$0xff] }
 0x730   :  { %1980 = vmatprep.subr.mxu0 %v3995_v44  ;;  %2093 = vmatprep.subr.mxu1 %v3997_v59  ;;  %v6634_v44 = vld [vmem:[%s7996_s2 + $0x338] sm:$0xff]  ;;  %v6641_v59 = vld [vmem:[%s7996_s2 + $0x320] sm:$0xff] }
 0x731   :  { %1981 = vmatpush1.msra.mxu0 %v3994_v3  ;;  %2094 = vmatpush1.msra.mxu1 %v3996_v18  ;;  %v6646_v3 = vld [vmem:[%s7996_s2 + $0x330] sm:$0xff]  ;;  %v6653_v18 = vld [vmem:[%s7996_s2 + $0x308] sm:$0xff] }
 0x732   :  { %1982 = vmatprep.subr.mxu0 %v3991_v51  ;;  %2095 = vmatprep.subr.mxu1 %v3993_v11  ;;  %v6658_v51 = vld [vmem:[%s7996_s2 + $0x318] sm:$0xff]  ;;  %v6665_v11 = vld [vmem:[%s7996_s2 + $0x300] sm:$0xff] }
 0x733   :  { %1983 = vmatpush1.msra.mxu0 %v3990_v45  ;;  %2096 = vmatpush1.msra.mxu1 %v3992_v15  ;;  %v6670_v45 = vld [vmem:[%s7996_s2 + $0x310] sm:$0xff]  ;;  %v6677_v15 = vld [vmem:[%s7996_s2 + $0x2e8] sm:$0xff] }
 0x734   :  { %1984 = vmatprep.subr.mxu0 %v3987_v5  ;;  %2097 = vmatprep.subr.mxu1 %v3989_v1  ;;  %v6682_v5 = vld [vmem:[%s7996_s2 + $0x2f8] sm:$0xff]  ;;  %v6689_v1 = vld [vmem:[%s7996_s2 + $0x2e0] sm:$0xff] }
 0x735   :  { %1985 = vmatpush1.msra.mxu0 %v3986_v61  ;;  %2098 = vmatpush1.msra.mxu1 %v3988_v47  ;;  %v6694_v61 = vld [vmem:[%s7996_s2 + $0x2f0] sm:$0xff]  ;;  %v6701_v47 = vld [vmem:[%s7996_s2 + $0x2c8] sm:$0xff] }
 0x736   :  { %1986 = vmatprep.subr.mxu0 %v3983_v16  ;;  %2099 = vmatprep.subr.mxu1 %v3985_v31  ;;  %v6706_v16 = vld [vmem:[%s7996_s2 + $0x2d8] sm:$0xff]  ;;  %v6713_v31 = vld [vmem:[%s7996_s2 + $0x2c0] sm:$0xff] }
 0x737   :  { %1987 = vmatpush1.msra.mxu0 %v3982_v39  ;;  %2100 = vmatpush1.msra.mxu1 %v3984_v30  ;;  %v6718_v39 = vld [vmem:[%s7996_s2 + $0x2d0] sm:$0xff]  ;;  %v6725_v30 = vld [vmem:[%s7996_s2 + $0x2a8] sm:$0xff] }
 0x738   :  { %1988 = vmatprep.subr.mxu0 %v3979_v55  ;;  %2101 = vmatprep.subr.mxu1 %v3981_v27  ;;  %v6730_v55 = vld [vmem:[%s7996_s2 + $0x2b8] sm:$0xff]  ;;  %v6737_v27 = vld [vmem:[%s7996_s2 + $0x2a0] sm:$0xff] }
 0x739   :  { %1989 = vmatpush1.msra.mxu0 %v3978_v43  ;;  %2102 = vmatpush1.msra.mxu1 %v3980_v35  ;;  %v6742_v43 = vld [vmem:[%s7996_s2 + $0x2b0] sm:$0xff]  ;;  %v6749_v35 = vld [vmem:[%s7996_s2 + $0x288] sm:$0xff] }
 0x73a   :  { %1990 = vmatprep.subr.mxu0 %v3975_v9  ;;  %2103 = vmatprep.subr.mxu1 %v3977_v26  ;;  %8405 = vst [vmem:[#allocation24_spill] sm:$0xff] %v6742_v43  ;;  %8406 = vst [vmem:[#allocation25_spill] sm:$0xff] %v6749_v35  ;;  %v6754_v9 = vld [vmem:[%s7996_s2 + $0x298] sm:$0xff]  ;;  %v6761_v26 = vld [vmem:[%s7996_s2 + $0x280] sm:$0xff] }
 0x73b   :  { %1991 = vmatpush1.msra.mxu0 %v3974_v19  ;;  %2104 = vmatpush1.msra.mxu1 %v3976_v32  ;;  %8407 = vst [vmem:[#allocation26_spill] sm:$0xff] %v6754_v9  ;;  %8408 = vst [vmem:[#allocation32_spill] sm:$0xff] %v6761_v26  ;;  %v6766_v19 = vld [vmem:[%s7996_s2 + $0x290] sm:$0xff]  ;;  %v6773_v32 = vld [vmem:[%s7996_s2 + $0x268] sm:$0xff] }
 0x73c   :  { %1992 = vmatprep.subr.mxu0 %v3971_v38  ;;  %2105 = vmatprep.subr.mxu1 %v3973_v0  ;;  %8409 = vst [vmem:[#allocation33_spill] sm:$0xff] %v6766_v19  ;;  %8410 = vst [vmem:[#allocation44_spill] sm:$0xff] %v6773_v32  ;;  %v6778_v38 = vld [vmem:[%s7996_s2 + $0x278] sm:$0xff]  ;;  %v6785_v0 = vld [vmem:[%s7996_s2 + $0x260] sm:$0xff] }
 0x73d   :  { %1993 = vmatpush1.msra.mxu0 %v3970_v46  ;;  %2106 = vmatpush1.msra.mxu1 %v3972_v40  ;;  %8411 = vst [vmem:[#allocation43_spill] sm:$0xff] %v6778_v38  ;;  %8412 = vst [vmem:[#allocation34_spill] sm:$0xff] %v6785_v0  ;;  %v6790_v46 = vld [vmem:[%s7996_s2 + $0x270] sm:$0xff]  ;;  %v6797_v40 = vld [vmem:[%s7996_s2 + $0x248] sm:$0xff] }
 0x73e   :  { %1994 = vmatprep.subr.mxu0 %v3967_v12  ;;  %2107 = vmatprep.subr.mxu1 %v3969_v28  ;;  %8413 = vst [vmem:[#allocation35_spill] sm:$0xff] %v6790_v46  ;;  %8414 = vst [vmem:[#allocation46_spill] sm:$0xff] %v6797_v40  ;;  %v6802_v12 = vld [vmem:[%s7996_s2 + $0x258] sm:$0xff]  ;;  %v6809_v28 = vld [vmem:[%s7996_s2 + $0x240] sm:$0xff] }
 0x73f   :  { %1995 = vmatpush1.msra.mxu0 %v3966_v50  ;;  %2028 = vmatprep.mubr.f32.mxu0 %v8393_v41  ;;  %8415 = vst [vmem:[#allocation45_spill] sm:$0xff] %v6802_v12  ;;  %8416 = vst [vmem:[#allocation4_spill] sm:$0xff] %v6809_v28  ;;  %v6814_v50 = vld [vmem:[%s7996_s2 + $0x250] sm:$0xff] }
 0x740   :  { %2108 = vmatpush1.msra.mxu1 %v3968_v58  ;;  %2141 = vmatprep.mubr.f32.mxu1 %v8393_v41  ;;  %8417 = vst [vmem:[#allocation13_spill] sm:$0xff] %v6814_v50  ;;  %v6821_v58 = vld [vmem:[%s7996_s2 + $0x228] sm:$0xff] }
 0x741   :  { %2029 = vmatmul.mubr.f32.vlgmr.msra.gmra.mxu0 %v8398_v62  ;;  %2142 = vmatmul.mubr.f32.vlgmr.msra.gmra.mxu1 %v8398_v62  ;;  %8418 = vst [vmem:[#allocation36_spill] sm:$0xff] %v6821_v58  ;;  %v6826_v62 = vld [vmem:[%s7996_s2 + $0x238] sm:$0xff] }
 0x742   :  { %2034 = vmatprep.mubr.f32.mxu0 %v8393_v41  ;;  %2147 = vmatprep.mubr.f32.mxu1 %v8393_v41  ;;  %8419 = vst [vmem:[#allocation37_spill] sm:$0xff] %v6826_v62 }
 0x743   :  { %2295 = vmatprep.subr.mxu0 %v6485_v24 }
 0x745   :  { %2035 = vmatmul.mubr.f32.gmra.mxu0 %v8399_v23  ;;  %2148 = vmatmul.mubr.f32.gmra.mxu1 %v8399_v23  ;;  %v6833_v23 = vld [vmem:[%s7996_s2 + $0x220] sm:$0xff] }
 0x746   :  { %2040 = vmatprep.mubr.f32.mxu0 %v8393_v41  ;;  %2153 = vmatprep.mubr.f32.mxu1 %v8393_v41  ;;  %8420 = vst [vmem:[#allocation48_spill] sm:$0xff] %v6833_v23 }
 0x749   :  { %2041 = vmatmul.mubr.f32.gmra.mxu0 %v8400_v8  ;;  %2154 = vmatmul.mubr.f32.gmra.mxu1 %v8400_v8  ;;  %v6838_v8 = vld [vmem:[%s7996_s2 + $0x230] sm:$0xff] }
 0x74a   :  { %2046 = vmatprep.mubr.f32.mxu0 %v8393_v41  ;;  %2159 = vmatprep.mubr.f32.mxu1 %v8393_v41  ;;  %8421 = vst [vmem:[#allocation47_spill] sm:$0xff] %v6838_v8 }
 0x74d   :  { %2047 = vmatmul.mubr.f32.gmra.mxu0 %v8401_v2  ;;  %2160 = vmatmul.mubr.f32.gmra.mxu1 %v8401_v2  ;;  %v6845_v2 = vld [vmem:[%s7996_s2 + $0x208] sm:$0xff] }
 0x74e   :  { %2052 = vmatprep.mubr.f32.mxu0 %v8393_v41  ;;  %2165 = vmatprep.mubr.f32.mxu1 %v8393_v41  ;;  %8422 = vst [vmem:[#allocation15_spill] sm:$0xff] %v6845_v2 }
 0x751   :  { %2053 = vmatmul.mubr.f32.gmra.mxu0 %v8402_v48  ;;  %2166 = vmatmul.mubr.f32.gmra.mxu1 %v8402_v48  ;;  %v6850_v48 = vld [vmem:[%s7996_s2 + $0x218] sm:$0xff] }
 0x752   :  { %2058 = vmatprep.mubr.f32.mxu0 %v8393_v41  ;;  %2171 = vmatprep.mubr.f32.mxu1 %v8393_v41  ;;  %8423 = vst [vmem:[#allocation5_spill] sm:$0xff] %v6850_v48 }
 0x755   :  { %2059 = vmatmul.mubr.f32.gmra.mxu0 %v6180_v52  ;;  %2172 = vmatmul.mubr.f32.gmra.mxu1 %v6180_v52  ;;  %v6490_v52 = vld [vmem:[%s7996_s2 + $0x3f8] sm:$0xff] }
 0x756   :  { %2064 = vmatprep.mubr.f32.mxu0 %v8393_v41  ;;  %2177 = vmatprep.mubr.f32.mxu1 %v8393_v41  ;;  %8404 = vst [vmem:[#allocation23_spill] sm:$0xff] %v6490_v52 }
 0x757   :  { %2366 = vmatprep.subr.mxu1 %v6490_v52 }
 0x758   :  { %2367 = vmatpush1.msra.mxu1 %v6502_v42 }
 0x759   :  { %2065 = vmatmul.mubr.f32.gmra.mxu0 %v6262_v34  ;;  %2178 = vmatmul.mubr.f32.gmra.mxu1 %v6262_v34  ;;  %v6497_v34 = vld [vmem:[%s7996_s2 + $0x3e0] sm:$0xff] }
 0x75a   :  { %2070 = vmatprep.mubr.f32.mxu0 %v8393_v41  ;;  %2183 = vmatprep.mubr.f32.mxu1 %v8393_v41 }
 0x75b   :  { %2296 = vmatpush1.msra.mxu0 %v6497_v34  ;;  %2368 = vmatprep.subr.mxu1 %v6514_v14 }
 0x75c   :  { %2297 = vmatprep.subr.mxu0 %v6509_v56  ;;  %2369 = vmatpush1.msra.mxu1 %v6526_v60 }
 0x75d   :  { %2298 = vmatpush1.msra.mxu0 %v6521_v7  ;;  %2370 = vmatprep.subr.mxu1 %v6538_v49 }
 0x75e   :  { %2299 = vmatprep.subr.mxu0 %v6533_v53  ;;  %2371 = vmatpush1.msra.mxu1 %v6550_v54 }
 0x75f   :  { %2300 = vmatpush1.msra.mxu0 %v6545_v4  ;;  %2372 = vmatprep.subr.mxu1 %v6562_v57 }
 0x760   :  { %2301 = vmatprep.subr.mxu0 %v6557_v22  ;;  %2373 = vmatpush1.msra.mxu1 %v6574_v63 }
 0x761   :  { %2302 = vmatpush1.msra.mxu0 %v6569_v20  ;;  %2374 = vmatprep.subr.mxu1 %v6586_v10 }
 0x762   :  { %2303 = vmatprep.subr.mxu0 %v6581_v6  ;;  %2375 = vmatpush1.msra.mxu1 %v6598_v17 }
 0x763   :  { %2304 = vmatpush1.msra.mxu0 %v6593_v13  ;;  %2376 = vmatprep.subr.mxu1 %v6610_v25 }
 0x764   :  { %2305 = vmatprep.subr.mxu0 %v6605_v21  ;;  %2377 = vmatpush1.msra.mxu1 %v6622_v33 }
 0x765   :  { %2306 = vmatpush1.msra.mxu0 %v6617_v29  ;;  %2378 = vmatprep.subr.mxu1 %v6634_v44 }
 0x766   :  { %2307 = vmatprep.subr.mxu0 %v6629_v37  ;;  %2379 = vmatpush1.msra.mxu1 %v6646_v3 }
 0x767   :  { %2308 = vmatpush1.msra.mxu0 %v6641_v59  ;;  %2380 = vmatprep.subr.mxu1 %v6658_v51 }
 0x768   :  { %2309 = vmatprep.subr.mxu0 %v6653_v18  ;;  %2381 = vmatpush1.msra.mxu1 %v6670_v45 }
 0x769   :  { %2310 = vmatpush1.msra.mxu0 %v6665_v11  ;;  %2382 = vmatprep.subr.mxu1 %v6682_v5 }
 0x76a   :  { %2311 = vmatprep.subr.mxu0 %v6677_v15  ;;  %2383 = vmatpush1.msra.mxu1 %v6694_v61 }
 0x76b   :  { %2312 = vmatpush1.msra.mxu0 %v6689_v1  ;;  %2384 = vmatprep.subr.mxu1 %v6706_v16 }
 0x76c   :  { %2313 = vmatprep.subr.mxu0 %v6701_v47  ;;  %2385 = vmatpush1.msra.mxu1 %v6718_v39 }
 0x76d   :  { %2314 = vmatpush1.msra.mxu0 %v6713_v31  ;;  %2386 = vmatprep.subr.mxu1 %v6730_v55 }
 0x76e   :  { %2315 = vmatprep.subr.mxu0 %v6725_v30  ;;  %2387 = vmatpush1.msra.mxu1 %v6742_v43 }
 0x76f   :  { %2316 = vmatpush1.msra.mxu0 %v6737_v27  ;;  %2388 = vmatprep.subr.mxu1 %v6754_v9 }
 0x770   :  { %2317 = vmatprep.subr.mxu0 %v6749_v35  ;;  %2389 = vmatpush1.msra.mxu1 %v6766_v19 }
 0x771   :  { %2318 = vmatpush1.msra.mxu0 %v6761_v26  ;;  %2390 = vmatprep.subr.mxu1 %v6778_v38  ;;  %v8428_v38 = vld [vmem:[#allocation52_spill] sm:$0xff] }
 0x772   :  { %2319 = vmatprep.subr.mxu0 %v6773_v32  ;;  %2391 = vmatpush1.msra.mxu1 %v6790_v46  ;;  %v8429_v32 = vld [vmem:[#allocation51_spill] sm:$0xff] }
 0x773   :  { %2320 = vmatpush1.msra.mxu0 %v6785_v0  ;;  %2392 = vmatprep.subr.mxu1 %v6802_v12  ;;  %v8427_v12 = vld [vmem:[#allocation41_spill] sm:$0xff] }
 0x774   :  { %2321 = vmatprep.subr.mxu0 %v6797_v40  ;;  %2393 = vmatpush1.msra.mxu1 %v6814_v50 }
 0x775   :  { %2322 = vmatpush1.msra.mxu0 %v6809_v28  ;;  %2394 = vmatprep.subr.mxu1 %v6826_v62  ;;  %v6855_v62 = vld [vmem:[%s7996_s2 + $0x200] sm:$0xff] }
 0x776   :  { %2323 = vmatprep.subr.mxu0 %v6821_v58  ;;  %2395 = vmatpush1.msra.mxu1 %v6838_v8  ;;  %8424 = vst [vmem:[#allocation28_spill] sm:$0xff] %v6855_v62  ;;  %v6862_v8 = vld [vmem:[%s7996_s2 + $0x210] sm:$0xff]  ;;  %v8426_v58 = vld [vmem:[#allocation40_spill] sm:$0xff] }
 0x777   :  { %2324 = vmatpush1.msra.mxu0 %v6833_v23  ;;  %2396 = vmatprep.subr.mxu1 %v6850_v48  ;;  %8425 = vst [vmem:[#allocation17_spill] sm:$0xff] %v6862_v8 }
 0x778   :  { %2325 = vmatprep.subr.mxu0 %v6845_v2  ;;  %2397 = vmatpush1.msra.mxu1 %v6862_v8 }
 0x779   :  { %2326 = vmatpush1.msra.mxu0 %v6855_v62  ;;  %2541 = vmatprep.subr.mxu1 %v6490_v52 }
 0x77a   :  { %2470 = vmatprep.subr.mxu0 %v6485_v24 }
 0x7e0   :  { %v1761_v23 = vpop.f32.mrf.mxu0  ;;  %v1832_v40 = vpop.f32.mrf.mxu1 }
 0x7e1   :  { %v1837_v50 = vadd.f32 %v1761_v23, %v8426_v58  ;;  %v1839_v8 = vadd.f32 %v1832_v40, %v8429_v32  ;;  %v8431_v32 = vld [vmem:[#allocation33_spill] sm:$0xff]  ;;  %v8433_v40 = vld [vmem:[#allocation43_spill] sm:$0xff] }
 0x7e2   :  { %v1763_v28 = vpop.f32.mrf.mxu0  ;;  %v1834_v0 = vpop.f32.mrf.mxu1 }
 0x7e3   :  { %v3963_v2 = vmul.f32 -1.442695, %v1837_v50  ;;  %v1838_v48 = vadd.f32 %v1763_v28, %v8427_v12  ;;  %v1840_v62 = vadd.f32 %v1834_v0, %v8428_v38  ;;  %v8432_v0 = vld [vmem:[#allocation44_spill] sm:$0xff] }
 0x7e5   :  { %4305 = vpow2.f32 %v3963_v2  ;;  %v3964_v46 = vmul.f32 -1.442695, %v1838_v48  ;;  %v3965_v19 = vmul.f32 -1.442695, %v1840_v62  ;;  %v8434_v62 = vld [vmem:[#allocation34_spill] sm:$0xff] }
 0x7e7   :  { %4307 = vpow2.f32 %v3964_v46 }
 0x7e8   :  { %4309 = vtanh.f32 %v1839_v8  ;;  %v8435_v8 = vld [vmem:[#allocation35_spill] sm:$0xff] }
 0x7e9   :  { %4311 = vpow2.f32 %v3965_v19 }
 0x7f2   :  { %v4306_v24 = vpop.eup %4305 }
 0x7f3   :  { %v1844_v26 = vadd.f32 1.0, %v4306_v24 }
 0x7f4   :  { %v4308_v52 = vpop.eup %4307 }
 0x7f5   :  { %4313 = vrcp.f32 %v1844_v26  ;;  %v1850_v58 = vadd.f32 1.0, %v4308_v52  ;;  %v4310_v50 = vpop.eup %4309  ;;  %v8430_v52 = vld [vmem:[#allocation32_spill] sm:$0xff] }
 0x7f6   :  { %v4312_v12 = vpop.eup %4311 }
 0x7f7   :  { %4315 = vrcp.f32 %v1850_v58  ;;  %v1857_v46 = vadd.f32 1.0, %v4312_v12  ;;  %v8436_v58 = vld [vmem:[#allocation46_spill] sm:$0xff]  ;;  %v8438_v12 = vld [vmem:[#allocation4_spill] sm:$0xff] }
 0x7f9   :  { %4317 = vrcp.f32 %v1857_v46  ;;  %v8442_v46 = vld [vmem:[#allocation48_spill] sm:$0xff] }
 0x802   :  { %v4314_v28 = vpop.eup %4313 }
 0x803   :  { %v1861_v23 = vmul.f32 %v4314_v28, %v4310_v50  ;;  %v8437_v50 = vld [vmem:[#allocation45_spill] sm:$0xff] }
 0x804   :  { %v4316_v2 = vpop.eup %4315  ;;  %v8439_v28 = vld [vmem:[#allocation13_spill] sm:$0xff] }
 0x805   :  { %v1860_v48 = vmul.f32 %v4316_v2, %v6259_v36  ;;  %v4095_v36 = vld [vmem:[%s7998_s4 + $0x8] sm:$0xff] }
 0x806   :  { %v4318_v24 = vpop.eup %4317  ;;  %v8441_v2 = vld [vmem:[#allocation37_spill] sm:$0xff] }
 0x807   :  { %v1862_v38 = vadd.f32 %v1861_v23, %v1860_v48  ;;  %v8440_v23 = vld [vmem:[#allocation36_spill] sm:$0xff]  ;;  %v8443_v48 = vld [vmem:[#allocation47_spill] sm:$0xff] }
 0x809   :  { %4319 = vtanh.f32 %v1862_v38  ;;  %1867 = vst [vmem:[%s8001_s10] sm:$0xff] %v1862_v38  ;;  %v8444_v38 = vld [vmem:[#allocation15_spill] sm:$0xff] }
 0x816   :  { %v4320_v19 = vpop.eup %4319 }
 0x817   :  { %v1864_v26 = vmul.f32 %v4320_v19, %v4318_v24  ;;  %v8445_v24 = vld [vmem:[#allocation5_spill] sm:$0xff]  ;;  %v8446_v19 = vld [vmem:[#allocation28_spill] sm:$0xff] }
 0x819   :  { %2071 = vmatmul.mubr.f32.gmra.mxu0 %v1864_v26  ;;  %2184 = vmatmul.mubr.f32.gmra.mxu1 %v1864_v26  ;;  %1866 = vst [vmem:[%s8002_s9] sm:$0xff] %v1864_v26  ;;  %v8447_v26 = vld [vmem:[#allocation17_spill] sm:$0xff] }
 0x81a   :  { %2359 = vmatprep.mubr.f32.mxu0 %v8393_v41  ;;  %2430 = vmatprep.mubr.f32.mxu1 %v8393_v41 }
 0x81d   :  { %2360 = vmatmul.mubr.f32.vlgmr.msra.gmra.mxu0 %v4095_v36  ;;  %2431 = vmatmul.mubr.f32.vlgmr.msra.gmra.mxu1 %v4095_v36  ;;  %v8448_v36 = vld [vmem:[#allocation22_spill] sm:$0xff] }
 0x81e   :  { %2471 = vmatpush1.msra.mxu0 %v6497_v34  ;;  %2542 = vmatpush1.msra.mxu1 %v6502_v42 }
 0x81f   :  { %2472 = vmatprep.subr.mxu0 %v6509_v56  ;;  %2543 = vmatprep.subr.mxu1 %v6514_v14 }
 0x820   :  { %2473 = vmatpush1.msra.mxu0 %v6521_v7  ;;  %2544 = vmatpush1.msra.mxu1 %v6526_v60 }
 0x821   :  { %2474 = vmatprep.subr.mxu0 %v6533_v53  ;;  %2545 = vmatprep.subr.mxu1 %v6538_v49 }
 0x822   :  { %2475 = vmatpush1.msra.mxu0 %v6545_v4  ;;  %2546 = vmatpush1.msra.mxu1 %v6550_v54 }
 0x823   :  { %2476 = vmatprep.subr.mxu0 %v6557_v22  ;;  %2547 = vmatprep.subr.mxu1 %v6562_v57 }
 0x824   :  { %2477 = vmatpush1.msra.mxu0 %v6569_v20  ;;  %2548 = vmatpush1.msra.mxu1 %v6574_v63 }
 0x825   :  { %2478 = vmatprep.subr.mxu0 %v6581_v6  ;;  %2549 = vmatprep.subr.mxu1 %v6586_v10 }
 0x826   :  { %2479 = vmatpush1.msra.mxu0 %v6593_v13  ;;  %2550 = vmatpush1.msra.mxu1 %v6598_v17 }
 0x827   :  { %2480 = vmatprep.subr.mxu0 %v6605_v21  ;;  %2551 = vmatprep.subr.mxu1 %v6610_v25 }
 0x828   :  { %2481 = vmatpush1.msra.mxu0 %v6617_v29  ;;  %2552 = vmatpush1.msra.mxu1 %v6622_v33 }
 0x829   :  { %2482 = vmatprep.subr.mxu0 %v6629_v37  ;;  %2553 = vmatprep.subr.mxu1 %v6634_v44 }
 0x82a   :  { %2483 = vmatpush1.msra.mxu0 %v6641_v59  ;;  %2554 = vmatpush1.msra.mxu1 %v6646_v3 }
 0x82b   :  { %2484 = vmatprep.subr.mxu0 %v6653_v18  ;;  %2555 = vmatprep.subr.mxu1 %v6658_v51 }
 0x82c   :  { %2485 = vmatpush1.msra.mxu0 %v6665_v11  ;;  %2556 = vmatpush1.msra.mxu1 %v6670_v45 }
 0x82d   :  { %2486 = vmatprep.subr.mxu0 %v6677_v15  ;;  %2557 = vmatprep.subr.mxu1 %v6682_v5 }
 0x82e   :  { %2487 = vmatpush1.msra.mxu0 %v6689_v1  ;;  %2558 = vmatpush1.msra.mxu1 %v6694_v61 }
 0x82f   :  { %2488 = vmatprep.subr.mxu0 %v6701_v47  ;;  %2559 = vmatprep.subr.mxu1 %v6706_v16 }
 0x830   :  { %2489 = vmatpush1.msra.mxu0 %v6713_v31  ;;  %2560 = vmatpush1.msra.mxu1 %v6718_v39 }
 0x831   :  { %2490 = vmatprep.subr.mxu0 %v6725_v30  ;;  %2561 = vmatprep.subr.mxu1 %v6730_v55 }
 0x832   :  { %2491 = vmatpush1.msra.mxu0 %v6737_v27  ;;  %2562 = vmatpush1.msra.mxu1 %v6742_v43 }
 0x833   :  { %2492 = vmatprep.subr.mxu0 %v6749_v35  ;;  %2563 = vmatprep.subr.mxu1 %v6754_v9 }
 0x834   :  { %2493 = vmatpush1.msra.mxu0 %v8430_v52  ;;  %2564 = vmatpush1.msra.mxu1 %v8431_v32 }
 0x835   :  { %2494 = vmatprep.subr.mxu0 %v8432_v0  ;;  %2565 = vmatprep.subr.mxu1 %v8433_v40 }
 0x836   :  { %2495 = vmatpush1.msra.mxu0 %v8434_v62  ;;  %2566 = vmatpush1.msra.mxu1 %v8435_v8 }
 0x837   :  { %2496 = vmatprep.subr.mxu0 %v8436_v58  ;;  %2567 = vmatprep.subr.mxu1 %v8437_v50 }
 0x838   :  { %2497 = vmatpush1.msra.mxu0 %v8438_v12  ;;  %2568 = vmatpush1.msra.mxu1 %v8439_v28 }
 0x839   :  { %2498 = vmatprep.subr.mxu0 %v8440_v23  ;;  %2569 = vmatprep.subr.mxu1 %v8441_v2  ;;  %v8449_v23 = vld [vmem:[#allocation23_spill] sm:$0xff]  ;;  %v2030_v2 = vpop.f32.mrf.mxu0 }
 0x83a   :  { %2499 = vmatpush1.msra.mxu0 %v8442_v46  ;;  %2570 = vmatpush1.msra.mxu1 %v8443_v48  ;;  %v2143_v46 = vpop.f32.mrf.mxu1 }
 0x83b   :  { %2500 = vmatprep.subr.mxu0 %v8444_v38  ;;  %2571 = vmatprep.subr.mxu1 %v8445_v24  ;;  %v2032_v28 = vpop.f32.mrf.mxu0 }
 0x83c   :  { %2501 = vmatpush1.msra.mxu0 %v8446_v19  ;;  %2534 = vmatprep.mubr.f32.mxu0 %v8393_v41  ;;  %v2145_v48 = vpop.f32.mrf.mxu1 }
 0x83d   :  { %2572 = vmatpush1.msra.mxu1 %v8447_v26  ;;  %2605 = vmatprep.mubr.f32.mxu1 %v8393_v41  ;;  %v6950_v12 = vpop.f32.mrf.mxu0 }
 0x83e   :  { %2645 = vmatprep.subr.mxu0 %v8448_v36  ;;  %2716 = vmatprep.subr.mxu1 %v8449_v23  ;;  %8450 = vst [vmem:[#allocation29_spill] sm:$0xff] %v6950_v12  ;;  %v6952_v38 = vpop.f32.mrf.mxu1 }
 0x83f   :  { %8451 = vst [vmem:[#allocation6_spill] sm:$0xff] %v6952_v38  ;;  %v6954_v24 = vpop.f32.mrf.mxu0 }
 0x840   :  { %8452 = vst [vmem:[#allocation30_spill] sm:$0xff] %v6954_v24  ;;  %v6956_v19 = vpop.f32.mrf.mxu1 }
 0x841   :  { %8453 = vst [vmem:[#allocation7_spill] sm:$0xff] %v6956_v19  ;;  %v6958_v50 = vpop.f32.mrf.mxu0 }
 0x842   :  { %8454 = vst [vmem:[#allocation31_spill] sm:$0xff] %v6958_v50  ;;  %v6960_v26 = vpop.f32.mrf.mxu1 }
 0x843   :  { %8455 = vst [vmem:[#allocation8_spill] sm:$0xff] %v6960_v26  ;;  %v6962_v41 = vpop.f32.mrf.mxu0 }
 0x844   :  { %8456 = vst [vmem:[#allocation42_spill] sm:$0xff] %v6962_v41  ;;  %v6964_v36 = vpop.f32.mrf.mxu1 }
 0x845   :  { %8457 = vst [vmem:[#allocation9_spill] sm:$0xff] %v6964_v36  ;;  %v6966_v23 = vpop.f32.mrf.mxu0 }
 0x846   :  { %8458 = vst [vmem:[#allocation18_spill] sm:$0xff] %v6966_v23  ;;  %v6968_v58 = vpop.f32.mrf.mxu1 }
 0x847   :  { %8459 = vst [vmem:[#allocation10_spill] sm:$0xff] %v6968_v58  ;;  %v6970_v8 = vpop.f32.mrf.mxu0 }
 0x848   :  { %8460 = vst [vmem:[#allocation19_spill] sm:$0xff] %v6970_v8  ;;  %v6972_v12 = vpop.f32.mrf.mxu1 }
 0x849   :  { %8461 = vst [vmem:[#allocation11_spill] sm:$0xff] %v6972_v12  ;;  %v6974_v38 = vpop.f32.mrf.mxu0 }
 0x84a   :  { %8462 = vst [vmem:[#allocation20_spill] sm:$0xff] %v6974_v38  ;;  %v6976_v24 = vpop.f32.mrf.mxu1 }
 0x84b   :  { %8463 = vst [vmem:[#allocation38_spill] sm:$0xff] %v6976_v24  ;;  %v6978_v19 = vpop.f32.mrf.mxu0  ;;  %v4030_v24 = vld [vmem:[%s7999_s3 + $0x4] sm:$0xf] }
 0x84c   :  { %8464 = vst [vmem:[#allocation39_spill] sm:$0xff] %v6978_v19  ;;  %v6980_v50 = vpop.f32.mrf.mxu1  ;;  %v8473_v19 = vld [vmem:[#allocation27_spill] sm:$0xff] }
 0x84d   :  { %8465 = vst [vmem:[#allocation50_spill] sm:$0xff] %v6980_v50  ;;  %v6982_v26 = vpop.f32.mrf.mxu0  ;;  %v8474_v50 = vsub.s32 0, %v8473_v19 }
 0x84e   :  { %8466 = vst [vmem:[#allocation49_spill] sm:$0xff] %v6982_v26  ;;  %v6984_v41 = vpop.f32.mrf.mxu1 }
 0x84f   :  { %8467 = vst [vmem:[#allocation53_spill] sm:$0xff] %v6984_v41  ;;  %v6986_v36 = vpop.f32.mrf.mxu0  ;;  %v7001_v12 = vrot.slane %v4030_v24, %v8474_v50 }
 0x850   :  { %8468 = vst [vmem:[#allocation16_spill] sm:$0xff] %v6986_v36  ;;  %v6988_v23 = vpop.f32.mrf.mxu1 }
 0x851   :  { %8469 = vst [vmem:[#allocation12_spill] sm:$0xff] %v6988_v23  ;;  %v6990_v58 = vpop.f32.mrf.mxu0  ;;  %8475 = vst [vmem:[#allocation41_spill] sm:$0xff] %v7001_v12  ;;  %v8478_v23 = vsub.s32 1, %v8473_v19  ;;  %v2031_v62 = vadd.f32 %v2030_v2, %v7001_v12 }
 0x852   :  { %8470 = vst [vmem:[#allocation14_spill] sm:$0xff] %v6990_v58  ;;  %v6992_v8 = vpop.f32.mrf.mxu1 }
 0x853   :  { %8471 = vst [vmem:[#allocation21_spill] sm:$0xff] %v6992_v8  ;;  %v6997_v38 = vpop.f32.mrf.mxu0  ;;  %v7009_v36 = vrot.slane %v4030_v24, %v8478_v23  ;;  %v8482_v23 = vsub.s32 3, %v8473_v19 }
 0x854   :  { %8472 = vst [vmem:[#allocation40_spill] sm:$0xff] %v6997_v38  ;;  %v7003_v26 = vpop.f32.mrf.mxu1 }
 0x855   :  { %8476 = vst [vmem:[#allocation52_spill] sm:$0xff] %v7003_v26  ;;  %v2033_v38 = vadd.f32 %v2032_v28, %v7009_v36  ;;  %v7021_v35 = vrot.slane %v4030_v24, %v8482_v23 }
 0x857   :  { %v2146_v2 = vadd.f32 %v2145_v48, %v7021_v35 }
 0x8d9   :  { %v7005_v41 = vpop.f32.mrf.mxu0  ;;  %v7011_v58 = vpop.f32.mrf.mxu1 }
 0x8da   :  { %8477 = vst [vmem:[#allocation51_spill] sm:$0xff] %v7005_v41  ;;  %8479 = vst [vmem:[#allocation27_spill] sm:$0xff] %v7011_v58 }
 0x8db   :  { %v7013_v8 = vpop.f32.mrf.mxu0  ;;  %v7017_v0 = vpop.f32.mrf.mxu1 }
 0x8dc   :  { %8480 = vst [vmem:[#allocation54_spill] sm:$0xff] %v7013_v8  ;;  %8481 = vst [vmem:[#allocation55_spill] sm:$0xff] %v7017_v0  ;;  %v8483_v8 = vsub.s32 2, %v8473_v19 }
 0x8dd   :  { %v2361_v40 = vpop.f32.mrf.mxu0  ;;  %v2432_v41 = vpop.f32.mrf.mxu1 }
 0x8de   :  { %v2437_v50 = vadd.f32 %v2361_v40, %v2031_v62  ;;  %v7026_v28 = vrot.slane %v4030_v24, %v8483_v8  ;;  %v4096_v8 = vld [vmem:[%s8000_s5 + $0x8] sm:$0xff] }
 0x8df   :  { %v2363_v32 = vpop.f32.mrf.mxu0  ;;  %v2434_v58 = vpop.f32.mrf.mxu1 }
 0x8e0   :  { %v4097_v26 = vmul.f32 -1.442695, %v2437_v50  ;;  %v2438_v52 = vadd.f32 %v2363_v32, %v2033_v38  ;;  %v2440_v0 = vadd.f32 %v2434_v58, %v2146_v2  ;;  %v2144_v40 = vadd.f32 %v2143_v46, %v7026_v28 }
 0x8e2   :  { %4321 = vpow2.f32 %v4097_v26  ;;  %v4098_v9 = vmul.f32 -1.442695, %v2438_v52  ;;  %v4099_v62 = vmul.f32 -1.442695, %v2440_v0  ;;  %v2439_v38 = vadd.f32 %v2432_v41, %v2144_v40 }
 0x8e4   :  { %4323 = vpow2.f32 %v4098_v9 }
 0x8e5   :  { %4325 = vpow2.f32 %v4099_v62  ;;  %v8485_v62 = vld [vmem:[#allocation25_spill] sm:$0xff] }
 0x8ef   :  { %v4322_v32 = vpop.eup %4321 }
 0x8f0   :  { %v2444_v26 = vadd.f32 1.0, %v4322_v32  ;;  %v8486_v32 = vld [vmem:[#allocation26_spill] sm:$0xff] }
 0x8f1   :  { %v4324_v52 = vpop.eup %4323 }
 0x8f2   :  { %4327 = vrcp.f32 %v2444_v26  ;;  %v2450_v50 = vadd.f32 1.0, %v4324_v52  ;;  %v4326_v9 = vpop.eup %4325  ;;  %v8488_v26 = vld [vmem:[#allocation33_spill] sm:$0xff]  ;;  %v8489_v52 = vld [vmem:[#allocation44_spill] sm:$0xff] }
 0x8f3   :  { %4329 = vtanh.f32 %v2439_v38  ;;  %v2457_v24 = vadd.f32 1.0, %v4326_v9  ;;  %v8487_v38 = vld [vmem:[#allocation32_spill] sm:$0xff]  ;;  %v8491_v9 = vld [vmem:[#allocation34_spill] sm:$0xff] }
 0x8f4   :  { %4331 = vrcp.f32 %v2450_v50  ;;  %v8490_v50 = vld [vmem:[#allocation43_spill] sm:$0xff] }
 0x8f5   :  { %4333 = vrcp.f32 %v2457_v24  ;;  %v8496_v24 = vld [vmem:[#allocation13_spill] sm:$0xff] }
 0x8ff   :  { %v4328_v23 = vpop.eup %4327 }
 0x900   :  { %v4330_v48 = vpop.eup %4329 }
 0x901   :  { %v4332_v58 = vpop.eup %4331  ;;  %v2461_v46 = vmul.f32 %v4330_v48, %v4328_v23  ;;  %v8492_v23 = vld [vmem:[#allocation35_spill] sm:$0xff]  ;;  %v8494_v48 = vld [vmem:[#allocation45_spill] sm:$0xff] }
 0x902   :  { %v2460_v0 = vmul.f32 %v4332_v58, %v4096_v8  ;;  %v4334_v41 = vpop.eup %4333  ;;  %v8493_v8 = vld [vmem:[#allocation46_spill] sm:$0xff]  ;;  %v8495_v58 = vld [vmem:[#allocation4_spill] sm:$0xff] }
 0x904   :  { %v7032_v19 = vadd.f32 %v2461_v46, %v2460_v0  ;;  %v8497_v46 = vld [vmem:[#allocation36_spill] sm:$0xff]  ;;  %v8498_v0 = vld [vmem:[#allocation37_spill] sm:$0xff] }
 0x906   :  { %4335 = vtanh.f32 %v7032_v19 }
 0x913   :  { %v4336_v2 = vpop.eup %4335 }
 0x914   :  { %v7035_v40 = vmul.f32 %v4336_v2, %v4334_v41  ;;  %v8499_v41 = vld [vmem:[#allocation48_spill] sm:$0xff]  ;;  %v8500_v2 = vld [vmem:[#allocation47_spill] sm:$0xff] }
 0x916   :  { %8484 = vst [vmem:[#allocation56_spill] sm:$0xff] %v7035_v40  ;;  %2535 = vmatmul.mubr.f32.vlgmr.msra.gmra.mxu0 %v7035_v40  ;;  %2606 = vmatmul.mubr.f32.vlgmr.msra.gmra.mxu1 %v7035_v40  ;;  %v8501_v40 = vld [vmem:[#allocation15_spill] sm:$0xff] }
 0x917   :  { %2646 = vmatpush1.msra.mxu0 %v6497_v34  ;;  %2717 = vmatpush1.msra.mxu1 %v6502_v42 }
 0x918   :  { %2647 = vmatprep.subr.mxu0 %v6509_v56  ;;  %2718 = vmatprep.subr.mxu1 %v6514_v14 }
 0x919   :  { %2648 = vmatpush1.msra.mxu0 %v6521_v7  ;;  %2719 = vmatpush1.msra.mxu1 %v6526_v60 }
 0x91a   :  { %2649 = vmatprep.subr.mxu0 %v6533_v53  ;;  %2720 = vmatprep.subr.mxu1 %v6538_v49 }
 0x91b   :  { %2650 = vmatpush1.msra.mxu0 %v6545_v4  ;;  %2721 = vmatpush1.msra.mxu1 %v6550_v54 }
 0x91c   :  { %2651 = vmatprep.subr.mxu0 %v6557_v22  ;;  %2722 = vmatprep.subr.mxu1 %v6562_v57 }
 0x91d   :  { %2652 = vmatpush1.msra.mxu0 %v6569_v20  ;;  %2723 = vmatpush1.msra.mxu1 %v6574_v63 }
 0x91e   :  { %2653 = vmatprep.subr.mxu0 %v6581_v6  ;;  %2724 = vmatprep.subr.mxu1 %v6586_v10 }
 0x91f   :  { %2654 = vmatpush1.msra.mxu0 %v6593_v13  ;;  %2725 = vmatpush1.msra.mxu1 %v6598_v17 }
 0x920   :  { %2655 = vmatprep.subr.mxu0 %v6605_v21  ;;  %2726 = vmatprep.subr.mxu1 %v6610_v25 }
 0x921   :  { %2656 = vmatpush1.msra.mxu0 %v6617_v29  ;;  %2727 = vmatpush1.msra.mxu1 %v6622_v33 }
 0x922   :  { %2657 = vmatprep.subr.mxu0 %v6629_v37  ;;  %2728 = vmatprep.subr.mxu1 %v6634_v44 }
 0x923   :  { %2658 = vmatpush1.msra.mxu0 %v6641_v59  ;;  %2729 = vmatpush1.msra.mxu1 %v6646_v3 }
 0x924   :  { %2659 = vmatprep.subr.mxu0 %v6653_v18  ;;  %2730 = vmatprep.subr.mxu1 %v6658_v51 }
 0x925   :  { %2660 = vmatpush1.msra.mxu0 %v6665_v11  ;;  %2731 = vmatpush1.msra.mxu1 %v6670_v45 }
 0x926   :  { %2661 = vmatprep.subr.mxu0 %v6677_v15  ;;  %2732 = vmatprep.subr.mxu1 %v6682_v5 }
 0x927   :  { %2662 = vmatpush1.msra.mxu0 %v6689_v1  ;;  %2733 = vmatpush1.msra.mxu1 %v6694_v61 }
 0x928   :  { %2663 = vmatprep.subr.mxu0 %v6701_v47  ;;  %2734 = vmatprep.subr.mxu1 %v6706_v16 }
 0x929   :  { %2664 = vmatpush1.msra.mxu0 %v6713_v31  ;;  %2735 = vmatpush1.msra.mxu1 %v6718_v39 }
 0x92a   :  { %2665 = vmatprep.subr.mxu0 %v6725_v30  ;;  %2736 = vmatprep.subr.mxu1 %v6730_v55 }
 0x92b   :  { %2666 = vmatpush1.msra.mxu0 %v6737_v27  ;;  %2737 = vmatpush1.msra.mxu1 %v6742_v43 }
 0x92c   :  { %2667 = vmatprep.subr.mxu0 %v8485_v62  ;;  %2738 = vmatprep.subr.mxu1 %v8486_v32  ;;  %v8511_v32 = vld [vmem:[#allocation6_spill] sm:$0xff] }
 0x92d   :  { %2668 = vmatpush1.msra.mxu0 %v8487_v38  ;;  %2739 = vmatpush1.msra.mxu1 %v8488_v26 }
 0x92e   :  { %2669 = vmatprep.subr.mxu0 %v8489_v52  ;;  %2740 = vmatprep.subr.mxu1 %v8490_v50 }
 0x92f   :  { %2670 = vmatpush1.msra.mxu0 %v8491_v9  ;;  %2741 = vmatpush1.msra.mxu1 %v8492_v23  ;;  %v8502_v9 = vld [vmem:[#allocation5_spill] sm:$0xff]  ;;  %v8503_v23 = vld [vmem:[#allocation28_spill] sm:$0xff] }
 0x930   :  { %2671 = vmatprep.subr.mxu0 %v8493_v8  ;;  %2742 = vmatprep.subr.mxu1 %v8494_v48  ;;  %v8504_v8 = vmov 0.0   ;;  %v8505_v48 = vld [vmem:[#allocation17_spill] sm:$0xff] }
 0x931   :  { %2672 = vmatpush1.msra.mxu0 %v8495_v58  ;;  %2743 = vmatpush1.msra.mxu1 %v8496_v24  ;;  %v8506_v24 = vld [vmem:[#allocation22_spill] sm:$0xff] }
 0x932   :  { %2673 = vmatprep.subr.mxu0 %v8497_v46  ;;  %2744 = vmatprep.subr.mxu1 %v8498_v0  ;;  %v8507_v46 = vld [vmem:[#allocation23_spill] sm:$0xff] }
 0x933   :  { %2674 = vmatpush1.msra.mxu0 %v8499_v41  ;;  %2745 = vmatpush1.msra.mxu1 %v8500_v2  ;;  %v8508_v41 = vld [vmem:[#allocation29_spill] sm:$0xff] }
 0x934   :  { %2675 = vmatprep.subr.mxu0 %v8501_v40  ;;  %2746 = vmatprep.subr.mxu1 %v8502_v9  ;;  %v2037_v0 = vadd.f32 %v8508_v41, %v7001_v12  ;;  %v8509_v40 = vld [vmem:[#allocation30_spill] sm:$0xff]  ;;  %v2150_v41 = vadd.f32 %v8511_v32, %v7026_v28 }
 0x935   :  { %2676 = vmatpush1.msra.mxu0 %v8503_v23  ;;  %2709 = vmatprep.mubr.f32.mxu0 %v8504_v8  ;;  %v2039_v58 = vadd.f32 %v8509_v40, %v7009_v36 }
 0x936   :  { %2747 = vmatpush1.msra.mxu1 %v8505_v48  ;;  %2780 = vmatprep.mubr.f32.mxu1 %v8504_v8 }
 0x937   :  { %2820 = vmatprep.subr.mxu0 %v8506_v24  ;;  %2891 = vmatprep.subr.mxu1 %v8507_v46  ;;  %v8510_v24 = vld [vmem:[#allocation7_spill] sm:$0xff] }
 0x938   :  { %v2152_v38 = vadd.f32 %v8510_v24, %v7021_v35 }
 0x9d6   :  { %v2536_v2 = vpop.f32.mrf.mxu0  ;;  %v2607_v26 = vpop.f32.mrf.mxu1 }
 0x9d7   :  { %v2612_v9 = vadd.f32 %v2536_v2, %v2037_v0  ;;  %v2614_v12 = vadd.f32 %v2607_v26, %v2150_v41  ;;  %v8531_v26 = vld [vmem:[#allocation5_spill] sm:$0xff]  ;;  %v8533_v2 = vmov 0.0  }
 0x9d8   :  { %v2538_v50 = vpop.f32.mrf.mxu0  ;;  %v2609_v8 = vpop.f32.mrf.mxu1  ;;  %v8534_v41 = vld [vmem:[#allocation17_spill] sm:$0xff] }
 0x9d9   :  { %v4100_v23 = vmul.f32 -1.442695, %v2612_v9  ;;  %v2613_v52 = vadd.f32 %v2538_v50, %v2039_v58  ;;  %v2615_v46 = vadd.f32 %v2609_v8, %v2152_v38 }
 0x9db   :  { %4337 = vpow2.f32 %v4100_v23  ;;  %v4101_v48 = vmul.f32 -1.442695, %v2613_v52  ;;  %v4102_v62 = vmul.f32 -1.442695, %v2615_v46  ;;  %v8532_v46 = vld [vmem:[#allocation28_spill] sm:$0xff] }
 0x9dd   :  { %4339 = vpow2.f32 %v4101_v48 }
 0x9de   :  { %4341 = vtanh.f32 %v2614_v12 }
 0x9df   :  { %4343 = vpow2.f32 %v4102_v62  ;;  %v8530_v62 = vld [vmem:[#allocation15_spill] sm:$0xff] }
 0x9e8   :  { %v4338_v43 = vpop.eup %4337 }
 0x9e9   :  { %v2619_v40 = vadd.f32 1.0, %v4338_v43 }
 0x9ea   :  { %v4340_v0 = vpop.eup %4339 }
 0x9eb   :  { %4345 = vrcp.f32 %v2619_v40  ;;  %v2625_v50 = vadd.f32 1.0, %v4340_v0  ;;  %v4342_v52 = vpop.eup %4341  ;;  %v8535_v40 = vld [vmem:[#allocation22_spill] sm:$0xff]  ;;  %v8536_v0 = vld [vmem:[#allocation23_spill] sm:$0xff] }
 0x9ec   :  { %v4344_v9 = vpop.eup %4343 }
 0x9ed   :  { %4347 = vrcp.f32 %v2625_v50  ;;  %v2632_v24 = vadd.f32 1.0, %v4344_v9  ;;  %v8537_v50 = vld [vmem:[#allocation41_spill] sm:$0xff] }
 0x9ef   :  { %4349 = vrcp.f32 %v2632_v24 }
 0x9f8   :  { %v4346_v23 = vpop.eup %4345 }
 0x9f9   :  { %v2636_v48 = vmul.f32 %v4346_v23, %v4342_v52  ;;  %v8538_v52 = vld [vmem:[#allocation31_spill] sm:$0xff] }
 0x9fa   :  { %v4348_v58 = vpop.eup %4347  ;;  %v2043_v9 = vadd.f32 %v8538_v52, %v8537_v50 }
 0x9fb   :  { %v2635_v38 = vmul.f32 %v4348_v58, %v7032_v19  ;;  %v8529_v19 = vld [vmem:[#allocation47_spill] sm:$0xff] }
 0x9fc   :  { %v4350_v43 = vpop.eup %4349 }
 0x9fd   :  { %v7114_v8 = vadd.f32 %v2636_v48, %v2635_v38  ;;  %v8539_v48 = vld [vmem:[#allocation42_spill] sm:$0xff] }
 0x9fe   :  { %v2045_v58 = vadd.f32 %v8539_v48, %v7009_v36 }
 0x9ff   :  { %4351 = vtanh.f32 %v7114_v8 }
 0xa0c   :  { %v4352_v12 = vpop.eup %4351 }
 0xa0d   :  { %v7117_v32 = vmul.f32 %v4352_v12, %v4350_v43 }
 0xa0f   :  { %8512 = vst [vmem:[#allocation29_spill] sm:$0xff] %v7117_v32  ;;  %2710 = vmatmul.mubr.f32.vlgmr.msra.gmra.mxu0 %v7117_v32  ;;  %2781 = vmatmul.mubr.f32.vlgmr.msra.gmra.mxu1 %v7117_v32 }
 0xa10   :  { %2821 = vmatpush1.msra.mxu0 %v6497_v34  ;;  %2892 = vmatpush1.msra.mxu1 %v6502_v42  ;;  %v8513_v34 = vld [vmem:[#allocation24_spill] sm:$0xff]  ;;  %v8514_v42 = vld [vmem:[#allocation25_spill] sm:$0xff] }
 0xa11   :  { %2822 = vmatprep.subr.mxu0 %v6509_v56  ;;  %2893 = vmatprep.subr.mxu1 %v6514_v14  ;;  %v8515_v56 = vld [vmem:[#allocation26_spill] sm:$0xff]  ;;  %v8516_v14 = vld [vmem:[#allocation32_spill] sm:$0xff] }
 0xa12   :  { %2823 = vmatpush1.msra.mxu0 %v6521_v7  ;;  %2894 = vmatpush1.msra.mxu1 %v6526_v60  ;;  %v8517_v7 = vld [vmem:[#allocation33_spill] sm:$0xff]  ;;  %v8518_v60 = vld [vmem:[#allocation44_spill] sm:$0xff] }
 0xa13   :  { %2824 = vmatprep.subr.mxu0 %v6533_v53  ;;  %2895 = vmatprep.subr.mxu1 %v6538_v49  ;;  %v8519_v53 = vld [vmem:[#allocation43_spill] sm:$0xff]  ;;  %v8520_v49 = vld [vmem:[#allocation34_spill] sm:$0xff] }
 0xa14   :  { %2825 = vmatpush1.msra.mxu0 %v6545_v4  ;;  %2896 = vmatpush1.msra.mxu1 %v6550_v54  ;;  %v8521_v4 = vld [vmem:[#allocation35_spill] sm:$0xff]  ;;  %v8522_v54 = vld [vmem:[#allocation46_spill] sm:$0xff] }
 0xa15   :  { %2826 = vmatprep.subr.mxu0 %v6557_v22  ;;  %2897 = vmatprep.subr.mxu1 %v6562_v57  ;;  %v8523_v22 = vld [vmem:[#allocation45_spill] sm:$0xff]  ;;  %v8524_v57 = vld [vmem:[#allocation4_spill] sm:$0xff] }
 0xa16   :  { %2827 = vmatpush1.msra.mxu0 %v6569_v20  ;;  %2898 = vmatpush1.msra.mxu1 %v6574_v63  ;;  %v8525_v20 = vld [vmem:[#allocation13_spill] sm:$0xff]  ;;  %v8526_v63 = vld [vmem:[#allocation36_spill] sm:$0xff] }
 0xa17   :  { %2828 = vmatprep.subr.mxu0 %v6581_v6  ;;  %2899 = vmatprep.subr.mxu1 %v6586_v10  ;;  %v8527_v6 = vld [vmem:[#allocation37_spill] sm:$0xff]  ;;  %v8528_v10 = vld [vmem:[#allocation48_spill] sm:$0xff] }
 0xa18   :  { %2829 = vmatpush1.msra.mxu0 %v6593_v13  ;;  %2900 = vmatpush1.msra.mxu1 %v6598_v17 }
 0xa19   :  { %2830 = vmatprep.subr.mxu0 %v6605_v21  ;;  %2901 = vmatprep.subr.mxu1 %v6610_v25 }
 0xa1a   :  { %2831 = vmatpush1.msra.mxu0 %v6617_v29  ;;  %2902 = vmatpush1.msra.mxu1 %v6622_v33 }
 0xa1b   :  { %2832 = vmatprep.subr.mxu0 %v6629_v37  ;;  %2903 = vmatprep.subr.mxu1 %v6634_v44 }
 0xa1c   :  { %2833 = vmatpush1.msra.mxu0 %v6641_v59  ;;  %2904 = vmatpush1.msra.mxu1 %v6646_v3 }
 0xa1d   :  { %2834 = vmatprep.subr.mxu0 %v6653_v18  ;;  %2905 = vmatprep.subr.mxu1 %v6658_v51 }
 0xa1e   :  { %2835 = vmatpush1.msra.mxu0 %v6665_v11  ;;  %2906 = vmatpush1.msra.mxu1 %v6670_v45 }
 0xa1f   :  { %2836 = vmatprep.subr.mxu0 %v6677_v15  ;;  %2907 = vmatprep.subr.mxu1 %v6682_v5 }
 0xa20   :  { %2837 = vmatpush1.msra.mxu0 %v6689_v1  ;;  %2908 = vmatpush1.msra.mxu1 %v6694_v61 }
 0xa21   :  { %2838 = vmatprep.subr.mxu0 %v6701_v47  ;;  %2909 = vmatprep.subr.mxu1 %v6706_v16 }
 0xa22   :  { %2839 = vmatpush1.msra.mxu0 %v6713_v31  ;;  %2910 = vmatpush1.msra.mxu1 %v6718_v39 }
 0xa23   :  { %2840 = vmatprep.subr.mxu0 %v6725_v30  ;;  %2911 = vmatprep.subr.mxu1 %v6730_v55 }
 0xa24   :  { %2841 = vmatpush1.msra.mxu0 %v6737_v27  ;;  %2912 = vmatpush1.msra.mxu1 %v8513_v34 }
 0xa25   :  { %2842 = vmatprep.subr.mxu0 %v8514_v42  ;;  %2913 = vmatprep.subr.mxu1 %v8515_v56 }
 0xa26   :  { %2843 = vmatpush1.msra.mxu0 %v8516_v14  ;;  %2914 = vmatpush1.msra.mxu1 %v8517_v7 }
 0xa27   :  { %2844 = vmatprep.subr.mxu0 %v8518_v60  ;;  %2915 = vmatprep.subr.mxu1 %v8519_v53 }
 0xa28   :  { %2845 = vmatpush1.msra.mxu0 %v8520_v49  ;;  %2916 = vmatpush1.msra.mxu1 %v8521_v4 }
 0xa29   :  { %2846 = vmatprep.subr.mxu0 %v8522_v54  ;;  %2917 = vmatprep.subr.mxu1 %v8523_v22 }
 0xa2a   :  { %2847 = vmatpush1.msra.mxu0 %v8524_v57  ;;  %2918 = vmatpush1.msra.mxu1 %v8525_v20 }
 0xa2b   :  { %2848 = vmatprep.subr.mxu0 %v8526_v63  ;;  %2919 = vmatprep.subr.mxu1 %v8527_v6 }
 0xa2c   :  { %2849 = vmatpush1.msra.mxu0 %v8528_v10  ;;  %2920 = vmatpush1.msra.mxu1 %v8529_v19 }
 0xa2d   :  { %2850 = vmatprep.subr.mxu0 %v8530_v62  ;;  %2921 = vmatprep.subr.mxu1 %v8531_v26  ;;  %v8541_v26 = vld [vmem:[#allocation8_spill] sm:$0xff] }
 0xa2e   :  { %2851 = vmatpush1.msra.mxu0 %v8532_v46  ;;  %2884 = vmatprep.mubr.f32.mxu0 %v8533_v2  ;;  %v2156_v52 = vadd.f32 %v8541_v26, %v7026_v28 }
 0xa2f   :  { %2922 = vmatpush1.msra.mxu1 %v8534_v41  ;;  %2955 = vmatprep.mubr.f32.mxu1 %v8533_v2 }
 0xa30   :  { %2995 = vmatprep.subr.mxu0 %v8535_v40  ;;  %3066 = vmatprep.subr.mxu1 %v8536_v0  ;;  %v8540_v40 = vld [vmem:[#allocation9_spill] sm:$0xff] }
 0xa31   :  { %v2158_v46 = vadd.f32 %v8540_v40, %v7021_v35  ;;  %v7224_v40 = vld [vmem:[%s7996_s2 + $0x3d8] sm:$0xff] }
 0xacf   :  { %v2711_v23 = vpop.f32.mrf.mxu0  ;;  %v2782_v32 = vpop.f32.mrf.mxu1 }
 0xad0   :  { %v2787_v24 = vadd.f32 %v2711_v23, %v2043_v9  ;;  %v2789_v50 = vadd.f32 %v2782_v32, %v2156_v52  ;;  %v7236_v52 = vld [vmem:[%s7996_s2 + $0x3d0] sm:$0xff] }
 0xad1   :  { %v2713_v38 = vpop.f32.mrf.mxu0  ;;  %v2784_v2 = vpop.f32.mrf.mxu1 }
 0xad2   :  { %v4103_v43 = vmul.f32 -1.442695, %v2787_v24  ;;  %v2788_v12 = vadd.f32 %v2713_v38, %v2045_v58  ;;  %v2790_v0 = vadd.f32 %v2784_v2, %v2158_v46 }
 0xad4   :  { %4353 = vpow2.f32 %v4103_v43  ;;  %v4104_v41 = vmul.f32 -1.442695, %v2788_v12  ;;  %v4105_v62 = vmul.f32 -1.442695, %v2790_v0  ;;  %v7230_v0 = vld [vmem:[%s7996_s2 + $0x3c0] sm:$0xff] }
 0xad6   :  { %4355 = vpow2.f32 %v4104_v41 }
 0xad7   :  { %4357 = vtanh.f32 %v2789_v50  ;;  %v7218_v50 = vld [vmem:[%s7996_s2 + $0x3c8] sm:$0xff] }
 0xad8   :  { %4359 = vpow2.f32 %v4105_v62  ;;  %v7206_v62 = vld [vmem:[%s7996_s2 + $0x3e0] sm:$0xff] }
 0xae1   :  { %v4354_v19 = vpop.eup %4353 }
 0xae2   :  { %v2794_v48 = vadd.f32 1.0, %v4354_v19 }
 0xae3   :  { %v4356_v9 = vpop.eup %4355 }
 0xae4   :  { %4361 = vrcp.f32 %v2794_v48  ;;  %v2800_v23 = vadd.f32 1.0, %v4356_v9  ;;  %v4358_v58 = vpop.eup %4357  ;;  %v7242_v48 = vld [vmem:[%s7996_s2 + $0x3a8] sm:$0xff]  ;;  %v7248_v9 = vld [vmem:[%s7996_s2 + $0x3b8] sm:$0xff] }
 0xae5   :  { %v4360_v41 = vpop.eup %4359 }
 0xae6   :  { %4363 = vrcp.f32 %v2800_v23  ;;  %v2807_v12 = vadd.f32 1.0, %v4360_v41  ;;  %v7254_v23 = vld [vmem:[%s7996_s2 + $0x3a0] sm:$0xff]  ;;  %v7266_v41 = vld [vmem:[%s7996_s2 + $0x388] sm:$0xff] }
 0xae8   :  { %4365 = vrcp.f32 %v2807_v12  ;;  %v7290_v12 = vld [vmem:[%s7996_s2 + $0x368] sm:$0xff] }
 0xaf1   :  { %v4362_v24 = vpop.eup %4361 }
 0xaf2   :  { %v2811_v38 = vmul.f32 %v4362_v24, %v4358_v58  ;;  %v7260_v58 = vld [vmem:[%s7996_s2 + $0x3b0] sm:$0xff]  ;;  %v7272_v24 = vld [vmem:[%s7996_s2 + $0x398] sm:$0xff] }
 0xaf3   :  { %v4364_v43 = vpop.eup %4363 }
 0xaf4   :  { %v2810_v46 = vmul.f32 %v4364_v43, %v7114_v8  ;;  %v7212_v8 = vld [vmem:[%s7996_s2 + $0x3f0] sm:$0xff] }
 0xaf5   :  { %v4366_v32 = vpop.eup %4365  ;;  %v7284_v43 = vld [vmem:[%s7996_s2 + $0x390] sm:$0xff] }
 0xaf6   :  { %v7196_v2 = vadd.f32 %v2811_v38, %v2810_v46  ;;  %v7278_v38 = vld [vmem:[%s7996_s2 + $0x380] sm:$0xff]  ;;  %v7296_v46 = vld [vmem:[%s7996_s2 + $0x378] sm:$0xff] }
 0xaf8   :  { %4367 = vtanh.f32 %v7196_v2 }
 0xb05   :  { %v4368_v19 = vpop.eup %4367 }
 0xb06   :  { %v7199_v26 = vmul.f32 %v4368_v19, %v4366_v32 }
 0xb08   :  { %8542 = vst [vmem:[#allocation30_spill] sm:$0xff] %v7199_v26  ;;  %2885 = vmatmul.mubr.f32.vlgmr.msra.gmra.mxu0 %v7199_v26  ;;  %2956 = vmatmul.mubr.f32.vlgmr.msra.gmra.mxu1 %v7199_v26  ;;  %v7628_v26 = vld [vmem:[%s7996_s2 + $0x238] sm:$0xff] }
 0xb09   :  { %2996 = vmatpush1.msra.mxu0 %v7206_v62  ;;  %3067 = vmatpush1.msra.mxu1 %v7212_v8  ;;  %8571 = vst [vmem:[#allocation48_spill] sm:$0xff] %v7628_v26 }
 0xb0a   :  { %2997 = vmatprep.subr.mxu0 %v7218_v50  ;;  %3068 = vmatprep.subr.mxu1 %v7224_v40 }
 0xb0b   :  { %2998 = vmatpush1.msra.mxu0 %v7230_v0  ;;  %3069 = vmatpush1.msra.mxu1 %v7236_v52 }
 0xb0c   :  { %2999 = vmatprep.subr.mxu0 %v7242_v48  ;;  %3070 = vmatprep.subr.mxu1 %v7248_v9 }
 0xb0d   :  { %3000 = vmatpush1.msra.mxu0 %v7254_v23  ;;  %3071 = vmatpush1.msra.mxu1 %v7260_v58 }
 0xb0e   :  { %3001 = vmatprep.subr.mxu0 %v7266_v41  ;;  %3072 = vmatprep.subr.mxu1 %v7272_v24 }
 0xb0f   :  { %3002 = vmatpush1.msra.mxu0 %v7278_v38  ;;  %3073 = vmatpush1.msra.mxu1 %v7284_v43 }
 0xb10   :  { %3003 = vmatprep.subr.mxu0 %v7290_v12  ;;  %3074 = vmatprep.subr.mxu1 %v7296_v46 }
 0xb11   :  { %3004 = vmatpush1.msra.mxu0 %v6593_v13  ;;  %3075 = vmatpush1.msra.mxu1 %v6598_v17  ;;  %v8543_v13 = vld [vmem:[#allocation47_spill] sm:$0xff] }
 0xb12   :  { %3005 = vmatprep.subr.mxu0 %v6605_v21  ;;  %3076 = vmatprep.subr.mxu1 %v6610_v25  ;;  %v8544_v17 = vld [vmem:[#allocation15_spill] sm:$0xff]  ;;  %v8545_v21 = vld [vmem:[#allocation5_spill] sm:$0xff]  ;;  %v8546_v25 = vld [vmem:[#allocation28_spill] sm:$0xff] }
 0xb13   :  { %3006 = vmatpush1.msra.mxu0 %v6617_v29  ;;  %3077 = vmatpush1.msra.mxu1 %v6622_v33  ;;  %v8547_v29 = vmov 0.0   ;;  %v8548_v33 = vld [vmem:[#allocation17_spill] sm:$0xff] }
 0xb14   :  { %3007 = vmatprep.subr.mxu0 %v6629_v37  ;;  %3078 = vmatprep.subr.mxu1 %v6634_v44  ;;  %v7350_v37 = vld [vmem:[%s7996_s2 + $0x3e8] sm:$0xff]  ;;  %v7356_v44 = vld [vmem:[%s7996_s2 + $0x3f8] sm:$0xff] }
 0xb15   :  { %3008 = vmatpush1.msra.mxu0 %v6641_v59  ;;  %3079 = vmatpush1.msra.mxu1 %v6646_v3  ;;  %8549 = vst [vmem:[#allocation7_spill] sm:$0xff] %v7350_v37  ;;  %8550 = vst [vmem:[#allocation6_spill] sm:$0xff] %v7356_v44  ;;  %v8551_v59 = vld [vmem:[#allocation41_spill] sm:$0xff]  ;;  %v8552_v3 = vld [vmem:[#allocation18_spill] sm:$0xff] }
 0xb16   :  { %3009 = vmatprep.subr.mxu0 %v6653_v18  ;;  %3080 = vmatprep.subr.mxu1 %v6658_v51  ;;  %v2049_v18 = vadd.f32 %v8552_v3, %v8551_v59  ;;  %v7430_v3 = vld [vmem:[%s7996_s2 + $0x328] sm:$0xff] }
 0xb17   :  { %3010 = vmatpush1.msra.mxu0 %v6665_v11  ;;  %3081 = vmatpush1.msra.mxu1 %v6670_v45  ;;  %v8553_v11 = vld [vmem:[#allocation19_spill] sm:$0xff] }
 0xb18   :  { %3011 = vmatprep.subr.mxu0 %v6677_v15  ;;  %3082 = vmatprep.subr.mxu1 %v6682_v5  ;;  %v2051_v45 = vadd.f32 %v8553_v11, %v7009_v36  ;;  %v7448_v11 = vld [vmem:[%s7996_s2 + $0x330] sm:$0xff] }
 0xb19   :  { %3012 = vmatpush1.msra.mxu0 %v6689_v1  ;;  %3083 = vmatpush1.msra.mxu1 %v6694_v61 }
 0xb1a   :  { %3013 = vmatprep.subr.mxu0 %v6701_v47  ;;  %3084 = vmatprep.subr.mxu1 %v6706_v16 }
 0xb1b   :  { %3014 = vmatpush1.msra.mxu0 %v6713_v31  ;;  %3085 = vmatpush1.msra.mxu1 %v6718_v39  ;;  %v8554_v39 = vld [vmem:[#allocation11_spill] sm:$0xff] }
 0xb1c   :  { %3015 = vmatprep.subr.mxu0 %v6725_v30  ;;  %3086 = vmatprep.subr.mxu1 %v6730_v55  ;;  %v2164_v30 = vadd.f32 %v8554_v39, %v7021_v35  ;;  %v7502_v39 = vld [vmem:[%s7996_s2 + $0x2c8] sm:$0xff] }
 0xb1d   :  { %3016 = vmatpush1.msra.mxu0 %v6737_v27  ;;  %3087 = vmatpush1.msra.mxu1 %v8513_v34  ;;  %v8555_v27 = vld [vmem:[#allocation10_spill] sm:$0xff] }
 0xb1e   :  { %3017 = vmatprep.subr.mxu0 %v8514_v42  ;;  %3088 = vmatprep.subr.mxu1 %v8515_v56  ;;  %v2162_v34 = vadd.f32 %v8555_v27, %v7026_v28  ;;  %v7520_v27 = vld [vmem:[%s7996_s2 + $0x2d0] sm:$0xff] }
 0xb1f   :  { %3018 = vmatpush1.msra.mxu0 %v8516_v14  ;;  %3089 = vmatpush1.msra.mxu1 %v8517_v7 }
 0xb20   :  { %3019 = vmatprep.subr.mxu0 %v8518_v60  ;;  %3090 = vmatprep.subr.mxu1 %v8519_v53 }
 0xb21   :  { %3020 = vmatpush1.msra.mxu0 %v8520_v49  ;;  %3091 = vmatpush1.msra.mxu1 %v8521_v4 }
 0xb22   :  { %3021 = vmatprep.subr.mxu0 %v8522_v54  ;;  %3092 = vmatprep.subr.mxu1 %v8523_v22 }
 0xb23   :  { %3022 = vmatpush1.msra.mxu0 %v8524_v57  ;;  %3093 = vmatpush1.msra.mxu1 %v8525_v20 }
 0xb24   :  { %3023 = vmatprep.subr.mxu0 %v8526_v63  ;;  %3094 = vmatprep.subr.mxu1 %v8527_v6 }
 0xb25   :  { %3024 = vmatpush1.msra.mxu0 %v8528_v10  ;;  %3095 = vmatpush1.msra.mxu1 %v8543_v13  ;;  %v7400_v13 = vld [vmem:[%s7996_s2 + $0x370] sm:$0xff] }
 0xb26   :  { %3025 = vmatprep.subr.mxu0 %v8544_v17  ;;  %3096 = vmatprep.subr.mxu1 %v8545_v21  ;;  %v7406_v17 = vld [vmem:[%s7996_s2 + $0x348] sm:$0xff]  ;;  %v7412_v21 = vld [vmem:[%s7996_s2 + $0x358] sm:$0xff] }
 0xb27   :  { %3026 = vmatpush1.msra.mxu0 %v8546_v25  ;;  %3059 = vmatprep.mubr.f32.mxu0 %v8547_v29  ;;  %v7418_v25 = vld [vmem:[%s7996_s2 + $0x340] sm:$0xff] }
 0xb28   :  { %3097 = vmatpush1.msra.mxu1 %v8548_v33  ;;  %3130 = vmatprep.mubr.f32.mxu1 %v8547_v29  ;;  %v7424_v33 = vld [vmem:[%s7996_s2 + $0x350] sm:$0xff] }
 0xb29   :  { %3170 = vmatprep.subr.mxu0 %v7350_v37  ;;  %3241 = vmatprep.subr.mxu1 %v7356_v44 }
 0xbc8   :  { %v2886_v51 = vpop.f32.mrf.mxu0  ;;  %v2957_v47 = vpop.f32.mrf.mxu1 }
 0xbc9   :  { %v2962_v15 = vadd.f32 %v2886_v51, %v2049_v18  ;;  %v2964_v42 = vadd.f32 %v2957_v47, %v2162_v34  ;;  %v7436_v18 = vld [vmem:[%s7996_s2 + $0x338] sm:$0xff]  ;;  %v7442_v51 = vld [vmem:[%s7996_s2 + $0x320] sm:$0xff]  ;;  %v7526_v34 = vld [vmem:[%s7996_s2 + $0x2a8] sm:$0xff] }
 0xbca   :  { %v2888_v5 = vpop.f32.mrf.mxu0  ;;  %v2959_v31 = vpop.f32.mrf.mxu1  ;;  %v7484_v47 = vld [vmem:[%s7996_s2 + $0x2f8] sm:$0xff] }
 0xbcb   :  { %v4106_v1 = vmul.f32 -1.442695, %v2962_v15  ;;  %v2963_v61 = vadd.f32 %v2888_v5, %v2051_v45  ;;  %v2965_v55 = vadd.f32 %v2959_v31, %v2164_v30  ;;  %v7454_v45 = vld [vmem:[%s7996_s2 + $0x308] sm:$0xff]  ;;  %v7460_v15 = vld [vmem:[%s7996_s2 + $0x318] sm:$0xff]  ;;  %v7466_v5 = vld [vmem:[%s7996_s2 + $0x300] sm:$0xff] }
 0xbcc   :  { %v7496_v31 = vld [vmem:[%s7996_s2 + $0x2f0] sm:$0xff]  ;;  %v7508_v30 = vld [vmem:[%s7996_s2 + $0x2d8] sm:$0xff] }
 0xbcd   :  { %4369 = vpow2.f32 %v4106_v1  ;;  %v4107_v16 = vmul.f32 -1.442695, %v2963_v61  ;;  %v4108_v56 = vmul.f32 -1.442695, %v2965_v55  ;;  %v7472_v1 = vld [vmem:[%s7996_s2 + $0x310] sm:$0xff]  ;;  %v7478_v61 = vld [vmem:[%s7996_s2 + $0x2e8] sm:$0xff] }
 0xbce   :  { %v7514_v55 = vld [vmem:[%s7996_s2 + $0x2c0] sm:$0xff] }
 0xbcf   :  { %4371 = vpow2.f32 %v4107_v16  ;;  %v7490_v16 = vld [vmem:[%s7996_s2 + $0x2e0] sm:$0xff] }
 0xbd0   :  { %4373 = vtanh.f32 %v2964_v42  ;;  %v7532_v42 = vld [vmem:[%s7996_s2 + $0x2b8] sm:$0xff] }
 0xbd1   :  { %4375 = vpow2.f32 %v4108_v56  ;;  %v7538_v56 = vld [vmem:[%s7996_s2 + $0x2a0] sm:$0xff] }
 0xbda   :  { %v4370_v14 = vpop.eup %4369 }
 0xbdb   :  { %v2969_v7 = vadd.f32 1.0, %v4370_v14  ;;  %v7544_v14 = vld [vmem:[%s7996_s2 + $0x2b0] sm:$0xff] }
 0xbdc   :  { %v4372_v60 = vpop.eup %4371  ;;  %8557 = vst [vmem:[#allocation25_spill] sm:$0xff] %v7544_v14 }
 0xbdd   :  { %4377 = vrcp.f32 %v2969_v7  ;;  %v2975_v53 = vadd.f32 1.0, %v4372_v60  ;;  %v4374_v49 = vpop.eup %4373  ;;  %v7550_v7 = vld [vmem:[%s7996_s2 + $0x288] sm:$0xff]  ;;  %v7556_v60 = vld [vmem:[%s7996_s2 + $0x298] sm:$0xff] }
 0xbde   :  { %v4376_v4 = vpop.eup %4375  ;;  %8558 = vst [vmem:[#allocation26_spill] sm:$0xff] %v7550_v7  ;;  %8559 = vst [vmem:[#allocation32_spill] sm:$0xff] %v7556_v60 }
 0xbdf   :  { %4379 = vrcp.f32 %v2975_v53  ;;  %v2982_v20 = vadd.f32 1.0, %v4376_v4  ;;  %v7562_v53 = vld [vmem:[%s7996_s2 + $0x280] sm:$0xff]  ;;  %v7574_v4 = vld [vmem:[%s7996_s2 + $0x268] sm:$0xff] }
 0xbe0   :  { %8560 = vst [vmem:[#allocation33_spill] sm:$0xff] %v7562_v53  ;;  %8562 = vst [vmem:[#allocation43_spill] sm:$0xff] %v7574_v4 }
 0xbe1   :  { %4381 = vrcp.f32 %v2982_v20  ;;  %v7598_v20 = vld [vmem:[%s7996_s2 + $0x248] sm:$0xff] }
 0xbe2   :  { %8566 = vst [vmem:[#allocation45_spill] sm:$0xff] %v7598_v20 }
 0xbea   :  { %v4378_v54 = vpop.eup %4377 }
 0xbeb   :  { %v2986_v22 = vmul.f32 %v4378_v54, %v4374_v49  ;;  %v7568_v49 = vld [vmem:[%s7996_s2 + $0x290] sm:$0xff]  ;;  %v7580_v54 = vld [vmem:[%s7996_s2 + $0x278] sm:$0xff] }
 0xbec   :  { %v4380_v57 = vpop.eup %4379  ;;  %8561 = vst [vmem:[#allocation44_spill] sm:$0xff] %v7568_v49  ;;  %8563 = vst [vmem:[#allocation34_spill] sm:$0xff] %v7580_v54 }
 0xbed   :  { %v2985_v63 = vmul.f32 %v4380_v57, %v7196_v2  ;;  %v7394_v2 = vld [vmem:[%s7996_s2 + $0x360] sm:$0xff]  ;;  %v7592_v57 = vld [vmem:[%s7996_s2 + $0x270] sm:$0xff] }
 0xbee   :  { %v4382_v10 = vpop.eup %4381  ;;  %8565 = vst [vmem:[#allocation46_spill] sm:$0xff] %v7592_v57 }
 0xbef   :  { %v7368_v6 = vadd.f32 %v2986_v22, %v2985_v63  ;;  %v7586_v22 = vld [vmem:[%s7996_s2 + $0x260] sm:$0xff]  ;;  %v7604_v63 = vld [vmem:[%s7996_s2 + $0x258] sm:$0xff] }
 0xbf0   :  { %8564 = vst [vmem:[#allocation35_spill] sm:$0xff] %v7586_v22  ;;  %8567 = vst [vmem:[#allocation4_spill] sm:$0xff] %v7604_v63 }
 0xbf1   :  { %4383 = vtanh.f32 %v7368_v6 }
 0xbfe   :  { %v4384_v32 = vpop.eup %4383 }
 0xbff   :  { %v7371_v19 = vmul.f32 %v4384_v32, %v4382_v10  ;;  %v7610_v10 = vld [vmem:[%s7996_s2 + $0x240] sm:$0xff]  ;;  %v7616_v32 = vld [vmem:[%s7996_s2 + $0x250] sm:$0xff] }
 0xc00   :  { %8568 = vst [vmem:[#allocation13_spill] sm:$0xff] %v7610_v10  ;;  %8569 = vst [vmem:[#allocation36_spill] sm:$0xff] %v7616_v32 }
 0xc01   :  { %8556 = vst [vmem:[#allocation24_spill] sm:$0xff] %v7371_v19  ;;  %3060 = vmatmul.mubr.f32.vlgmr.msra.gmra.mxu0 %v7371_v19  ;;  %3131 = vmatmul.mubr.f32.vlgmr.msra.gmra.mxu1 %v7371_v19  ;;  %v7622_v19 = vld [vmem:[%s7996_s2 + $0x228] sm:$0xff] }
 0xc02   :  { %3171 = vmatpush1.msra.mxu0 %v7206_v62  ;;  %3242 = vmatpush1.msra.mxu1 %v7212_v8  ;;  %8570 = vst [vmem:[#allocation37_spill] sm:$0xff] %v7622_v19 }
 0xc03   :  { %3172 = vmatprep.subr.mxu0 %v7218_v50  ;;  %3243 = vmatprep.subr.mxu1 %v7224_v40 }
 0xc04   :  { %3173 = vmatpush1.msra.mxu0 %v7230_v0  ;;  %3244 = vmatpush1.msra.mxu1 %v7236_v52 }
 0xc05   :  { %3174 = vmatprep.subr.mxu0 %v7242_v48  ;;  %3245 = vmatprep.subr.mxu1 %v7248_v9 }
 0xc06   :  { %3175 = vmatpush1.msra.mxu0 %v7254_v23  ;;  %3246 = vmatpush1.msra.mxu1 %v7260_v58 }
 0xc07   :  { %3176 = vmatprep.subr.mxu0 %v7266_v41  ;;  %3247 = vmatprep.subr.mxu1 %v7272_v24 }
 0xc08   :  { %3177 = vmatpush1.msra.mxu0 %v7278_v38  ;;  %3248 = vmatpush1.msra.mxu1 %v7284_v43 }
 0xc09   :  { %3178 = vmatprep.subr.mxu0 %v7290_v12  ;;  %3249 = vmatprep.subr.mxu1 %v7296_v46 }
 0xc0a   :  { %3179 = vmatpush1.msra.mxu0 %v7394_v2  ;;  %3250 = vmatpush1.msra.mxu1 %v7400_v13 }
 0xc0b   :  { %3180 = vmatprep.subr.mxu0 %v7406_v17  ;;  %3251 = vmatprep.subr.mxu1 %v7412_v21 }
 0xc0c   :  { %3181 = vmatpush1.msra.mxu0 %v7418_v25  ;;  %3252 = vmatpush1.msra.mxu1 %v7424_v33 }
 0xc0d   :  { %3182 = vmatprep.subr.mxu0 %v7430_v3  ;;  %3253 = vmatprep.subr.mxu1 %v7436_v18 }
 0xc0e   :  { %3183 = vmatpush1.msra.mxu0 %v7442_v51  ;;  %3254 = vmatpush1.msra.mxu1 %v7448_v11 }
 0xc0f   :  { %3184 = vmatprep.subr.mxu0 %v7454_v45  ;;  %3255 = vmatprep.subr.mxu1 %v7460_v15 }
 0xc10   :  { %3185 = vmatpush1.msra.mxu0 %v7466_v5  ;;  %3256 = vmatpush1.msra.mxu1 %v7472_v1 }
 0xc11   :  { %3186 = vmatprep.subr.mxu0 %v7478_v61  ;;  %3257 = vmatprep.subr.mxu1 %v7484_v47 }
 0xc12   :  { %3187 = vmatpush1.msra.mxu0 %v7490_v16  ;;  %3258 = vmatpush1.msra.mxu1 %v7496_v31 }
 0xc13   :  { %3188 = vmatprep.subr.mxu0 %v7502_v39  ;;  %3259 = vmatprep.subr.mxu1 %v7508_v30 }
 0xc14   :  { %3189 = vmatpush1.msra.mxu0 %v7514_v55  ;;  %3260 = vmatpush1.msra.mxu1 %v7520_v27 }
 0xc15   :  { %3190 = vmatprep.subr.mxu0 %v7526_v34  ;;  %3261 = vmatprep.subr.mxu1 %v7532_v42 }
 0xc16   :  { %3191 = vmatpush1.msra.mxu0 %v7538_v56  ;;  %3262 = vmatpush1.msra.mxu1 %v7544_v14 }
 0xc17   :  { %3192 = vmatprep.subr.mxu0 %v7550_v7  ;;  %3263 = vmatprep.subr.mxu1 %v7556_v60  ;;  %v8581_v60 = vld [vmem:[#allocation38_spill] sm:$0xff] }
 0xc18   :  { %3193 = vmatpush1.msra.mxu0 %v7562_v53  ;;  %3264 = vmatpush1.msra.mxu1 %v7568_v49 }
 0xc19   :  { %3194 = vmatprep.subr.mxu0 %v7574_v4  ;;  %3265 = vmatprep.subr.mxu1 %v7580_v54 }
 0xc1a   :  { %3195 = vmatpush1.msra.mxu0 %v7586_v22  ;;  %3266 = vmatpush1.msra.mxu1 %v7592_v57 }
 0xc1b   :  { %3196 = vmatprep.subr.mxu0 %v7598_v20  ;;  %3267 = vmatprep.subr.mxu1 %v7604_v63 }
 0xc1c   :  { %3197 = vmatpush1.msra.mxu0 %v7610_v10  ;;  %3268 = vmatpush1.msra.mxu1 %v7616_v32  ;;  %v7634_v10 = vld [vmem:[%s7996_s2 + $0x220] sm:$0xff]  ;;  %v7640_v32 = vld [vmem:[%s7996_s2 + $0x230] sm:$0xff] }
 0xc1d   :  { %3198 = vmatprep.subr.mxu0 %v7622_v19  ;;  %3269 = vmatprep.subr.mxu1 %v7628_v26  ;;  %8572 = vst [vmem:[#allocation22_spill] sm:$0xff] %v7634_v10  ;;  %8573 = vst [vmem:[#allocation23_spill] sm:$0xff] %v7640_v32  ;;  %v7646_v19 = vld [vmem:[%s7996_s2 + $0x208] sm:$0xff]  ;;  %v7652_v26 = vld [vmem:[%s7996_s2 + $0x218] sm:$0xff] }
 0xc1e   :  { %3199 = vmatpush1.msra.mxu0 %v7634_v10  ;;  %3270 = vmatpush1.msra.mxu1 %v7640_v32  ;;  %8574 = vst [vmem:[#allocation31_spill] sm:$0xff] %v7646_v19  ;;  %8575 = vst [vmem:[#allocation42_spill] sm:$0xff] %v7652_v26  ;;  %v7658_v10 = vld [vmem:[%s7996_s2 + $0x200] sm:$0xff] }
 0xc1f   :  { %3200 = vmatprep.subr.mxu0 %v7646_v19  ;;  %3271 = vmatprep.subr.mxu1 %v7652_v26  ;;  %8576 = vst [vmem:[#allocation9_spill] sm:$0xff] %v7658_v10  ;;  %v7665_v19 = vld [vmem:[%s7996_s2 + $0x210] sm:$0xff]  ;;  %v8578_v26 = vld [vmem:[#allocation20_spill] sm:$0xff] }
 0xc20   :  { %3201 = vmatpush1.msra.mxu0 %v7658_v10  ;;  %3234 = vmatprep.mubr.f32.mxu0 %v8547_v29  ;;  %8577 = vst [vmem:[#allocation8_spill] sm:$0xff] %v7665_v19  ;;  %v2055_v32 = vadd.f32 %v8578_v26, %v8551_v59  ;;  %v8579_v10 = vld [vmem:[#allocation39_spill] sm:$0xff]  ;;  %v2168_v26 = vadd.f32 %v8581_v60, %v7026_v28  ;;  %v8585_v60 = vld [vmem:[#allocation32_spill] sm:$0xff] }
 0xc21   :  { %3272 = vmatpush1.msra.mxu1 %v7665_v19  ;;  %3305 = vmatprep.mubr.f32.mxu1 %v8547_v29  ;;  %v2057_v20 = vadd.f32 %v8579_v10, %v7009_v36 }
 0xc22   :  { %3345 = vmatprep.subr.mxu0 %v7350_v37  ;;  %3416 = vmatprep.subr.mxu1 %v7356_v44  ;;  %v8580_v37 = vld [vmem:[#allocation50_spill] sm:$0xff] }
 0xc23   :  { %v2170_v53 = vadd.f32 %v8580_v37, %v7021_v35 }
 0xcc1   :  { %v3061_v63 = vpop.f32.mrf.mxu0  ;;  %v3132_v49 = vpop.f32.mrf.mxu1 }
 0xcc2   :  { %v3137_v57 = vadd.f32 %v3061_v63, %v2055_v32  ;;  %v3139_v59 = vadd.f32 %v3132_v49, %v2168_v26  ;;  %v8586_v49 = vld [vmem:[#allocation33_spill] sm:$0xff]  ;;  %v8587_v32 = vld [vmem:[#allocation44_spill] sm:$0xff]  ;;  %v8588_v26 = vld [vmem:[#allocation43_spill] sm:$0xff] }
 0xcc3   :  { %v3063_v22 = vpop.f32.mrf.mxu0  ;;  %v3134_v29 = vpop.f32.mrf.mxu1 }
 0xcc4   :  { %v4109_v54 = vmul.f32 -1.442695, %v3137_v57  ;;  %v3138_v4 = vadd.f32 %v3063_v22, %v2057_v20  ;;  %v3140_v44 = vadd.f32 %v3134_v29, %v2170_v53 }
 0xcc6   :  { %4385 = vpow2.f32 %v4109_v54  ;;  %v4110_v19 = vmul.f32 -1.442695, %v3138_v4  ;;  %v4111_v7 = vmul.f32 -1.442695, %v3140_v44 }
 0xcc8   :  { %4387 = vpow2.f32 %v4110_v19 }
 0xcc9   :  { %4389 = vtanh.f32 %v3139_v59 }
 0xcca   :  { %4391 = vpow2.f32 %v4111_v7  ;;  %v8584_v7 = vld [vmem:[#allocation26_spill] sm:$0xff] }
 0xcd3   :  { %v4386_v14 = vpop.eup %4385 }
 0xcd4   :  { %v3144_v10 = vadd.f32 1.0, %v4386_v14 }
 0xcd5   :  { %v4388_v63 = vpop.eup %4387 }
 0xcd6   :  { %4393 = vrcp.f32 %v3144_v10  ;;  %v3150_v54 = vadd.f32 1.0, %v4388_v63  ;;  %v4390_v4 = vpop.eup %4389  ;;  %v8589_v10 = vld [vmem:[#allocation34_spill] sm:$0xff]  ;;  %v8590_v63 = vld [vmem:[#allocation35_spill] sm:$0xff] }
 0xcd7   :  { %v4392_v19 = vpop.eup %4391 }
 0xcd8   :  { %4395 = vrcp.f32 %v3150_v54  ;;  %v3157_v37 = vadd.f32 1.0, %v4392_v19  ;;  %v8591_v54 = vld [vmem:[#allocation46_spill] sm:$0xff]  ;;  %v8593_v19 = vld [vmem:[#allocation4_spill] sm:$0xff] }
 0xcda   :  { %4397 = vrcp.f32 %v3157_v37  ;;  %v8597_v37 = vld [vmem:[#allocation48_spill] sm:$0xff] }
 0xce3   :  { %v4394_v22 = vpop.eup %4393 }
 0xce4   :  { %v3161_v57 = vmul.f32 %v4394_v22, %v4390_v4  ;;  %v8592_v4 = vld [vmem:[#allocation45_spill] sm:$0xff] }
 0xce5   :  { %v4396_v20 = vpop.eup %4395  ;;  %v8594_v22 = vld [vmem:[#allocation13_spill] sm:$0xff] }
 0xce6   :  { %v3160_v29 = vmul.f32 %v4396_v20, %v7368_v6  ;;  %v8583_v6 = vld [vmem:[#allocation25_spill] sm:$0xff] }
 0xce7   :  { %v4398_v44 = vpop.eup %4397  ;;  %v8596_v20 = vld [vmem:[#allocation37_spill] sm:$0xff] }
 0xce8   :  { %v7680_v53 = vadd.f32 %v3161_v57, %v3160_v29  ;;  %v8595_v57 = vld [vmem:[#allocation36_spill] sm:$0xff]  ;;  %v8598_v29 = vld [vmem:[#allocation22_spill] sm:$0xff] }
 0xcea   :  { %4399 = vtanh.f32 %v7680_v53 }
 0xcf7   :  { %v4400_v59 = vpop.eup %4399 }
 0xcf8   :  { %v7683_v14 = vmul.f32 %v4400_v59, %v4398_v44  ;;  %v8599_v44 = vld [vmem:[#allocation23_spill] sm:$0xff] }
 0xcf9   :  { %v8600_v59 = vld [vmem:[#allocation31_spill] sm:$0xff] }
 0xcfa   :  { %8582 = vst [vmem:[#allocation47_spill] sm:$0xff] %v7683_v14  ;;  %3235 = vmatmul.mubr.f32.vlgmr.msra.gmra.mxu0 %v7683_v14  ;;  %3306 = vmatmul.mubr.f32.vlgmr.msra.gmra.mxu1 %v7683_v14  ;;  %v8601_v14 = vld [vmem:[#allocation42_spill] sm:$0xff] }
 0xcfb   :  { %3346 = vmatpush1.msra.mxu0 %v7206_v62  ;;  %3417 = vmatpush1.msra.mxu1 %v7212_v8 }
 0xcfc   :  { %3347 = vmatprep.subr.mxu0 %v7218_v50  ;;  %3418 = vmatprep.subr.mxu1 %v7224_v40 }
 0xcfd   :  { %3348 = vmatpush1.msra.mxu0 %v7230_v0  ;;  %3419 = vmatpush1.msra.mxu1 %v7236_v52 }
 0xcfe   :  { %3349 = vmatprep.subr.mxu0 %v7242_v48  ;;  %3420 = vmatprep.subr.mxu1 %v7248_v9 }
 0xcff   :  { %3350 = vmatpush1.msra.mxu0 %v7254_v23  ;;  %3421 = vmatpush1.msra.mxu1 %v7260_v58 }
 0xd00   :  { %3351 = vmatprep.subr.mxu0 %v7266_v41  ;;  %3422 = vmatprep.subr.mxu1 %v7272_v24 }
 0xd01   :  { %3352 = vmatpush1.msra.mxu0 %v7278_v38  ;;  %3423 = vmatpush1.msra.mxu1 %v7284_v43 }
 0xd02   :  { %3353 = vmatprep.subr.mxu0 %v7290_v12  ;;  %3424 = vmatprep.subr.mxu1 %v7296_v46 }
 0xd03   :  { %3354 = vmatpush1.msra.mxu0 %v7394_v2  ;;  %3425 = vmatpush1.msra.mxu1 %v7400_v13 }
 0xd04   :  { %3355 = vmatprep.subr.mxu0 %v7406_v17  ;;  %3426 = vmatprep.subr.mxu1 %v7412_v21 }
 0xd05   :  { %3356 = vmatpush1.msra.mxu0 %v7418_v25  ;;  %3427 = vmatpush1.msra.mxu1 %v7424_v33 }
 0xd06   :  { %3357 = vmatprep.subr.mxu0 %v7430_v3  ;;  %3428 = vmatprep.subr.mxu1 %v7436_v18 }
 0xd07   :  { %3358 = vmatpush1.msra.mxu0 %v7442_v51  ;;  %3429 = vmatpush1.msra.mxu1 %v7448_v11 }
 0xd08   :  { %3359 = vmatprep.subr.mxu0 %v7454_v45  ;;  %3430 = vmatprep.subr.mxu1 %v7460_v15 }
 0xd09   :  { %3360 = vmatpush1.msra.mxu0 %v7466_v5  ;;  %3431 = vmatpush1.msra.mxu1 %v7472_v1 }
 0xd0a   :  { %3361 = vmatprep.subr.mxu0 %v7478_v61  ;;  %3432 = vmatprep.subr.mxu1 %v7484_v47 }
 0xd0b   :  { %3362 = vmatpush1.msra.mxu0 %v7490_v16  ;;  %3433 = vmatpush1.msra.mxu1 %v7496_v31 }
 0xd0c   :  { %3363 = vmatprep.subr.mxu0 %v7502_v39  ;;  %3434 = vmatprep.subr.mxu1 %v7508_v30 }
 0xd0d   :  { %3364 = vmatpush1.msra.mxu0 %v7514_v55  ;;  %3435 = vmatpush1.msra.mxu1 %v7520_v27 }
 0xd0e   :  { %3365 = vmatprep.subr.mxu0 %v7526_v34  ;;  %3436 = vmatprep.subr.mxu1 %v7532_v42 }
 0xd0f   :  { %3366 = vmatpush1.msra.mxu0 %v7538_v56  ;;  %3437 = vmatpush1.msra.mxu1 %v8583_v6 }
 0xd10   :  { %3367 = vmatprep.subr.mxu0 %v8584_v7  ;;  %3438 = vmatprep.subr.mxu1 %v8585_v60  ;;  %v8611_v60 = vld [vmem:[#allocation53_spill] sm:$0xff] }
 0xd11   :  { %3368 = vmatpush1.msra.mxu0 %v8586_v49  ;;  %3439 = vmatpush1.msra.mxu1 %v8587_v32 }
 0xd12   :  { %3369 = vmatprep.subr.mxu0 %v8588_v26  ;;  %3440 = vmatprep.subr.mxu1 %v8589_v10 }
 0xd13   :  { %3370 = vmatpush1.msra.mxu0 %v8590_v63  ;;  %3441 = vmatpush1.msra.mxu1 %v8591_v54  ;;  %v8602_v54 = vld [vmem:[#allocation9_spill] sm:$0xff] }
 0xd14   :  { %3371 = vmatprep.subr.mxu0 %v8592_v4  ;;  %3442 = vmatprep.subr.mxu1 %v8593_v19  ;;  %v8603_v4 = vmov 0.0   ;;  %v8604_v19 = vld [vmem:[#allocation8_spill] sm:$0xff] }
 0xd15   :  { %3372 = vmatpush1.msra.mxu0 %v8594_v22  ;;  %3443 = vmatpush1.msra.mxu1 %v8595_v57  ;;  %v8605_v57 = vld [vmem:[#allocation7_spill] sm:$0xff] }
 0xd16   :  { %3373 = vmatprep.subr.mxu0 %v8596_v20  ;;  %3444 = vmatprep.subr.mxu1 %v8597_v37  ;;  %v8606_v20 = vld [vmem:[#allocation6_spill] sm:$0xff]  ;;  %v8607_v37 = vld [vmem:[#allocation41_spill] sm:$0xff] }
 0xd17   :  { %3374 = vmatpush1.msra.mxu0 %v8598_v29  ;;  %3445 = vmatpush1.msra.mxu1 %v8599_v44  ;;  %v8608_v29 = vld [vmem:[#allocation49_spill] sm:$0xff] }
 0xd18   :  { %3375 = vmatprep.subr.mxu0 %v8600_v59  ;;  %3446 = vmatprep.subr.mxu1 %v8601_v14  ;;  %v2061_v22 = vadd.f32 %v8608_v29, %v8607_v37  ;;  %v8609_v59 = vld [vmem:[#allocation16_spill] sm:$0xff]  ;;  %v2174_v29 = vadd.f32 %v8611_v60, %v7026_v28 }
 0xd19   :  { %3376 = vmatpush1.msra.mxu0 %v8602_v54  ;;  %3409 = vmatprep.mubr.f32.mxu0 %v8603_v4  ;;  %v2063_v63 = vadd.f32 %v8609_v59, %v7009_v36 }
 0xd1a   :  { %3447 = vmatpush1.msra.mxu1 %v8604_v19  ;;  %3480 = vmatprep.mubr.f32.mxu1 %v8603_v4 }
 0xd1b   :  { %3520 = vmatprep.subr.mxu0 %v8605_v57  ;;  %3591 = vmatprep.subr.mxu1 %v8606_v20  ;;  %v8610_v57 = vld [vmem:[#allocation12_spill] sm:$0xff] }
 0xd1c   :  { %v2176_v49 = vadd.f32 %v8610_v57, %v7021_v35 }
 0xdba   :  { %v3236_v44 = vpop.f32.mrf.mxu0  ;;  %v3307_v32 = vpop.f32.mrf.mxu1 }
 0xdbb   :  { %v3312_v14 = vadd.f32 %v3236_v44, %v2061_v22  ;;  %v3314_v37 = vadd.f32 %v3307_v32, %v2174_v29 }
 0xdbc   :  { %v3238_v10 = vpop.f32.mrf.mxu0  ;;  %v3309_v4 = vpop.f32.mrf.mxu1 }
 0xdbd   :  { %v4112_v54 = vmul.f32 -1.442695, %v3312_v14  ;;  %v3313_v26 = vadd.f32 %v3238_v10, %v2063_v63  ;;  %v3315_v20 = vadd.f32 %v3309_v4, %v2176_v49 }
 0xdbf   :  { %4401 = vpow2.f32 %v4112_v54  ;;  %v4113_v19 = vmul.f32 -1.442695, %v3313_v26  ;;  %v4114_v7 = vmul.f32 -1.442695, %v3315_v20 }
 0xdc1   :  { %4403 = vpow2.f32 %v4113_v19 }
 0xdc2   :  { %4405 = vtanh.f32 %v3314_v37 }
 0xdc3   :  { %4407 = vpow2.f32 %v4114_v7 }
 0xdcc   :  { %v4402_v6 = vpop.eup %4401 }
 0xdcd   :  { %v3319_v59 = vadd.f32 1.0, %v4402_v6 }
 0xdce   :  { %v4404_v22 = vpop.eup %4403 }
 0xdcf   :  { %4409 = vrcp.f32 %v3319_v59  ;;  %v3325_v14 = vadd.f32 1.0, %v4404_v22  ;;  %v4406_v26 = vpop.eup %4405 }
 0xdd0   :  { %v4408_v10 = vpop.eup %4407 }
 0xdd1   :  { %4411 = vrcp.f32 %v3325_v14  ;;  %v3332_v44 = vadd.f32 1.0, %v4408_v10 }
 0xdd3   :  { %4413 = vrcp.f32 %v3332_v44 }
 0xddc   :  { %v4410_v63 = vpop.eup %4409 }
 0xddd   :  { %v3336_v54 = vmul.f32 %v4410_v63, %v4406_v26 }
 0xdde   :  { %v4412_v19 = vpop.eup %4411 }
 0xddf   :  { %v3335_v49 = vmul.f32 %v4412_v19, %v7680_v53 }
 0xde0   :  { %v4414_v6 = vpop.eup %4413 }
 0xde1   :  { %v7762_v4 = vadd.f32 %v3336_v54, %v3335_v49 }
 0xde3   :  { %4415 = vtanh.f32 %v7762_v4 }
 0xdf0   :  { %v4416_v60 = vpop.eup %4415 }
 0xdf1   :  { %v7765_v32 = vmul.f32 %v4416_v60, %v4414_v6  ;;  %v3717_v60 = vld [vmem:[%s8003_s6 + $0x70] sm:$0xff] }
 0xdf3   :  { %3410 = vmatmul.mubr.f32.vlgmr.msra.gmra.mxu0 %v7765_v32  ;;  %3481 = vmatmul.mubr.f32.vlgmr.msra.gmra.mxu1 %v7765_v32 }
 0xdf4   :  { %3521 = vmatpush1.msra.mxu0 %v7206_v62  ;;  %3592 = vmatpush1.msra.mxu1 %v7212_v8  ;;  %v8612_v62 = vld [vmem:[#allocation25_spill] sm:$0xff]  ;;  %v8613_v8 = vld [vmem:[#allocation26_spill] sm:$0xff] }
 0xdf5   :  { %3522 = vmatprep.subr.mxu0 %v7218_v50  ;;  %3593 = vmatprep.subr.mxu1 %v7224_v40  ;;  %v8614_v50 = vld [vmem:[#allocation32_spill] sm:$0xff]  ;;  %v8615_v40 = vld [vmem:[#allocation33_spill] sm:$0xff] }
 0xdf6   :  { %3523 = vmatpush1.msra.mxu0 %v7230_v0  ;;  %3594 = vmatpush1.msra.mxu1 %v7236_v52  ;;  %v8616_v0 = vld [vmem:[#allocation44_spill] sm:$0xff]  ;;  %v8617_v52 = vld [vmem:[#allocation43_spill] sm:$0xff] }
 0xdf7   :  { %3524 = vmatprep.subr.mxu0 %v7242_v48  ;;  %3595 = vmatprep.subr.mxu1 %v7248_v9  ;;  %v8618_v48 = vld [vmem:[#allocation34_spill] sm:$0xff]  ;;  %v8619_v9 = vld [vmem:[#allocation35_spill] sm:$0xff] }
 0xdf8   :  { %3525 = vmatpush1.msra.mxu0 %v7254_v23  ;;  %3596 = vmatpush1.msra.mxu1 %v7260_v58  ;;  %v8620_v23 = vld [vmem:[#allocation46_spill] sm:$0xff]  ;;  %v8621_v58 = vld [vmem:[#allocation45_spill] sm:$0xff] }
 0xdf9   :  { %3526 = vmatprep.subr.mxu0 %v7266_v41  ;;  %3597 = vmatprep.subr.mxu1 %v7272_v24  ;;  %v8622_v41 = vld [vmem:[#allocation4_spill] sm:$0xff]  ;;  %v8623_v24 = vld [vmem:[#allocation13_spill] sm:$0xff] }
 0xdfa   :  { %3527 = vmatpush1.msra.mxu0 %v7278_v38  ;;  %3598 = vmatpush1.msra.mxu1 %v7284_v43  ;;  %v8624_v38 = vld [vmem:[#allocation36_spill] sm:$0xff]  ;;  %v8625_v43 = vld [vmem:[#allocation37_spill] sm:$0xff] }
 0xdfb   :  { %3528 = vmatprep.subr.mxu0 %v7290_v12  ;;  %3599 = vmatprep.subr.mxu1 %v7296_v46  ;;  %v8626_v12 = vld [vmem:[#allocation48_spill] sm:$0xff]  ;;  %v8627_v46 = vld [vmem:[#allocation22_spill] sm:$0xff] }
 0xdfc   :  { %3529 = vmatpush1.msra.mxu0 %v7394_v2  ;;  %3600 = vmatpush1.msra.mxu1 %v7400_v13  ;;  %v8628_v2 = vld [vmem:[#allocation23_spill] sm:$0xff] }
 0xdfd   :  { %3530 = vmatprep.subr.mxu0 %v7406_v17  ;;  %3601 = vmatprep.subr.mxu1 %v7412_v21  ;;  %v8629_v13 = vld [vmem:[#allocation31_spill] sm:$0xff]  ;;  %v8630_v17 = vld [vmem:[#allocation42_spill] sm:$0xff]  ;;  %v8631_v21 = vld [vmem:[#allocation9_spill] sm:$0xff] }
 0xdfe   :  { %3531 = vmatpush1.msra.mxu0 %v7418_v25  ;;  %3602 = vmatpush1.msra.mxu1 %v7424_v33  ;;  %v8632_v25 = vmov 0.0   ;;  %v8633_v33 = vld [vmem:[#allocation8_spill] sm:$0xff] }
 0xdff   :  { %3532 = vmatprep.subr.mxu0 %v7430_v3  ;;  %3603 = vmatprep.subr.mxu1 %v7436_v18  ;;  %v3718_v3 = vld [vmem:[%s8003_s6 + $0x78] sm:$0xff]  ;;  %v8634_v18 = vld [vmem:[#allocation41_spill] sm:$0xff] }
 0xe00   :  { %3533 = vmatpush1.msra.mxu0 %v7442_v51  ;;  %3604 = vmatpush1.msra.mxu1 %v7448_v11  ;;  %v8635_v51 = vld [vmem:[#allocation14_spill] sm:$0xff] }
 0xe01   :  { %3534 = vmatprep.subr.mxu0 %v7454_v45  ;;  %3605 = vmatprep.subr.mxu1 %v7460_v15  ;;  %v2067_v11 = vadd.f32 %v8635_v51, %v8634_v18  ;;  %v8636_v15 = vld [vmem:[#allocation40_spill] sm:$0xff] }
 0xe02   :  { %3535 = vmatpush1.msra.mxu0 %v7466_v5  ;;  %3606 = vmatpush1.msra.mxu1 %v7472_v1  ;;  %v2069_v5 = vadd.f32 %v8636_v15, %v7009_v36 }
 0xe03   :  { %3536 = vmatprep.subr.mxu0 %v7478_v61  ;;  %3607 = vmatprep.subr.mxu1 %v7484_v47 }
 0xe04   :  { %3537 = vmatpush1.msra.mxu0 %v7490_v16  ;;  %3608 = vmatpush1.msra.mxu1 %v7496_v31 }
 0xe05   :  { %3538 = vmatprep.subr.mxu0 %v7502_v39  ;;  %3609 = vmatprep.subr.mxu1 %v7508_v30 }
 0xe06   :  { %3539 = vmatpush1.msra.mxu0 %v7514_v55  ;;  %3610 = vmatpush1.msra.mxu1 %v7520_v27  ;;  %v8637_v55 = vld [vmem:[#allocation52_spill] sm:$0xff] }
 0xe07   :  { %3540 = vmatprep.subr.mxu0 %v7526_v34  ;;  %3611 = vmatprep.subr.mxu1 %v7532_v42  ;;  %v2182_v27 = vadd.f32 %v8637_v55, %v7021_v35  ;;  %v8638_v42 = vld [vmem:[#allocation21_spill] sm:$0xff] }
 0xe08   :  { %3541 = vmatpush1.msra.mxu0 %v7538_v56  ;;  %3612 = vmatpush1.msra.mxu1 %v8612_v62  ;;  %v2180_v56 = vadd.f32 %v8638_v42, %v7026_v28  ;;  %v8639_v62 = vld [vmem:[#allocation56_spill] sm:$0xff]  ;;  %v8648_v42 = vlaneseq }
 0xe09   :  { %3542 = vmatprep.subr.mxu0 %v8613_v8  ;;  %3613 = vmatprep.subr.mxu1 %v8614_v50  ;;  %v3715_v8 = vld [vmem:[%s8003_s6 + $0x60] sm:$0xff]  ;;  %v3714_v50 = vld [vmem:[%s8003_s6 + $0x58] sm:$0xff] }
 0xe0a   :  { %3543 = vmatpush1.msra.mxu0 %v8615_v40  ;;  %3614 = vmatpush1.msra.mxu1 %v8616_v0  ;;  %v3713_v40 = vld [vmem:[%s8003_s6 + $0x50] sm:$0xff]  ;;  %v3712_v0 = vld [vmem:[%s8003_s6 + $0x48] sm:$0xff] }
 0xe0b   :  { %3544 = vmatprep.subr.mxu0 %v8617_v52  ;;  %3615 = vmatprep.subr.mxu1 %v8618_v48  ;;  %v3711_v52 = vld [vmem:[%s8003_s6 + $0x40] sm:$0xff]  ;;  %v3710_v48 = vld [vmem:[%s8003_s6 + $0x38] sm:$0xff] }
 0xe0c   :  { %3545 = vmatpush1.msra.mxu0 %v8619_v9  ;;  %3616 = vmatpush1.msra.mxu1 %v8620_v23  ;;  %v3709_v9 = vld [vmem:[%s8003_s6 + $0x30] sm:$0xff]  ;;  %v3708_v23 = vld [vmem:[%s8003_s6 + $0x28] sm:$0xff] }
 0xe0d   :  { %3546 = vmatprep.subr.mxu0 %v8621_v58  ;;  %3617 = vmatprep.subr.mxu1 %v8622_v41  ;;  %v3707_v58 = vld [vmem:[%s8003_s6 + $0x20] sm:$0xff]  ;;  %v3706_v41 = vld [vmem:[%s8003_s6 + $0x18] sm:$0xff] }
 0xe0e   :  { %3547 = vmatpush1.msra.mxu0 %v8623_v24  ;;  %3618 = vmatpush1.msra.mxu1 %v8624_v38  ;;  %v3705_v24 = vld [vmem:[%s8003_s6 + $0x10] sm:$0xff]  ;;  %v3704_v38 = vld [vmem:[%s8003_s6 + $0x8] sm:$0xff] }
 0xe0f   :  { %3548 = vmatprep.subr.mxu0 %v8625_v43  ;;  %3619 = vmatprep.subr.mxu1 %v8626_v12  ;;  %v3703_v43 = vld [vmem:[%s8003_s6] sm:$0xff]  ;;  %v8640_v12 = vld [vmem:[#allocation29_spill] sm:$0xff] }
 0xe10   :  { %3549 = vmatpush1.msra.mxu0 %v8627_v46  ;;  %3620 = vmatpush1.msra.mxu1 %v8628_v2  ;;  %v8641_v46 = vld [vmem:[#allocation30_spill] sm:$0xff]  ;;  %v8642_v2 = vld [vmem:[#allocation24_spill] sm:$0xff] }
 0xe11   :  { %3550 = vmatprep.subr.mxu0 %v8629_v13  ;;  %3621 = vmatprep.subr.mxu1 %v8630_v17  ;;  %v8643_v13 = vld [vmem:[#allocation47_spill] sm:$0xff] }
 0xe12   :  { %3551 = vmatpush1.msra.mxu0 %v8631_v21  ;;  %3584 = vmatprep.mubr.f32.mxu0 %v8632_v25  ;;  %v8644_v17 = vld [vmem:[#allocation51_spill] sm:$0xff] }
 0xe13   :  { %3622 = vmatpush1.msra.mxu1 %v8633_v33  ;;  %3655 = vmatprep.mubr.f32.mxu1 %v8632_v25  ;;  %v2073_v21 = vadd.f32 %v8644_v17, %v8634_v18  ;;  %v8645_v33 = vld [vmem:[#allocation54_spill] sm:$0xff] }
 0xe14   :  { %4148 = vmatprep.subr.mxu0 %v3718_v3 }
 0xeb3   :  { %v3411_v45 = vpop.f32.mrf.mxu0  ;;  %v3482_v31 = vpop.f32.mrf.mxu1 }
 0xeb4   :  { %v3487_v1 = vadd.f32 %v3411_v45, %v2067_v11  ;;  %v3489_v53 = vadd.f32 %v3482_v31, %v2180_v56  ;;  %v8647_v31 = vld [vmem:[#allocation27_spill] sm:$0xff]  ;;  %v7908_v56 = vand.u32 127, %v8648_v42 }
 0xeb5   :  { %v3413_v61 = vpop.f32.mrf.mxu0  ;;  %v3484_v30 = vpop.f32.mrf.mxu1  ;;  %v2186_v18 = vadd.f32 %v8647_v31, %v7026_v28 }
 0xeb6   :  { %v4115_v47 = vmul.f32 -1.442695, %v3487_v1  ;;  %v3488_v16 = vadd.f32 %v3413_v61, %v2069_v5  ;;  %v3490_v34 = vadd.f32 %v3484_v30, %v2182_v27  ;;  %vm3833_vm0 = vcmp.lt.s32.totalorder %v7908_v56, 50 }
 0xeb8   :  { %4417 = vpow2.f32 %v4115_v47  ;;  %v4116_v39 = vmul.f32 -1.442695, %v3488_v16  ;;  %v4117_v7 = vmul.f32 -1.442695, %v3490_v34  ;;  %v8646_v47 = vld [vmem:[#allocation55_spill] sm:$0xff] }
 0xeba   :  { %4419 = vpow2.f32 %v4116_v39 }
 0xebb   :  { %4421 = vtanh.f32 %v3489_v53 }
 0xebc   :  { %4423 = vpow2.f32 %v4117_v7 }
 0xec5   :  { %v4418_v37 = vpop.eup %4417 }
 0xec6   :  { %v3494_v57 = vadd.f32 1.0, %v4418_v37 }
 0xec7   :  { %v4420_v20 = vpop.eup %4419 }
 0xec8   :  { %4425 = vrcp.f32 %v3494_v57  ;;  %v3500_v29 = vadd.f32 1.0, %v4420_v20  ;;  %v4422_v59 = vpop.eup %4421 }
 0xec9   :  { %v4424_v22 = vpop.eup %4423 }
 0xeca   :  { %4427 = vrcp.f32 %v3500_v29  ;;  %v3507_v63 = vadd.f32 1.0, %v4424_v22 }
 0xecc   :  { %4429 = vrcp.f32 %v3507_v63 }
 0xed5   :  { %v4426_v14 = vpop.eup %4425 }
 0xed6   :  { %v3511_v26 = vmul.f32 %v4426_v14, %v4422_v59 }
 0xed7   :  { %v4428_v10 = vpop.eup %4427 }
 0xed8   :  { %v3510_v54 = vmul.f32 %v4428_v10, %v7762_v4  ;;  %v3716_v4 = vld [vmem:[%s8003_s6 + $0x68] sm:$0xff] }
 0xed9   :  { %v4430_v44 = vpop.eup %4429 }
 0xeda   :  { %v7845_v19 = vadd.f32 %v3511_v26, %v3510_v54 }
 0xedc   :  { %4431 = vtanh.f32 %v7845_v19 }
 0xee9   :  { %v4432_v49 = vpop.eup %4431 }
 0xeea   :  { %v3514_v6 = vmul.f32 %v4432_v49, %v4430_v44 }
 0xeec   :  { %3585 = vmatmul.mubr.f32.vlgmr.msra.gmra.mxu0 %v3514_v6  ;;  %3656 = vmatmul.mubr.f32.vlgmr.msra.gmra.mxu1 %v3514_v6 }
 0xeed   :  { %4149 = vmatpush3.msra.mxu0 %v3718_v3  ;;  %4180 = vmatprep.mubr.f32.mxu0 %v8639_v62  ;;  %v2075_v3 = vadd.f32 %v8645_v33, %v7009_v36 }
 0xeee   :  { %4150 = vmatprep.subr.mxu0 %v3717_v60 }
 0xeef   :  { %4151 = vmatpush3.msra.mxu0 %v3717_v60 }
 0xef0   :  { %4152 = vmatprep.subr.mxu0 %v3716_v4 }
 0xef1   :  { %4153 = vmatpush3.msra.mxu0 %v3716_v4 }
 0xef2   :  { %4154 = vmatprep.subr.mxu0 %v3715_v8 }
 0xef3   :  { %4155 = vmatpush3.msra.mxu0 %v3715_v8 }
 0xef4   :  { %4156 = vmatprep.subr.mxu0 %v3714_v50 }
 0xef5   :  { %4157 = vmatpush3.msra.mxu0 %v3714_v50 }
 0xef6   :  { %4158 = vmatprep.subr.mxu0 %v3713_v40 }
 0xef7   :  { %4159 = vmatpush3.msra.mxu0 %v3713_v40 }
 0xef8   :  { %4160 = vmatprep.subr.mxu0 %v3712_v0 }
 0xef9   :  { %4161 = vmatpush3.msra.mxu0 %v3712_v0 }
 0xefa   :  { %4162 = vmatprep.subr.mxu0 %v3711_v52 }
 0xefb   :  { %4163 = vmatpush3.msra.mxu0 %v3711_v52 }
 0xefc   :  { %4164 = vmatprep.subr.mxu0 %v3710_v48 }
 0xefd   :  { %4165 = vmatpush3.msra.mxu0 %v3710_v48 }
 0xefe   :  { %4166 = vmatprep.subr.mxu0 %v3709_v9 }
 0xeff   :  { %4167 = vmatpush3.msra.mxu0 %v3709_v9 }
 0xf00   :  { %4168 = vmatprep.subr.mxu0 %v3708_v23 }
 0xf01   :  { %4169 = vmatpush3.msra.mxu0 %v3708_v23 }
 0xf02   :  { %4170 = vmatprep.subr.mxu0 %v3707_v58 }
 0xf03   :  { %4171 = vmatpush3.msra.mxu0 %v3707_v58 }
 0xf04   :  { %4172 = vmatprep.subr.mxu0 %v3706_v41 }
 0xf05   :  { %4173 = vmatpush3.msra.mxu0 %v3706_v41 }
 0xf06   :  { %4174 = vmatprep.subr.mxu0 %v3705_v24 }
 0xf07   :  { %4175 = vmatpush3.msra.mxu0 %v3705_v24 }
 0xf08   :  { %4176 = vmatprep.subr.mxu0 %v3704_v38 }
 0xf09   :  { %4177 = vmatpush3.msra.mxu0 %v3704_v38 }
 0xf0a   :  { %4178 = vmatprep.subr.mxu0 %v3703_v43 }
 0xf0b   :  { %4179 = vmatpush3.msra.mxu0 %v3703_v43 }
 0xf0c   :  { %4181 = vmatmul.mubr.f32.vlgmr.msra.gmra.mxu0 %v8640_v12 }
 0xf0d   :  { %4183 = vmatprep.mubr.f32.mxu0 %v8641_v46 }
 0xf10   :  { %4184 = vmatmul.mubr.f32.gmra.mxu0 %v8642_v2 }
 0xf11   :  { %4186 = vmatprep.mubr.f32.mxu0 %v8643_v13 }
 0xf14   :  { %4187 = vmatmul.mubr.f32.gmra.mxu0 %v7765_v32  ;;  %v2188_v32 = vadd.f32 %v8646_v47, %v7021_v35  ;;  %v7913_v35 = vld [vmem:[%s8004_s7] ss:$0 sm:$0xff] }
 0xf15   :  { %4189 = vmatprep.mubr.f32.mxu0 %v3514_v6 }
 0xfac   :  { %v3586_v25 = vpop.f32.mrf.mxu0  ;;  %v3657_v5 = vpop.f32.mrf.mxu1 }
 0xfad   :  { %v3662_v51 = vadd.f32 %v3586_v25, %v2073_v21  ;;  %v3664_v39 = vadd.f32 %v3657_v5, %v2186_v18 }
 0xfae   :  { %v3588_v11 = vpop.f32.mrf.mxu0  ;;  %v3659_v61 = vpop.f32.mrf.mxu1 }
 0xfaf   :  { %v4118_v45 = vmul.f32 -1.442695, %v3662_v51  ;;  %v3663_v15 = vadd.f32 %v3588_v11, %v2075_v3  ;;  %v3665_v16 = vadd.f32 %v3659_v61, %v2188_v32 }
 0xfb1   :  { %4433 = vpow2.f32 %v4118_v45  ;;  %v4119_v1 = vmul.f32 -1.442695, %v3663_v15  ;;  %v4120_v30 = vmul.f32 -1.442695, %v3665_v16 }
 0xfb3   :  { %4435 = vpow2.f32 %v4119_v1 }
 0xfb4   :  { %4437 = vtanh.f32 %v3664_v39 }
 0xfb5   :  { %4439 = vpow2.f32 %v4120_v30 }
 0xfbe   :  { %v4434_v55 = vpop.eup %4433 }
 0xfbf   :  { %v3669_v36 = vadd.f32 1.0, %v4434_v55 }
 0xfc0   :  { %v4436_v27 = vpop.eup %4435 }
 0xfc1   :  { %4441 = vrcp.f32 %v3669_v36  ;;  %v3675_v34 = vadd.f32 1.0, %v4436_v27  ;;  %v4438_v53 = vpop.eup %4437 }
 0xfc2   :  { %v4440_v7 = vpop.eup %4439 }
 0xfc3   :  { %4443 = vrcp.f32 %v3675_v34  ;;  %v3682_v26 = vadd.f32 1.0, %v4440_v7 }
 0xfc5   :  { %4445 = vrcp.f32 %v3682_v26 }
 0xfcc   :  { %v4182_v28 = vpop.f32.mrf.mxu0 }
 0xfcd   :  { %v3798_v37 = vadd.f32 %v4182_v28, %v7913_v35 }
 0xfce   :  { %v4442_v57 = vpop.eup %4441  ;;  %v3792_v20 = vpop.f32.mrf.mxu0 }
 0xfcf   :  { %v3686_v29 = vmul.f32 %v4442_v57, %v4438_v53  ;;  %v3793_v59 = vadd.f32 %v7913_v35, %v3792_v20  ;;  %v3835_v22 = vsel %vm3833_vm0, %v3798_v37, -1e+30 }
 0xfd0   :  { %v4444_v14 = vpop.eup %4443  ;;  %3844 = vmax.xlane.f32.xlu0 %v3835_v22  ;;  %v4185_v10 = vpop.f32.mrf.mxu0 }
 0xfd1   :  { %v3685_v63 = vmul.f32 %v4444_v14, %v7845_v19  ;;  %v3808_v54 = vadd.f32 %v4185_v10, %v7913_v35  ;;  %v3834_v60 = vsel %vm3833_vm0, %v3793_v59, -1e+30 }
 0xfd2   :  { %v3802_v44 = vpop.f32.mrf.mxu0  ;;  %v4446_v48 = vpop.eup %4445 }
 0xfd3   :  { %v3803_v49 = vadd.f32 %v7913_v35, %v3802_v44  ;;  %v3837_v6 = vsel %vm3833_vm0, %v3808_v54, -1e+30  ;;  %v3687_v62 = vadd.f32 %v3686_v29, %v3685_v63 }
 0xfd4   :  { %3848 = vmax.xlane.f32.xlu1 %v3837_v6  ;;  %v4188_v4 = vpop.f32.mrf.mxu0  ;;  %3842 = vmax.xlane.f32.xlu0 %v3834_v60 }
 0xfd5   :  { %4447 = vtanh.f32 %v3687_v62  ;;  %4122 = vst [vmem:[%s8001_s10 + $0x8] sm:$0xff] %v3687_v62  ;;  %v3818_v8 = vadd.f32 %v4188_v4, %v7913_v35  ;;  %v3836_v40 = vsel %vm3833_vm0, %v3803_v49, -1e+30 }
 0xfd6   :  { %v3812_v19 = vpop.f32.mrf.mxu0 }
 0xfd7   :  { %v3813_v50 = vadd.f32 %v7913_v35, %v3812_v19  ;;  %v3839_v52 = vsel %vm3833_vm0, %v3818_v8, -1e+30 }
 0xfd8   :  { %3846 = vmax.xlane.f32.xlu1 %v3836_v40 }
 0xfd9   :  { %v3838_v0 = vsel %vm3833_vm0, %v3813_v50, -1e+30 }
 0xfda   :  { %3850 = vmax.xlane.f32.xlu0 %v3838_v0 }
 0xfdc   :  { %3852 = vmax.xlane.f32.xlu1 %v3839_v52 }
 0xfe2   :  { %v4448_v9 = vpop.eup %4447 }
 0xfe3   :  { %v3689_v23 = vmul.f32 %v4448_v9, %v4446_v48 }
 0xfe5   :  { %4121 = vst [vmem:[%s8002_s9 + $0x8] sm:$0xff] %v3689_v23  ;;  %4190 = vmatmul.mubr.f32.gmra.mxu0 %v3689_v23 }
0x1059   :  { %v3845_v58 = vpop.xlane.xlu0 %3844 }
0x105a   :  { %v7941_v43 = vsub.f32 %v3835_v22, %v3845_v58 }
0x105c   :  { %v3868_v46 = vmul.f32 1.442695, %v7941_v43 }
0x105d   :  { %v3849_v41 = vpop.xlane.xlu1 %3848  ;;  %v3843_v24 = vpop.xlane.xlu0 %3842 }
0x105e   :  { %v7943_v12 = vsub.f32 %v3834_v60, %v3843_v24  ;;  %v7946_v2 = vsub.f32 %v3837_v6, %v3849_v41  ;;  %4449 = vpow2.f32 %v3868_v46 }
0x1060   :  { %v3866_v17 = vmul.f32 1.442695, %v7943_v12  ;;  %v3872_v33 = vmul.f32 1.442695, %v7946_v2 }
0x1061   :  { %v3847_v38 = vpop.xlane.xlu1 %3846 }
0x1062   :  { %v7949_v21 = vsub.f32 %v3836_v40, %v3847_v38  ;;  %4451 = vpow2.f32 %v3866_v17 }
0x1063   :  { %v3851_v25 = vpop.xlane.xlu0 %3850  ;;  %4453 = vpow2.f32 %v3872_v33 }
0x1064   :  { %v3870_v51 = vmul.f32 1.442695, %v7949_v21  ;;  %v7955_v11 = vsub.f32 %v3838_v0, %v3851_v25 }
0x1065   :  { %v3853_v13 = vpop.xlane.xlu1 %3852 }
0x1066   :  { %v7952_v3 = vsub.f32 %v3839_v52, %v3853_v13  ;;  %4455 = vpow2.f32 %v3870_v51  ;;  %v3874_v15 = vmul.f32 1.442695, %v7955_v11 }
0x1068   :  { %v3876_v45 = vmul.f32 1.442695, %v7952_v3 }
0x106a   :  { %4457 = vpow2.f32 %v3876_v45 }
0x106b   :  { %4459 = vpow2.f32 %v3874_v15  ;;  %v4450_v31 = vpop.eup %4449 }
0x106f   :  { %v4452_v18 = vpop.eup %4451 }
0x1070   :  { %v4454_v39 = vpop.eup %4453 }
0x1073   :  { %v4456_v30 = vpop.eup %4455 }
0x1077   :  { %v4458_v55 = vpop.eup %4457 }
0x1078   :  { %v4460_v36 = vpop.eup %4459 }
0x10a5   :  { %v4191_v5 = vpop.f32.mrf.mxu0 }
0x10a6   :  { %v3828_v1 = vadd.f32 %v4191_v5, %v7913_v35 }
0x10a7   :  { %v3822_v61 = vpop.f32.mrf.mxu0 }
0x10a8   :  { %v3823_v47 = vadd.f32 %v7913_v35, %v3822_v61  ;;  %v3841_v32 = vsel %vm3833_vm0, %v3828_v1, -1e+30 }
0x10a9   :  { %3856 = vmax.xlane.f32.xlu1 %v3841_v32 }
0x10aa   :  { %v3840_v16 = vsel %vm3833_vm0, %v3823_v47, -1e+30 }
0x10ab   :  { %3854 = vmax.xlane.f32.xlu0 %v3840_v16 }
0x10ad   :  { %3884 = vadd.xlane.f32.xlu1 %v4450_v31 }
0x10af   :  { %3882 = vadd.xlane.f32.xlu0 %v4452_v18 }
0x10b1   :  { %3888 = vadd.xlane.f32.xlu1 %v4454_v39 }
0x10b3   :  { %3886 = vadd.xlane.f32.xlu0 %v4456_v30 }
0x10b5   :  { %3892 = vadd.xlane.f32.xlu1 %v4458_v55 }
0x10b7   :  { %3890 = vadd.xlane.f32.xlu0 %v4460_v36 }
0x1132   :  { %v3857_v27 = vpop.xlane.xlu1 %3856 }
0x1133   :  { %v3865_v34 = vsub.f32 %v3841_v32, %v3857_v27 }
0x1134   :  { %v3855_v42 = vpop.xlane.xlu0 %3854 }
0x1135   :  { %v3880_v35 = vmul.f32 1.442695, %v3865_v34  ;;  %v3864_v53 = vsub.f32 %v3840_v16, %v3855_v42 }
0x1136   :  { %v3885_v56 = vpop.xlane.xlu1 %3884 }
0x1137   :  { %4461 = vpow2.f32 %v3880_v35  ;;  %v3878_v28 = vmul.f32 1.442695, %v3864_v53 }
0x1138   :  { %4463 = vlog2.f32 %v3885_v56  ;;  %v3883_v7 = vpop.xlane.xlu0 %3882 }
0x1139   :  { %4465 = vpow2.f32 %v3878_v28 }
0x113a   :  { %4467 = vlog2.f32 %v3883_v7  ;;  %v3889_v37 = vpop.xlane.xlu1 %3888 }
0x113b   :  { %4469 = vlog2.f32 %v3889_v37 }
0x113c   :  { %v3887_v57 = vpop.xlane.xlu0 %3886 }
0x113d   :  { %4471 = vlog2.f32 %v3887_v57 }
0x113e   :  { %v3893_v20 = vpop.xlane.xlu1 %3892 }
0x113f   :  { %4473 = vlog2.f32 %v3893_v20 }
0x1140   :  { %v3891_v29 = vpop.xlane.xlu0 %3890 }
0x1141   :  { %4475 = vlog2.f32 %v3891_v29 }
0x1144   :  { %v4462_v59 = vpop.eup %4461 }
0x1145   :  { %v4464_v22 = vpop.eup %4463  ;;  %3896 = vadd.xlane.f32.xlu1 %v4462_v59 }
0x1146   :  { %v4466_v14 = vpop.eup %4465  ;;  %v3901_v26 = vmul.f32 0.6931472, %v4464_v22 }
0x1147   :  { %v4468_v10 = vpop.eup %4467  ;;  %3894 = vadd.xlane.f32.xlu0 %v4466_v14 }
0x1148   :  { %v4470_v63 = vpop.eup %4469  ;;  %v3915_v54 = vsub.f32 %v7941_v43, %v3901_v26  ;;  %v3899_v44 = vmul.f32 0.6931472, %v4468_v10 }
0x1149   :  { %v3905_v49 = vmul.f32 0.6931472, %v4470_v63 }
0x114a   :  { %v4472_v6 = vpop.eup %4471  ;;  %3923 = vst [vmem:[%s8005_s8 + $0x8] sm:$0xff] %v3915_v54  ;;  %v3914_v60 = vsub.f32 %v7943_v12, %v3899_v44 }
0x114b   :  { %v3917_v62 = vsub.f32 %v7946_v2, %v3905_v49  ;;  %v3903_v4 = vmul.f32 0.6931472, %v4472_v6 }
0x114c   :  { %v4474_v19 = vpop.eup %4473  ;;  %3922 = vst [vmem:[%s8005_s8] sm:$0xff] %v3914_v60 }
0x114d   :  { %3925 = vst [vmem:[%s8005_s8 + $0x18] sm:$0xff] %v3917_v62  ;;  %v3916_v8 = vsub.f32 %v7949_v21, %v3903_v4  ;;  %v3909_v50 = vmul.f32 0.6931472, %v4474_v19 }
0x114e   :  { %v4476_v40 = vpop.eup %4475 }
0x114f   :  { %3924 = vst [vmem:[%s8005_s8 + $0x10] sm:$0xff] %v3916_v8  ;;  %v3919_v0 = vsub.f32 %v7952_v3, %v3909_v50  ;;  %v3907_v52 = vmul.f32 0.6931472, %v4476_v40 }
0x1151   :  { %3927 = vst [vmem:[%s8005_s8 + $0x28] sm:$0xff] %v3919_v0  ;;  %v3918_v48 = vsub.f32 %v7955_v11, %v3907_v52 }
0x1153   :  { %3926 = vst [vmem:[%s8005_s8 + $0x20] sm:$0xff] %v3918_v48 }
0x11ce   :  { %v3897_v9 = vpop.xlane.xlu1 %3896 }
0x11cf   :  { %4477 = vlog2.f32 %v3897_v9 }
0x11d0   :  { %v3895_v23 = vpop.xlane.xlu0 %3894 }
0x11d1   :  { %4479 = vlog2.f32 %v3895_v23 }
0x11dc   :  { %v4478_v58 = vpop.eup %4477 }
0x11dd   :  { %v3913_v41 = vmul.f32 0.6931472, %v4478_v58 }
0x11de   :  { %v4480_v24 = vpop.eup %4479 }
0x11df   :  { %v3921_v38 = vsub.f32 %v3865_v34, %v3913_v41  ;;  %v3911_v43 = vmul.f32 0.6931472, %v4480_v24 }
0x11e1   :  { %3929 = vst [vmem:[%s8005_s8 + $0x38] sm:$0xff] %v3921_v38  ;;  %v3920_v12 = vsub.f32 %v3864_v53, %v3911_v43 }
0x11e3   :  { %3928 = vst [vmem:[%s8005_s8 + $0x30] sm:$0xff] %v3920_v12 }

</bundles_post_ra>
